<compile_context>
chip_gen: v5e
topology: v5e:2x2
jax: 0.10.0
libtpu: 0.0.40
codegen_flags: <defaults>
</compile_context>

<pallas_src>
import functools
import math

import jax
import jax.numpy as jnp
from jax.experimental import pallas as pl
from jax.experimental.pallas import tpu as pltpu


# Scoped-VMEM limit: above the 16/32 MiB defaults (v5e/v6e) but safely below
# physical VMEM on every generation (128/128/64 MiB).
_VMEM_LIMIT_BYTES = 48 * 1024 * 1024
# Weights at or below this stay fully VMEM-resident (covers CLIP-B fc 4.5 MiB
# and ViT-L c_proj 8 MiB).
_WEIGHT_RESIDENT_BUDGET = 9 * 1024 * 1024


def _round_up(x, m):
    return ((x + m - 1) // m) * m


def _pick_row_tile(m, max_tile):
    """Row tile: always a multiple of 8, never the raw full-M fallback."""
    max_tile = max(8, (max_tile // 8) * 8)
    m_up = _round_up(m, 8)
    if m_up <= max_tile:
        return m_up
    if m % 8 == 0:
        # Prefer a tile that divides M exactly (no padding copy), but not a
        # tiny one (per-grid-step overhead).
        for t in range(max_tile, 63, -8):
            if m % t == 0:
                return t
    return max_tile          # pad M up to a multiple of max_tile in the wrapper


def _pick_head_group(n_heads, head_dim):
    """Smallest head group whose slab width is a multiple of 128 lanes."""
    for g in range(1, n_heads + 1):
        if n_heads % g == 0 and (g * head_dim) % 128 == 0:
            return g
    return n_heads           # tiny models: load the whole per-tensor slab once


# ----------------------------------------------------------------------------
# Fused [LayerNorm] -> matmul -> [bias] -> [QuickGELU] -> [residual] kernel
# ----------------------------------------------------------------------------
def _fused_linear_kernel(*refs, has_ln, has_bias, has_res, activation, eps,
                         n_tiled, compute_dtype):
    it = iter(refs)
    x_ref = next(it)
    g_ref = bln_ref = None
    if has_ln:
        g_ref = next(it)
        bln_ref = next(it)
    w_ref = next(it)
    b_ref = next(it) if has_bias else None
    r_ref = next(it) if has_res else None
    o_ref = next(it)
    xn_ref = next(it) if (n_tiled and has_ln) else None   # LN scratch (tiled-N)

    def _normalized_x():
        if not has_ln:
            return x_ref[...].astype(compute_dtype)
        x = x_ref[...].astype(jnp.float32)
        mu = jnp.mean(x, axis=-1, keepdims=True)
        var = jnp.mean(jnp.square(x - mu), axis=-1, keepdims=True)
        x = (x - mu) * jax.lax.rsqrt(var + eps)
        x = x * g_ref[...].astype(jnp.float32) + bln_ref[...].astype(jnp.float32)
        return x.astype(compute_dtype)

    if xn_ref is not None:
        # Tiled-N path: compute LN once per row tile (j == 0), reuse for all j.
        @pl.when(pl.program_id(1) == 0)
        def _():
            xn_ref[...] = _normalized_x()
        x_in = xn_ref[...]
    else:
        x_in = _normalized_x()

    acc = jnp.dot(x_in, w_ref[...], preferred_element_type=jnp.float32)
    if has_bias:
        acc = acc + b_ref[...].astype(jnp.float32)
    if activation == "quick_gelu":                 # CLIP QuickGELU: x*sigmoid(1.702x)
        acc = acc * jax.nn.sigmoid(1.702 * acc)
    if has_res:
        acc = acc + r_ref[...].astype(jnp.float32)
    o_ref[...] = acc.astype(o_ref.dtype)


def fused_linear(x, w, bias=None, *, ln_gamma=None, ln_beta=None,
                 activation=None, residual=None, out_dtype=None,
                 tm=256, tn=512, eps=1e-5,
                 weight_budget_bytes=_WEIGHT_RESIDENT_BUDGET):
    """y = [residual +] act([LN(x)] @ w [+ bias]).  x: (M, K), w: (K, N)."""
    M, K = x.shape
    N = w.shape[1]
    out_dtype = out_dtype or x.dtype
    compute_dtype = w.dtype

    has_ln = ln_gamma is not None
    has_bias = bias is not None
    has_res = residual is not None

    # --- row tiling (always pipelined; remainder rows zero-padded & cropped) ---
    bm = _pick_row_tile(M, tm)
    M_pad = _round_up(M, bm)
    if M_pad != M:
        x = jnp.pad(x, ((0, M_pad - M), (0, 0)))
        if has_res:
            residual = jnp.pad(residual, ((0, M_pad - M), (0, 0)))
    grid_m = M_pad // bm

    w_bytes = K * N * jnp.dtype(compute_dtype).itemsize
    resident = (w_bytes <= weight_budget_bytes) or (N % 128 != 0)

    inputs = [x]
    scratch_shapes = []

    if resident:
        # Weight fully VMEM-resident, 1-D 'parallel' grid over M: each operand
        # is read from HBM exactly once; LN computed once per row tile.
        grid = (grid_m,)
        dims = ("parallel",)
        in_specs = [pl.BlockSpec((bm, K), lambda i: (i, 0))]
        if has_ln:
            inputs += [ln_gamma.reshape(1, K), ln_beta.reshape(1, K)]
            in_specs += [pl.BlockSpec((1, K), lambda i: (0, 0))] * 2
        inputs.append(w)
        in_specs.append(pl.BlockSpec((K, N), lambda i: (0, 0)))
        if has_bias:
            inputs.append(bias.reshape(1, N))
            in_specs.append(pl.BlockSpec((1, N), lambda i: (0, 0)))
        if has_res:
            inputs.append(residual)
            in_specs.append(pl.BlockSpec((bm, N), lambda i: (i, 0)))
        out_spec = pl.BlockSpec((bm, N), lambda i: (i, 0))
        n_tiled = False
    else:
        # Large-weight fallback: tile N ('arbitrary'), keep LN in a VMEM scratch.
        bn = 128
        for t in (tn, 512, 384, 256, 128):
            if t <= tn and N % t == 0:
                bn = t
                break
        grid = (grid_m, N // bn)
        dims = ("parallel", "arbitrary")
        in_specs = [pl.BlockSpec((bm, K), lambda i, j: (i, 0))]
        if has_ln:
            inputs += [ln_gamma.reshape(1, K), ln_beta.reshape(1, K)]
            in_specs += [pl.BlockSpec((1, K), lambda i, j: (0, 0))] * 2
            scratch_shapes.append(pltpu.VMEM((bm, K), compute_dtype))
        inputs.append(w)
        in_specs.append(pl.BlockSpec((K, bn), lambda i, j: (0, j)))
        if has_bias:
            inputs.append(bias.reshape(1, N))
            in_specs.append(pl.BlockSpec((1, bn), lambda i, j: (0, j)))
        if has_res:
            inputs.append(residual)
            in_specs.append(pl.BlockSpec((bm, bn), lambda i, j: (i, j)))
        out_spec = pl.BlockSpec((bm, bn), lambda i, j: (i, j))
        n_tiled = True

    kernel = functools.partial(
        _fused_linear_kernel, has_ln=has_ln, has_bias=has_bias, has_res=has_res,
        activation=activation, eps=eps, n_tiled=n_tiled,
        compute_dtype=compute_dtype)

    out = pl.pallas_call(
        kernel,
        out_shape=jax.ShapeDtypeStruct((M_pad, N), out_dtype),
        grid=grid,
        in_specs=in_specs,
        out_specs=out_spec,
        scratch_shapes=scratch_shapes,
        compiler_params=pltpu.CompilerParams(
            dimension_semantics=dims, vmem_limit_bytes=_VMEM_LIMIT_BYTES),
    )(*inputs)
    return out[:M] if M_pad != M else out


# ----------------------------------------------------------------------------
# Fused (x + positional_embedding) -> LayerNorm (ln_pre of the vision tower)
# ----------------------------------------------------------------------------
def _pos_ln_kernel(x_ref, pos_ref, g_ref, b_ref, o_ref, *, eps):
    x = x_ref[0].astype(jnp.float32) + pos_ref[...].astype(jnp.float32)
    mu = jnp.mean(x, axis=-1, keepdims=True)
    var = jnp.mean(jnp.square(x - mu), axis=-1, keepdims=True)
    y = (x - mu) * jax.lax.rsqrt(var + eps)
    o_ref[0] = (y * g_ref[...].astype(jnp.float32)
                + b_ref[...].astype(jnp.float32)).astype(o_ref.dtype)


def add_pos_layernorm(x, pos, gamma, beta, eps=1e-5):
    B, S, D = x.shape
    return pl.pallas_call(
        functools.partial(_pos_ln_kernel, eps=eps),
        out_shape=jax.ShapeDtypeStruct((B, S, D), x.dtype),
        grid=(B,),
        in_specs=[pl.BlockSpec((1, S, D), lambda b: (b, 0, 0)),
                  pl.BlockSpec((S, D), lambda b: (0, 0)),
                  pl.BlockSpec((1, D), lambda b: (0, 0)),
                  pl.BlockSpec((1, D), lambda b: (0, 0))],
        out_specs=pl.BlockSpec((1, S, D), lambda b: (b, 0, 0)),
        compiler_params=pltpu.CompilerParams(
            dimension_semantics=("parallel",),
            vmem_limit_bytes=_VMEM_LIMIT_BYTES),
    )(x, pos, gamma.reshape(1, D), beta.reshape(1, D))


# ----------------------------------------------------------------------------
# Attention: one batch element per grid step, all heads inside the kernel.
# Input is the packed QKV projection (B, S, 3D); output is lane-dense (B, S, D).
# ----------------------------------------------------------------------------
def _attention_kernel(qkv_ref, o_ref, *, n_heads, head_dim, scale, causal, group):
    S = o_ref.shape[1]
    D = n_heads * head_dim
    gw = group * head_dim

    if causal:
        rows = jax.lax.broadcasted_iota(jnp.int32, (S, S), 0)
        cols = jax.lax.broadcasted_iota(jnp.int32, (S, S), 1)
        neg_mask = jnp.where(cols > rows, jnp.float32(-1e9), jnp.float32(0.0))

    for g0 in range(0, n_heads, group):
        off = g0 * head_dim
        # Slice the ref (one lane-aligned group slab per q/k/v) instead of
        # loading the whole (S, 3D) tensor into registers.
        q_g = qkv_ref[0, :, off:off + gw]
        k_g = qkv_ref[0, :, D + off:D + off + gw]
        v_g = qkv_ref[0, :, 2 * D + off:2 * D + off + gw]
        for h in range(group):
            lo, hi = h * head_dim, (h + 1) * head_dim
            q = q_g[:, lo:hi]
            k = k_g[:, lo:hi]
            v = v_g[:, lo:hi]
            s = jax.lax.dot_general(q, k, (((1,), (1,)), ((), ())),
                                    preferred_element_type=jnp.float32) * scale
            if causal:
                s = s + neg_mask
            s = s - jnp.max(s, axis=-1, keepdims=True)
            p = jnp.exp(s)
            p = p * pl.reciprocal(jnp.sum(p, axis=-1, keepdims=True), approx=True)
            o_h = jnp.dot(p.astype(v.dtype), v, preferred_element_type=jnp.float32)
            # Store each head as it is produced (no concat, bounded live ranges).
            o_ref[0, :, off + lo:off + hi] = o_h.astype(o_ref.dtype)


def attention(qkv, n_heads, causal):
    """qkv: (B, S, 3D) packed [q|k|v] projection.  Returns (B, S, D)."""
    B, S, D3 = qkv.shape
    D = D3 // 3
    head_dim = D // n_heads
    scale = 1.0 / math.sqrt(head_dim)
    group = _pick_head_group(n_heads, head_dim)
    kernel = functools.partial(_attention_kernel, n_heads=n_heads,
                               head_dim=head_dim, scale=scale,
                               causal=causal, group=group)
    return pl.pallas_call(
        kernel,
        out_shape=jax.ShapeDtypeStruct((B, S, D), qkv.dtype),
        grid=(B,),
        in_specs=[pl.BlockSpec((1, S, D3), lambda b: (b, 0, 0))],
        out_specs=pl.BlockSpec((1, S, D), lambda b: (b, 0, 0)),
        compiler_params=pltpu.CompilerParams(
            dimension_semantics=("parallel",),
            vmem_limit_bytes=_VMEM_LIMIT_BYTES),
    )(qkv)


# ----------------------------------------------------------------------------
# Final CLIP head: normalize both feature sets, scaled similarity matrix
# ----------------------------------------------------------------------------
def _clip_logits_kernel(img_ref, txt_ref, scale_ref, o_ref):
    img = img_ref[...].astype(jnp.float32)
    txt = txt_ref[...].astype(jnp.float32)
    img = img * jax.lax.rsqrt(jnp.sum(img * img, axis=-1, keepdims=True))
    txt = txt * jax.lax.rsqrt(jnp.sum(txt * txt, axis=-1, keepdims=True))
    sims = jax.lax.dot_general(img, txt, (((1,), (1,)), ((), ())),
                               preferred_element_type=jnp.float32)
    o_ref[...] = (scale_ref[0] * sims).astype(o_ref.dtype)


def clip_logits(image_features, text_features, logit_scale):
    B = image_features.shape[0]
    C = text_features.shape[0]
    scale = jnp.exp(logit_scale).reshape(1).astype(jnp.float32)   # hoisted exp
    return pl.pallas_call(
        _clip_logits_kernel,
        out_shape=jax.ShapeDtypeStruct((B, C), jnp.float32),
        in_specs=[pl.BlockSpec(memory_space=pltpu.MemorySpace.VMEM),
                  pl.BlockSpec(memory_space=pltpu.MemorySpace.VMEM),
                  pl.BlockSpec(memory_space=pltpu.MemorySpace.SMEM)],
        out_specs=pl.BlockSpec(memory_space=pltpu.MemorySpace.VMEM),
        compiler_params=pltpu.CompilerParams(
            vmem_limit_bytes=_VMEM_LIMIT_BYTES),
    )(image_features, text_features, scale)


# ----------------------------------------------------------------------------
# Transformer block: 5 fused pallas_calls, no JAX-level transposes/adds.
# ----------------------------------------------------------------------------
def residual_attention_block(x, p, n_heads, causal):
    B, S, D = x.shape
    x2 = x.reshape(B * S, D)
    # LN1 fused into the QKV projection
    qkv = fused_linear(x2, p["in_w"], p["in_b"],
                       ln_gamma=p["ln1_g"], ln_beta=p["ln1_b"])
    attn = attention(qkv.reshape(B, S, 3 * D), n_heads, causal)
    # out-projection with fused residual add
    x2 = fused_linear(attn.reshape(B * S, D), p["out_w"], p["out_b"],
                      residual=x2)
    # LN2 fused into fc + QuickGELU
    h = fused_linear(x2, p["fc_w"], p["fc_b"],
                     ln_gamma=p["ln2_g"], ln_beta=p["ln2_b"],
                     activation="quick_gelu")
    # c_proj with fused residual add
    x2 = fused_linear(h, p["cproj_w"], p["cproj_b"], residual=x2)
    return x2.reshape(B, S, D)


# ----------------------------------------------------------------------------
# CustomCLIP forward
# ----------------------------------------------------------------------------
def image_encoder(image, p, cfg):
    B, C, H, W = image.shape
    ps = cfg["patch_size"]
    gh, gw = H // ps, W // ps
    width = cfg["vis_width"]
    dt = jnp.bfloat16
    # patchify NCHW (channel-major inside a patch == stride=patch Conv2d flattening)
    patches = image.reshape(B, C, gh, ps, gw, ps).transpose(0, 2, 4, 1, 3, 5)
    patches = patches.reshape(B * gh * gw, C * ps * ps).astype(dt)
    x = fused_linear(patches, p["patch_w"]).reshape(B, gh * gw, width)  # conv has no bias
    cls_tok = jnp.broadcast_to(p["class_emb"].reshape(1, 1, width), (B, 1, width))
    x = jnp.concatenate([cls_tok, x], axis=1)                           # (B, S, width)
    # positional-embedding add fused into ln_pre (one Pallas pass over (B,S,D))
    x = add_pos_layernorm(x, p["pos_emb"], p["ln_pre_g"], p["ln_pre_b"])
    for blk in p["blocks"]:
        x = residual_attention_block(x, blk, cfg["vis_heads"], causal=False)
    # ln_post + projection fused, applied to the class token only
    return fused_linear(x[:, 0, :], p["proj"],
                        ln_gamma=p["ln_post_g"], ln_beta=p["ln_post_b"])


def prompt_learner_forward(p, cfg):
    # class_token_position == 'end' (default CoOp): [prefix | ctx | suffix]
    n_cls, n_ctx, D = cfg["n_cls"], cfg["n_ctx"], cfg["ctx_dim"]
    ctx = jnp.broadcast_to(p["ctx"][None], (n_cls, n_ctx, D))           # unsqueeze + expand
    return jnp.concatenate([p["token_prefix"], ctx, p["token_suffix"]], axis=1)


def text_encoder(prompts, tokenized_prompts, p, cfg):
    n_cls, S, D = prompts.shape
    # pos-emb add: tiny tensor, XLA fuses it into the prompt-assembly concat output.
    x = (prompts + p["pos_emb"][None]).astype(jnp.bfloat16)
    # (permute(1,0,2)/permute back of the reference is a layout no-op here)
    for blk in p["blocks"]:
        x = residual_attention_block(x, blk, cfg["txt_heads"], causal=True)
    eot = jnp.argmax(tokenized_prompts, axis=-1)                        # EOT-token index
    feats = x[jnp.arange(n_cls), eot]                                   # (n_cls, D)
    # LayerNorm is row-wise, so gather-then-LN == LN-then-gather:
    # fuse ln_final + text_projection on just the n_cls gathered rows.
    return fused_linear(feats, p["text_projection"],
                        ln_gamma=p["ln_final_g"], ln_beta=p["ln_final_b"])


def custom_clip_forward(image, params, cfg):
    image_features = image_encoder(image, params["visual"], cfg)
    prompts = prompt_learner_forward(params["prompt_learner"], cfg)
    text_features = text_encoder(prompts, params["tokenized_prompts"],
                                 params["text"], cfg)
    # normalization + exp(logit_scale) * img @ text.T fused in one Pallas kernel
    return clip_logits(image_features, text_features, params["logit_scale"])


# ----------------------------------------------------------------------------
# Deterministic synthetic parameters (shapes implied by the module's __init__).
# Matmul weights / embeddings are bf16 (f32 accumulation inside kernels);
# LayerNorm params and biases stay f32.
# ----------------------------------------------------------------------------
def init_params(key, cfg):
    keys = iter(jax.random.split(key, 256))
    wdt = jnp.bfloat16

    def nrm(shape, std=0.02, dtype=wdt):
        return (std * jax.random.normal(next(keys), shape)).astype(dtype)

    def block_params(width):
        return {
            "ln1_g": jnp.ones((width,), jnp.float32), "ln1_b": jnp.zeros((width,), jnp.float32),
            "in_w": nrm((width, 3 * width)), "in_b": jnp.zeros((3 * width,), jnp.float32),
            "out_w": nrm((width, width)), "out_b": jnp.zeros((width,), jnp.float32),
            "ln2_g": jnp.ones((width,), jnp.float32), "ln2_b": jnp.zeros((width,), jnp.float32),
            "fc_w": nrm((width, 4 * width)), "fc_b": jnp.zeros((4 * width,), jnp.float32),
            "cproj_w": nrm((4 * width, width)), "cproj_b": jnp.zeros((width,), jnp.float32),
        }

    vw, tw = cfg["vis_width"], cfg["ctx_dim"]
    ps, C = cfg["patch_size"], cfg["img_channels"]
    n_patch = (cfg["img_size"] // ps) ** 2

    visual = {
        "patch_w": nrm((C * ps * ps, vw)),                        # stride=patch conv as matmul
        "class_emb": nrm((vw,)),
        "pos_emb": nrm((n_patch + 1, vw)),
        "ln_pre_g": jnp.ones((vw,), jnp.float32), "ln_pre_b": jnp.zeros((vw,), jnp.float32),
        "blocks": [block_params(vw) for _ in range(cfg["vis_layers"])],
        "ln_post_g": jnp.ones((vw,), jnp.float32), "ln_post_b": jnp.zeros((vw,), jnp.float32),
        "proj": nrm((vw, cfg["embed_dim"])),
    }

    text = {
        "pos_emb": nrm((cfg["seq_len"], tw)),
        "blocks": [block_params(tw) for _ in range(cfg["txt_layers"])],
        "ln_final_g": jnp.ones((tw,), jnp.float32), "ln_final_b": jnp.zeros((tw,), jnp.float32),
        "text_projection": nrm((tw, cfg["embed_dim"])),
    }

    n_cls, n_ctx, S = cfg["n_cls"], cfg["n_ctx"], cfg["seq_len"]
    prompt_learner = {
        "ctx": nrm((n_ctx, tw)),                                  # generic context (CSC=False)
        "token_prefix": nrm((n_cls, 1, tw)),                      # SOS embedding buffer
        "token_suffix": nrm((n_cls, S - 1 - n_ctx, tw)),          # class + EOS embedding buffer
    }

    # Synthetic tokenized prompts: EOT token (largest id) sits at 1 + n_ctx + name_len.
    name_lens = [1, 2, 3][:n_cls]
    tok = jnp.full((n_cls, S), 5, jnp.int32)
    tok = tok.at[:, 0].set(49406)
    for i, nl in enumerate(name_lens):
        tok = tok.at[i, 1 + n_ctx + nl].set(49407)

    return {
        "visual": visual,
        "text": text,
        "prompt_learner": prompt_learner,
        "tokenized_prompts": tok,
        "logit_scale": jnp.asarray(math.log(1.0 / 0.07), jnp.float32),
    }


# TODO(synk): the CLIP BPE tokenizer / clip.tokenize (string -> token ids) is host-side
# string processing with no Pallas equivalent; token ids & embedding buffers are
# synthesized deterministically above instead.

if __name__ == "__main__":
    cfg = {
        "img_size": 32, "img_channels": 3, "patch_size": 8,
        "vis_width": 64, "vis_heads": 4, "vis_layers": 2,
        "ctx_dim": 64, "txt_heads": 4, "txt_layers": 2,
        "seq_len": 16, "embed_dim": 64,
        "n_cls": 3, "n_ctx": 4,
    }

    key = jax.random.PRNGKey(0)
    k_param, k_img = jax.random.split(key)
    params = init_params(k_param, cfg)
    image = jax.random.normal(
        k_img, (2, cfg["img_channels"], cfg["img_size"], cfg["img_size"]), jnp.float32)

    logits = jax.jit(functools.partial(custom_clip_forward, cfg=cfg))(image, params)
    logits = jax.block_until_ready(logits)
    assert logits.shape == (2, cfg["n_cls"]), logits.shape
    assert bool(jnp.all(jnp.isfinite(logits)))
    print("KERNEL_OK")
</pallas_src>

<mosaic_0001>
module attributes {stable_mosaic.version = 11 : i64} {
  func.func @_fused_linear_kernel(%arg0: i32, %arg1: memref<32x192xbf16, #tpu.memory_space<vmem>>, %arg2: memref<192x64xbf16, #tpu.memory_space<vmem>>, %arg3: memref<32x64xbf16, #tpu.memory_space<vmem>>) attributes {dimension_semantics = [#tpu.dimension_semantics<parallel>], iteration_bounds = array<i64: 1>, scalar_prefetch = 0 : i64, scratch_operands = 0 : i64, tpu.core_type = #tpu.core_type<tc>, window_params = [{transform_indices = @transform_0, window_bounds = array<i64: 32, 192>}, {pipeline_mode = #tpu.pipeline_mode<synchronous>, transform_indices = @transform_1, window_bounds = array<i64: 192, 64>}, {transform_indices = @transform_2, window_bounds = array<i64: 32, 64>}]} {
    %c0 = arith.constant 0 : index
    %c0_0 = arith.constant 0 : index
    %0 = vector.load %arg1[%c0, %c0_0] : memref<32x192xbf16, #tpu.memory_space<vmem>>, vector<32x192xbf16>
    %c0_1 = arith.constant 0 : index
    %c0_2 = arith.constant 0 : index
    %1 = vector.load %arg2[%c0_1, %c0_2] : memref<192x64xbf16, #tpu.memory_space<vmem>>, vector<192x64xbf16>
    %cst = arith.constant dense<0.000000e+00> : vector<32x64xf32>
    %2 = tpu.matmul %0, %1, %cst {dimension_numbers = #tpu.dot_dimension_numbers<[1], [0], [0], [1], [0, 0, 1, 1], [], []>} : vector<32x192xbf16>, vector<192x64xbf16>, vector<32x64xf32> -> vector<32x64xf32>
    %3 = arith.truncf %2 : vector<32x64xf32> to vector<32x64xbf16>
    %c0_3 = arith.constant 0 : index
    %c0_4 = arith.constant 0 : index
    %4 = vector.load %arg3[%c0_3, %c0_4] : memref<32x64xbf16, #tpu.memory_space<vmem>>, vector<32x64xbf16>
    tpu.vector_store %arg3[%c0_3, %c0_4], %3 {strides = array<i32>} : memref<32x64xbf16, #tpu.memory_space<vmem>>, vector<32x64xbf16>,
    return
  }
  func.func @transform_0(%arg0: i32) -> (i32, i32) {
    %c0_i32 = arith.constant 0 : i32
    %c0_i32_0 = arith.constant 0 : i32
    return %arg0, %c0_i32 : i32, i32
  }
  func.func @transform_1(%arg0: i32) -> (i32, i32) {
    %c0_i32 = arith.constant 0 : i32
    %c0_i32_0 = arith.constant 0 : i32
    %c0_i32_1 = arith.constant 0 : i32
    return %c0_i32, %c0_i32_0 : i32, i32
  }
  func.func @transform_2(%arg0: i32) -> (i32, i32) {
    %c0_i32 = arith.constant 0 : i32
    %c0_i32_0 = arith.constant 0 : i32
    return %arg0, %c0_i32 : i32, i32
  }
}

module attributes {stable_mosaic.version = 11 : i64} {
  func.func @_fused_linear_kernel(%arg0: i32, %arg1: memref<40x64xbf16, #tpu.memory_space<vmem>>, %arg2: memref<1x64xf32, #tpu.memory_space<vmem>>, %arg3: memref<1x64xf32, #tpu.memory_space<vmem>>, %arg4: memref<64x192xbf16, #tpu.memory_space<vmem>>, %arg5: memref<1x192xf32, #tpu.memory_space<vmem>>, %arg6: memref<40x192xbf16, #tpu.memory_space<vmem>>) attributes {dimension_semantics = [#tpu.dimension_semantics<parallel>], iteration_bounds = array<i64: 1>, scalar_prefetch = 0 : i64, scratch_operands = 0 : i64, tpu.core_type = #tpu.core_type<tc>, window_params = [{transform_indices = @transform_0, window_bounds = array<i64: 40, 64>}, {pipeline_mode = #tpu.pipeline_mode<synchronous>, transform_indices = @transform_1, window_bounds = array<i64: 1, 64>}, {pipeline_mode = #tpu.pipeline_mode<synchronous>, transform_indices = @transform_2, window_bounds = array<i64: 1, 64>}, {pipeline_mode = #tpu.pipeline_mode<synchronous>, transform_indices = @transform_3, window_bounds = array<i64: 64, 192>}, {pipeline_mode = #tpu.pipeline_mode<synchronous>, transform_indices = @transform_4, window_bounds = array<i64: 1, 192>}, {transform_indices = @transform_5, window_bounds = array<i64: 40, 192>}]} {
    %c0 = arith.constant 0 : index
    %c0_0 = arith.constant 0 : index
    %0 = vector.load %arg1[%c0, %c0_0] : memref<40x64xbf16, #tpu.memory_space<vmem>>, vector<40x64xbf16>
    %1 = arith.extf %0 : vector<40x64xbf16> to vector<40x64xf32>
    %cst = arith.constant dense<0.000000e+00> : vector<40xf32>
    %2 = vector.multi_reduction <add>, %1, %cst [1] : vector<40x64xf32> to vector<40xf32>
    %3 = vector.shape_cast %2 : vector<40xf32> to vector<40x1xf32>
    %cst_1 = arith.constant 6.400000e+01 : f32
    %4 = vector.broadcast %cst_1 : f32 to vector<40x1xf32>
    %5 = arith.divf %3, %4 : vector<40x1xf32>
    %6 = vector.broadcast %5 : vector<40x1xf32> to vector<40x64xf32>
    %7 = arith.subf %1, %6 : vector<40x64xf32>
    %8 = arith.mulf %7, %7 : vector<40x64xf32>
    %cst_2 = arith.constant dense<0.000000e+00> : vector<40xf32>
    %9 = vector.multi_reduction <add>, %8, %cst_2 [1] : vector<40x64xf32> to vector<40xf32>
    %10 = vector.shape_cast %9 : vector<40xf32> to vector<40x1xf32>
    %cst_3 = arith.constant 6.400000e+01 : f32
    %11 = vector.broadcast %cst_3 : f32 to vector<40x1xf32>
    %12 = arith.divf %10, %11 : vector<40x1xf32>
    %13 = vector.broadcast %5 : vector<40x1xf32> to vector<40x64xf32>
    %14 = arith.subf %1, %13 : vector<40x64xf32>
    %cst_4 = arith.constant 9.99999974E-6 : f32
    %15 = vector.broadcast %cst_4 : f32 to vector<40x1xf32>
    %16 = arith.addf %12, %15 : vector<40x1xf32>
    %17 = math.rsqrt %16 : vector<40x1xf32>
    %18 = vector.broadcast %17 : vector<40x1xf32> to vector<40x64xf32>
    %19 = arith.mulf %14, %18 : vector<40x64xf32>
    %c0_5 = arith.constant 0 : index
    %c0_6 = arith.constant 0 : index
    %20 = vector.load %arg2[%c0_5, %c0_6] : memref<1x64xf32, #tpu.memory_space<vmem>>, vector<1x64xf32>
    %21 = vector.broadcast %20 : vector<1x64xf32> to vector<40x64xf32>
    %22 = arith.mulf %19, %21 : vector<40x64xf32>
    %c0_7 = arith.constant 0 : index
    %c0_8 = arith.constant 0 : index
    %23 = vector.load %arg3[%c0_7, %c0_8] : memref<1x64xf32, #tpu.memory_space<vmem>>, vector<1x64xf32>
    %24 = vector.broadcast %23 : vector<1x64xf32> to vector<40x64xf32>
    %25 = arith.addf %22, %24 : vector<40x64xf32>
    %26 = arith.truncf %25 : vector<40x64xf32> to vector<40x64xbf16>
    %c0_9 = arith.constant 0 : index
    %c0_10 = arith.constant 0 : index
    %27 = vector.load %arg4[%c0_9, %c0_10] : memref<64x192xbf16, #tpu.memory_space<vmem>>, vector<64x192xbf16>
    %cst_11 = arith.constant dense<0.000000e+00> : vector<40x192xf32>
    %28 = tpu.matmul %26, %27, %cst_11 {dimension_numbers = #tpu.dot_dimension_numbers<[1], [0], [0], [1], [0, 0, 1, 1], [], []>} : vector<40x64xbf16>, vector<64x192xbf16>, vector<40x192xf32> -> vector<40x192xf32>
    %c0_12 = arith.constant 0 : index
    %c0_13 = arith.constant 0 : index
    %29 = vector.load %arg5[%c0_12, %c0_13] : memref<1x192xf32, #tpu.memory_space<vmem>>, vector<1x192xf32>
    %30 = vector.broadcast %29 : vector<1x192xf32> to vector<40x192xf32>
    %31 = arith.addf %28, %30 : vector<40x192xf32>
    %32 = arith.truncf %31 : vector<40x192xf32> to vector<40x192xbf16>
    %c0_14 = arith.constant 0 : index
    %c0_15 = arith.constant 0 : index
    %33 = vector.load %arg6[%c0_14, %c0_15] : memref<40x192xbf16, #tpu.memory_space<vmem>>, vector<40x192xbf16>
    tpu.vector_store %arg6[%c0_14, %c0_15], %32 {strides = array<i32>} : memref<40x192xbf16, #tpu.memory_space<vmem>>, vector<40x192xbf16>,
    return
  }
  func.func @transform_0(%arg0: i32) -> (i32, i32) {
    %c0_i32 = arith.constant 0 : i32
    %c0_i32_0 = arith.constant 0 : i32
    return %arg0, %c0_i32 : i32, i32
  }
  func.func @transform_1(%arg0: i32) -> (i32, i32) {
    %c0_i32 = arith.constant 0 : i32
    %c0_i32_0 = arith.constant 0 : i32
    %c0_i32_1 = arith.constant 0 : i32
    return %c0_i32, %c0_i32_0 : i32, i32
  }
  func.func @transform_2(%arg0: i32) -> (i32, i32) {
    %c0_i32 = arith.constant 0 : i32
    %c0_i32_0 = arith.constant 0 : i32
    %c0_i32_1 = arith.constant 0 : i32
    return %c0_i32, %c0_i32_0 : i32, i32
  }
  func.func @transform_3(%arg0: i32) -> (i32, i32) {
    %c0_i32 = arith.constant 0 : i32
    %c0_i32_0 = arith.constant 0 : i32
    %c0_i32_1 = arith.constant 0 : i32
    return %c0_i32, %c0_i32_0 : i32, i32
  }
  func.func @transform_4(%arg0: i32) -> (i32, i32) {
    %c0_i32 = arith.constant 0 : i32
    %c0_i32_0 = arith.constant 0 : i32
    %c0_i32_1 = arith.constant 0 : i32
    return %c0_i32, %c0_i32_0 : i32, i32
  }
  func.func @transform_5(%arg0: i32) -> (i32, i32) {
    %c0_i32 = arith.constant 0 : i32
    %c0_i32_0 = arith.constant 0 : i32
    return %arg0, %c0_i32 : i32, i32
  }
}

module attributes {stable_mosaic.version = 11 : i64} {
  func.func @_pos_ln_kernel(%arg0: i32, %arg1: memref<1x17x64xbf16, #tpu.memory_space<vmem>>, %arg2: memref<17x64xbf16, #tpu.memory_space<vmem>>, %arg3: memref<1x64xf32, #tpu.memory_space<vmem>>, %arg4: memref<1x64xf32, #tpu.memory_space<vmem>>, %arg5: memref<1x17x64xbf16, #tpu.memory_space<vmem>>) attributes {dimension_semantics = [#tpu.dimension_semantics<parallel>], iteration_bounds = array<i64: 2>, scalar_prefetch = 0 : i64, scratch_operands = 0 : i64, tpu.core_type = #tpu.core_type<tc>, window_params = [{transform_indices = @transform_0, window_bounds = array<i64: 1, 17, 64>}, {pipeline_mode = #tpu.pipeline_mode<synchronous>, transform_indices = @transform_1, window_bounds = array<i64: 17, 64>}, {pipeline_mode = #tpu.pipeline_mode<synchronous>, transform_indices = @transform_2, window_bounds = array<i64: 1, 64>}, {pipeline_mode = #tpu.pipeline_mode<synchronous>, transform_indices = @transform_3, window_bounds = array<i64: 1, 64>}, {transform_indices = @transform_4, window_bounds = array<i64: 1, 17, 64>}]} {
    %c0 = arith.constant 0 : index
    %c0_0 = arith.constant 0 : index
    %c0_1 = arith.constant 0 : index
    %0 = vector.load %arg1[%c0, %c0_0, %c0_1] : memref<1x17x64xbf16, #tpu.memory_space<vmem>>, vector<1x17x64xbf16>
    %1 = vector.shape_cast %0 : vector<1x17x64xbf16> to vector<17x64xbf16>
    %2 = arith.extf %1 : vector<17x64xbf16> to vector<17x64xf32>
    %c0_2 = arith.constant 0 : index
    %c0_3 = arith.constant 0 : index
    %3 = vector.load %arg2[%c0_2, %c0_3] : memref<17x64xbf16, #tpu.memory_space<vmem>>, vector<17x64xbf16>
    %4 = arith.extf %3 : vector<17x64xbf16> to vector<17x64xf32>
    %5 = arith.addf %2, %4 : vector<17x64xf32>
    %cst = arith.constant dense<0.000000e+00> : vector<17xf32>
    %6 = vector.multi_reduction <add>, %5, %cst [1] : vector<17x64xf32> to vector<17xf32>
    %7 = vector.shape_cast %6 : vector<17xf32> to vector<17x1xf32>
    %cst_4 = arith.constant 6.400000e+01 : f32
    %8 = vector.broadcast %cst_4 : f32 to vector<17x1xf32>
    %9 = arith.divf %7, %8 : vector<17x1xf32>
    %10 = vector.broadcast %9 : vector<17x1xf32> to vector<17x64xf32>
    %11 = arith.subf %5, %10 : vector<17x64xf32>
    %12 = arith.mulf %11, %11 : vector<17x64xf32>
    %cst_5 = arith.constant dense<0.000000e+00> : vector<17xf32>
    %13 = vector.multi_reduction <add>, %12, %cst_5 [1] : vector<17x64xf32> to vector<17xf32>
    %14 = vector.shape_cast %13 : vector<17xf32> to vector<17x1xf32>
    %cst_6 = arith.constant 6.400000e+01 : f32
    %15 = vector.broadcast %cst_6 : f32 to vector<17x1xf32>
    %16 = arith.divf %14, %15 : vector<17x1xf32>
    %17 = vector.broadcast %9 : vector<17x1xf32> to vector<17x64xf32>
    %18 = arith.subf %5, %17 : vector<17x64xf32>
    %cst_7 = arith.constant 9.99999974E-6 : f32
    %19 = vector.broadcast %cst_7 : f32 to vector<17x1xf32>
    %20 = arith.addf %16, %19 : vector<17x1xf32>
    %21 = math.rsqrt %20 : vector<17x1xf32>
    %22 = vector.broadcast %21 : vector<17x1xf32> to vector<17x64xf32>
    %23 = arith.mulf %18, %22 : vector<17x64xf32>
    %c0_8 = arith.constant 0 : index
    %c0_9 = arith.constant 0 : index
    %24 = vector.load %arg3[%c0_8, %c0_9] : memref<1x64xf32, #tpu.memory_space<vmem>>, vector<1x64xf32>
    %25 = vector.broadcast %24 : vector<1x64xf32> to vector<17x64xf32>
    %26 = arith.mulf %23, %25 : vector<17x64xf32>
    %c0_10 = arith.constant 0 : index
    %c0_11 = arith.constant 0 : index
    %27 = vector.load %arg4[%c0_10, %c0_11] : memref<1x64xf32, #tpu.memory_space<vmem>>, vector<1x64xf32>
    %28 = vector.broadcast %27 : vector<1x64xf32> to vector<17x64xf32>
    %29 = arith.addf %26, %28 : vector<17x64xf32>
    %30 = arith.truncf %29 : vector<17x64xf32> to vector<17x64xbf16>
    %c0_12 = arith.constant 0 : index
    %c0_13 = arith.constant 0 : index
    %c0_14 = arith.constant 0 : index
    %31 = vector.load %arg5[%c0_12, %c0_13, %c0_14] : memref<1x17x64xbf16, #tpu.memory_space<vmem>>, vector<1x17x64xbf16>
    %32 = vector.shape_cast %31 : vector<1x17x64xbf16> to vector<17x64xbf16>
    %33 = vector.shape_cast %30 : vector<17x64xbf16> to vector<1x17x64xbf16>
    tpu.vector_store %arg5[%c0_12, %c0_13, %c0_14], %33 {strides = array<i32>} : memref<1x17x64xbf16, #tpu.memory_space<vmem>>, vector<1x17x64xbf16>,
    return
  }
  func.func @transform_0(%arg0: i32) -> (i32, i32, i32) {
    %c0_i32 = arith.constant 0 : i32
    %c0_i32_0 = arith.constant 0 : i32
    %c0_i32_1 = arith.constant 0 : i32
    return %arg0, %c0_i32, %c0_i32_0 : i32, i32, i32
  }
  func.func @transform_1(%arg0: i32) -> (i32, i32) {
    %c0_i32 = arith.constant 0 : i32
    %c0_i32_0 = arith.constant 0 : i32
    %c0_i32_1 = arith.constant 0 : i32
    return %c0_i32, %c0_i32_0 : i32, i32
  }
  func.func @transform_2(%arg0: i32) -> (i32, i32) {
    %c0_i32 = arith.constant 0 : i32
    %c0_i32_0 = arith.constant 0 : i32
    %c0_i32_1 = arith.constant 0 : i32
    return %c0_i32, %c0_i32_0 : i32, i32
  }
  func.func @transform_3(%arg0: i32) -> (i32, i32) {
    %c0_i32 = arith.constant 0 : i32
    %c0_i32_0 = arith.constant 0 : i32
    %c0_i32_1 = arith.constant 0 : i32
    return %c0_i32, %c0_i32_0 : i32, i32
  }
  func.func @transform_4(%arg0: i32) -> (i32, i32, i32) {
    %c0_i32 = arith.constant 0 : i32
    %c0_i32_0 = arith.constant 0 : i32
    %c0_i32_1 = arith.constant 0 : i32
    return %arg0, %c0_i32, %c0_i32_0 : i32, i32, i32
  }
}

module attributes {stable_mosaic.version = 11 : i64} {
  func.func @_attention_kernel(%arg0: i32, %arg1: memref<1x17x192xbf16, #tpu.memory_space<vmem>>, %arg2: memref<1x17x64xbf16, #tpu.memory_space<vmem>>) attributes {dimension_semantics = [#tpu.dimension_semantics<parallel>], iteration_bounds = array<i64: 2>, scalar_prefetch = 0 : i64, scratch_operands = 0 : i64, tpu.core_type = #tpu.core_type<tc>, window_params = [{transform_indices = @transform_0, window_bounds = array<i64: 1, 17, 192>}, {transform_indices = @transform_1, window_bounds = array<i64: 1, 17, 64>}]} {
    %c0 = arith.constant 0 : index
    %c0_0 = arith.constant 0 : index
    %c0_1 = arith.constant 0 : index
    %0 = vector.load %arg1[%c0, %c0_0, %c0_1] : memref<1x17x192xbf16, #tpu.memory_space<vmem>>, vector<1x17x64xbf16>
    %1 = vector.shape_cast %0 : vector<1x17x64xbf16> to vector<17x64xbf16>
    %c0_2 = arith.constant 0 : index
    %c0_3 = arith.constant 0 : index
    %c64 = arith.constant 64 : index
    %2 = vector.load %arg1[%c0_2, %c0_3, %c64] : memref<1x17x192xbf16, #tpu.memory_space<vmem>>, vector<1x17x64xbf16>
    %3 = vector.shape_cast %2 : vector<1x17x64xbf16> to vector<17x64xbf16>
    %c0_4 = arith.constant 0 : index
    %c0_5 = arith.constant 0 : index
    %c128 = arith.constant 128 : index
    %4 = vector.load %arg1[%c0_4, %c0_5, %c128] : memref<1x17x192xbf16, #tpu.memory_space<vmem>>, vector<1x17x64xbf16>
    %5 = vector.shape_cast %4 : vector<1x17x64xbf16> to vector<17x64xbf16>
    %6 = vector.extract_strided_slice %1 {offsets = [0, 0], sizes = [17, 16], strides = [1, 1]} : vector<17x64xbf16> to vector<17x16xbf16>
    %7 = vector.extract_strided_slice %3 {offsets = [0, 0], sizes = [17, 16], strides = [1, 1]} : vector<17x64xbf16> to vector<17x16xbf16>
    %8 = vector.extract_strided_slice %5 {offsets = [0, 0], sizes = [17, 16], strides = [1, 1]} : vector<17x64xbf16> to vector<17x16xbf16>
    %cst = arith.constant dense<0.000000e+00> : vector<17x17xf32>
    %9 = tpu.matmul %6, %7, %cst {dimension_numbers = #tpu.dot_dimension_numbers<[1], [1], [0], [0], [0, 0, 1, 0], [], []>} : vector<17x16xbf16>, vector<17x16xbf16>, vector<17x17xf32> -> vector<17x17xf32>
    %cst_6 = arith.constant 2.500000e-01 : f32
    %10 = vector.broadcast %cst_6 : f32 to vector<17x17xf32>
    %11 = arith.mulf %9, %10 : vector<17x17xf32>
    %cst_7 = arith.constant dense<0xFF800000> : vector<17xf32>
    %12 = vector.multi_reduction <maximumf>, %11, %cst_7 [1] : vector<17x17xf32> to vector<17xf32>
    %13 = vector.shape_cast %12 : vector<17xf32> to vector<17x1xf32>
    %14 = vector.broadcast %13 : vector<17x1xf32> to vector<17x17xf32>
    %15 = arith.subf %11, %14 : vector<17x17xf32>
    %16 = math.exp %15 : vector<17x17xf32>
    %cst_8 = arith.constant dense<0.000000e+00> : vector<17xf32>
    %17 = vector.multi_reduction <add>, %16, %cst_8 [1] : vector<17x17xf32> to vector<17xf32>
    %18 = vector.shape_cast %17 : vector<17xf32> to vector<17x1xf32>
    %19 = tpu.reciprocal %18 {approx = true} : vector<17x1xf32> -> vector<17x1xf32>
    %20 = vector.broadcast %19 : vector<17x1xf32> to vector<17x17xf32>
    %21 = arith.mulf %16, %20 : vector<17x17xf32>
    %22 = arith.truncf %21 : vector<17x17xf32> to vector<17x17xbf16>
    %cst_9 = arith.constant dense<0.000000e+00> : vector<17x16xf32>
    %23 = tpu.matmul %22, %8, %cst_9 {dimension_numbers = #tpu.dot_dimension_numbers<[1], [0], [0], [1], [0, 0, 1, 1], [], []>} : vector<17x17xbf16>, vector<17x16xbf16>, vector<17x16xf32> -> vector<17x16xf32>
    %24 = arith.truncf %23 : vector<17x16xf32> to vector<17x16xbf16>
    %c0_10 = arith.constant 0 : index
    %c0_11 = arith.constant 0 : index
    %c0_12 = arith.constant 0 : index
    %25 = vector.load %arg2[%c0_10, %c0_11, %c0_12] : memref<1x17x64xbf16, #tpu.memory_space<vmem>>, vector<1x17x16xbf16>
    %26 = vector.shape_cast %25 : vector<1x17x16xbf16> to vector<17x16xbf16>
    %27 = vector.shape_cast %24 : vector<17x16xbf16> to vector<1x17x16xbf16>
    tpu.vector_store %arg2[%c0_10, %c0_11, %c0_12], %27 {strides = array<i32>} : memref<1x17x64xbf16, #tpu.memory_space<vmem>>, vector<1x17x16xbf16>,
    %28 = vector.extract_strided_slice %1 {offsets = [0, 16], sizes = [17, 16], strides = [1, 1]} : vector<17x64xbf16> to vector<17x16xbf16>
    %29 = vector.extract_strided_slice %3 {offsets = [0, 16], sizes = [17, 16], strides = [1, 1]} : vector<17x64xbf16> to vector<17x16xbf16>
    %30 = vector.extract_strided_slice %5 {offsets = [0, 16], sizes = [17, 16], strides = [1, 1]} : vector<17x64xbf16> to vector<17x16xbf16>
    %cst_13 = arith.constant dense<0.000000e+00> : vector<17x17xf32>
    %31 = tpu.matmul %28, %29, %cst_13 {dimension_numbers = #tpu.dot_dimension_numbers<[1], [1], [0], [0], [0, 0, 1, 0], [], []>} : vector<17x16xbf16>, vector<17x16xbf16>, vector<17x17xf32> -> vector<17x17xf32>
    %cst_14 = arith.constant 2.500000e-01 : f32
    %32 = vector.broadcast %cst_14 : f32 to vector<17x17xf32>
    %33 = arith.mulf %31, %32 : vector<17x17xf32>
    %cst_15 = arith.constant dense<0xFF800000> : vector<17xf32>
    %34 = vector.multi_reduction <maximumf>, %33, %cst_15 [1] : vector<17x17xf32> to vector<17xf32>
    %35 = vector.shape_cast %34 : vector<17xf32> to vector<17x1xf32>
    %36 = vector.broadcast %35 : vector<17x1xf32> to vector<17x17xf32>
    %37 = arith.subf %33, %36 : vector<17x17xf32>
    %38 = math.exp %37 : vector<17x17xf32>
    %cst_16 = arith.constant dense<0.000000e+00> : vector<17xf32>
    %39 = vector.multi_reduction <add>, %38, %cst_16 [1] : vector<17x17xf32> to vector<17xf32>
    %40 = vector.shape_cast %39 : vector<17xf32> to vector<17x1xf32>
    %41 = tpu.reciprocal %40 {approx = true} : vector<17x1xf32> -> vector<17x1xf32>
    %42 = vector.broadcast %41 : vector<17x1xf32> to vector<17x17xf32>
    %43 = arith.mulf %38, %42 : vector<17x17xf32>
    %44 = arith.truncf %43 : vector<17x17xf32> to vector<17x17xbf16>
    %cst_17 = arith.constant dense<0.000000e+00> : vector<17x16xf32>
    %45 = tpu.matmul %44, %30, %cst_17 {dimension_numbers = #tpu.dot_dimension_numbers<[1], [0], [0], [1], [0, 0, 1, 1], [], []>} : vector<17x17xbf16>, vector<17x16xbf16>, vector<17x16xf32> -> vector<17x16xf32>
    %46 = arith.truncf %45 : vector<17x16xf32> to vector<17x16xbf16>
    %c0_18 = arith.constant 0 : index
    %c0_19 = arith.constant 0 : index
    %c16 = arith.constant 16 : index
    %47 = vector.load %arg2[%c0_18, %c0_19, %c16] : memref<1x17x64xbf16, #tpu.memory_space<vmem>>, vector<1x17x16xbf16>
    %48 = vector.shape_cast %47 : vector<1x17x16xbf16> to vector<17x16xbf16>
    %49 = vector.shape_cast %46 : vector<17x16xbf16> to vector<1x17x16xbf16>
    tpu.vector_store %arg2[%c0_18, %c0_19, %c16], %49 {strides = array<i32>} : memref<1x17x64xbf16, #tpu.memory_space<vmem>>, vector<1x17x16xbf16>,
    %50 = vector.extract_strided_slice %1 {offsets = [0, 32], sizes = [17, 16], strides = [1, 1]} : vector<17x64xbf16> to vector<17x16xbf16>
    %51 = vector.extract_strided_slice %3 {offsets = [0, 32], sizes = [17, 16], strides = [1, 1]} : vector<17x64xbf16> to vector<17x16xbf16>
    %52 = vector.extract_strided_slice %5 {offsets = [0, 32], sizes = [17, 16], strides = [1, 1]} : vector<17x64xbf16> to vector<17x16xbf16>
    %cst_20 = arith.constant dense<0.000000e+00> : vector<17x17xf32>
    %53 = tpu.matmul %50, %51, %cst_20 {dimension_numbers = #tpu.dot_dimension_numbers<[1], [1], [0], [0], [0, 0, 1, 0], [], []>} : vector<17x16xbf16>, vector<17x16xbf16>, vector<17x17xf32> -> vector<17x17xf32>
    %cst_21 = arith.constant 2.500000e-01 : f32
    %54 = vector.broadcast %cst_21 : f32 to vector<17x17xf32>
    %55 = arith.mulf %53, %54 : vector<17x17xf32>
    %cst_22 = arith.constant dense<0xFF800000> : vector<17xf32>
    %56 = vector.multi_reduction <maximumf>, %55, %cst_22 [1] : vector<17x17xf32> to vector<17xf32>
    %57 = vector.shape_cast %56 : vector<17xf32> to vector<17x1xf32>
    %58 = vector.broadcast %57 : vector<17x1xf32> to vector<17x17xf32>
    %59 = arith.subf %55, %58 : vector<17x17xf32>
    %60 = math.exp %59 : vector<17x17xf32>
    %cst_23 = arith.constant dense<0.000000e+00> : vector<17xf32>
    %61 = vector.multi_reduction <add>, %60, %cst_23 [1] : vector<17x17xf32> to vector<17xf32>
    %62 = vector.shape_cast %61 : vector<17xf32> to vector<17x1xf32>
    %63 = tpu.reciprocal %62 {approx = true} : vector<17x1xf32> -> vector<17x1xf32>
    %64 = vector.broadcast %63 : vector<17x1xf32> to vector<17x17xf32>
    %65 = arith.mulf %60, %64 : vector<17x17xf32>
    %66 = arith.truncf %65 : vector<17x17xf32> to vector<17x17xbf16>
    %cst_24 = arith.constant dense<0.000000e+00> : vector<17x16xf32>
    %67 = tpu.matmul %66, %52, %cst_24 {dimension_numbers = #tpu.dot_dimension_numbers<[1], [0], [0], [1], [0, 0, 1, 1], [], []>} : vector<17x17xbf16>, vector<17x16xbf16>, vector<17x16xf32> -> vector<17x16xf32>
    %68 = arith.truncf %67 : vector<17x16xf32> to vector<17x16xbf16>
    %c0_25 = arith.constant 0 : index
    %c0_26 = arith.constant 0 : index
    %c32 = arith.constant 32 : index
    %69 = vector.load %arg2[%c0_25, %c0_26, %c32] : memref<1x17x64xbf16, #tpu.memory_space<vmem>>, vector<1x17x16xbf16>
    %70 = vector.shape_cast %69 : vector<1x17x16xbf16> to vector<17x16xbf16>
    %71 = vector.shape_cast %68 : vector<17x16xbf16> to vector<1x17x16xbf16>
    tpu.vector_store %arg2[%c0_25, %c0_26, %c32], %71 {strides = array<i32>} : memref<1x17x64xbf16, #tpu.memory_space<vmem>>, vector<1x17x16xbf16>,
    %72 = vector.extract_strided_slice %1 {offsets = [0, 48], sizes = [17, 16], strides = [1, 1]} : vector<17x64xbf16> to vector<17x16xbf16>
    %73 = vector.extract_strided_slice %3 {offsets = [0, 48], sizes = [17, 16], strides = [1, 1]} : vector<17x64xbf16> to vector<17x16xbf16>
    %74 = vector.extract_strided_slice %5 {offsets = [0, 48], sizes = [17, 16], strides = [1, 1]} : vector<17x64xbf16> to vector<17x16xbf16>
    %cst_27 = arith.constant dense<0.000000e+00> : vector<17x17xf32>
    %75 = tpu.matmul %72, %73, %cst_27 {dimension_numbers = #tpu.dot_dimension_numbers<[1], [1], [0], [0], [0, 0, 1, 0], [], []>} : vector<17x16xbf16>, vector<17x16xbf16>, vector<17x17xf32> -> vector<17x17xf32>
    %cst_28 = arith.constant 2.500000e-01 : f32
    %76 = vector.broadcast %cst_28 : f32 to vector<17x17xf32>
    %77 = arith.mulf %75, %76 : vector<17x17xf32>
    %cst_29 = arith.constant dense<0xFF800000> : vector<17xf32>
    %78 = vector.multi_reduction <maximumf>, %77, %cst_29 [1] : vector<17x17xf32> to vector<17xf32>
    %79 = vector.shape_cast %78 : vector<17xf32> to vector<17x1xf32>
    %80 = vector.broadcast %79 : vector<17x1xf32> to vector<17x17xf32>
    %81 = arith.subf %77, %80 : vector<17x17xf32>
    %82 = math.exp %81 : vector<17x17xf32>
    %cst_30 = arith.constant dense<0.000000e+00> : vector<17xf32>
    %83 = vector.multi_reduction <add>, %82, %cst_30 [1] : vector<17x17xf32> to vector<17xf32>
    %84 = vector.shape_cast %83 : vector<17xf32> to vector<17x1xf32>
    %85 = tpu.reciprocal %84 {approx = true} : vector<17x1xf32> -> vector<17x1xf32>
    %86 = vector.broadcast %85 : vector<17x1xf32> to vector<17x17xf32>
    %87 = arith.mulf %82, %86 : vector<17x17xf32>
    %88 = arith.truncf %87 : vector<17x17xf32> to vector<17x17xbf16>
    %cst_31 = arith.constant dense<0.000000e+00> : vector<17x16xf32>
    %89 = tpu.matmul %88, %74, %cst_31 {dimension_numbers = #tpu.dot_dimension_numbers<[1], [0], [0], [1], [0, 0, 1, 1], [], []>} : vector<17x17xbf16>, vector<17x16xbf16>, vector<17x16xf32> -> vector<17x16xf32>
    %90 = arith.truncf %89 : vector<17x16xf32> to vector<17x16xbf16>
    %c0_32 = arith.constant 0 : index
    %c0_33 = arith.constant 0 : index
    %c48 = arith.constant 48 : index
    %91 = vector.load %arg2[%c0_32, %c0_33, %c48] : memref<1x17x64xbf16, #tpu.memory_space<vmem>>, vector<1x17x16xbf16>
    %92 = vector.shape_cast %91 : vector<1x17x16xbf16> to vector<17x16xbf16>
    %93 = vector.shape_cast %90 : vector<17x16xbf16> to vector<1x17x16xbf16>
    tpu.vector_store %arg2[%c0_32, %c0_33, %c48], %93 {strides = array<i32>} : memref<1x17x64xbf16, #tpu.memory_space<vmem>>, vector<1x17x16xbf16>,
    return
  }
  func.func @transform_0(%arg0: i32) -> (i32, i32, i32) {
    %c0_i32 = arith.constant 0 : i32
    %c0_i32_0 = arith.constant 0 : i32
    %c0_i32_1 = arith.constant 0 : i32
    return %arg0, %c0_i32, %c0_i32_0 : i32, i32, i32
  }
  func.func @transform_1(%arg0: i32) -> (i32, i32, i32) {
    %c0_i32 = arith.constant 0 : i32
    %c0_i32_0 = arith.constant 0 : i32
    %c0_i32_1 = arith.constant 0 : i32
    return %arg0, %c0_i32, %c0_i32_0 : i32, i32, i32
  }
}

module attributes {stable_mosaic.version = 11 : i64} {
  func.func @_fused_linear_kernel(%arg0: i32, %arg1: memref<40x64xbf16, #tpu.memory_space<vmem>>, %arg2: memref<64x64xbf16, #tpu.memory_space<vmem>>, %arg3: memref<1x64xf32, #tpu.memory_space<vmem>>, %arg4: memref<40x64xbf16, #tpu.memory_space<vmem>>, %arg5: memref<40x64xbf16, #tpu.memory_space<vmem>>) attributes {dimension_semantics = [#tpu.dimension_semantics<parallel>], iteration_bounds = array<i64: 1>, scalar_prefetch = 0 : i64, scratch_operands = 0 : i64, tpu.core_type = #tpu.core_type<tc>, window_params = [{transform_indices = @transform_0, window_bounds = array<i64: 40, 64>}, {pipeline_mode = #tpu.pipeline_mode<synchronous>, transform_indices = @transform_1, window_bounds = array<i64: 64, 64>}, {pipeline_mode = #tpu.pipeline_mode<synchronous>, transform_indices = @transform_2, window_bounds = array<i64: 1, 64>}, {transform_indices = @transform_3, window_bounds = array<i64: 40, 64>}, {transform_indices = @transform_4, window_bounds = array<i64: 40, 64>}]} {
    %c0 = arith.constant 0 : index
    %c0_0 = arith.constant 0 : index
    %0 = vector.load %arg1[%c0, %c0_0] : memref<40x64xbf16, #tpu.memory_space<vmem>>, vector<40x64xbf16>
    %c0_1 = arith.constant 0 : index
    %c0_2 = arith.constant 0 : index
    %1 = vector.load %arg2[%c0_1, %c0_2] : memref<64x64xbf16, #tpu.memory_space<vmem>>, vector<64x64xbf16>
    %cst = arith.constant dense<0.000000e+00> : vector<40x64xf32>
    %2 = tpu.matmul %0, %1, %cst {dimension_numbers = #tpu.dot_dimension_numbers<[1], [0], [0], [1], [0, 0, 1, 1], [], []>} : vector<40x64xbf16>, vector<64x64xbf16>, vector<40x64xf32> -> vector<40x64xf32>
    %c0_3 = arith.constant 0 : index
    %c0_4 = arith.constant 0 : index
    %3 = vector.load %arg3[%c0_3, %c0_4] : memref<1x64xf32, #tpu.memory_space<vmem>>, vector<1x64xf32>
    %4 = vector.broadcast %3 : vector<1x64xf32> to vector<40x64xf32>
    %5 = arith.addf %2, %4 : vector<40x64xf32>
    %c0_5 = arith.constant 0 : index
    %c0_6 = arith.constant 0 : index
    %6 = vector.load %arg4[%c0_5, %c0_6] : memref<40x64xbf16, #tpu.memory_space<vmem>>, vector<40x64xbf16>
    %7 = arith.extf %6 : vector<40x64xbf16> to vector<40x64xf32>
    %8 = arith.addf %5, %7 : vector<40x64xf32>
    %9 = arith.truncf %8 : vector<40x64xf32> to vector<40x64xbf16>
    %c0_7 = arith.constant 0 : index
    %c0_8 = arith.constant 0 : index
    %10 = vector.load %arg5[%c0_7, %c0_8] : memref<40x64xbf16, #tpu.memory_space<vmem>>, vector<40x64xbf16>
    tpu.vector_store %arg5[%c0_7, %c0_8], %9 {strides = array<i32>} : memref<40x64xbf16, #tpu.memory_space<vmem>>, vector<40x64xbf16>,
    return
  }
  func.func @transform_0(%arg0: i32) -> (i32, i32) {
    %c0_i32 = arith.constant 0 : i32
    %c0_i32_0 = arith.constant 0 : i32
    return %arg0, %c0_i32 : i32, i32
  }
  func.func @transform_1(%arg0: i32) -> (i32, i32) {
    %c0_i32 = arith.constant 0 : i32
    %c0_i32_0 = arith.constant 0 : i32
    %c0_i32_1 = arith.constant 0 : i32
    return %c0_i32, %c0_i32_0 : i32, i32
  }
  func.func @transform_2(%arg0: i32) -> (i32, i32) {
    %c0_i32 = arith.constant 0 : i32
    %c0_i32_0 = arith.constant 0 : i32
    %c0_i32_1 = arith.constant 0 : i32
    return %c0_i32, %c0_i32_0 : i32, i32
  }
  func.func @transform_3(%arg0: i32) -> (i32, i32) {
    %c0_i32 = arith.constant 0 : i32
    %c0_i32_0 = arith.constant 0 : i32
    return %arg0, %c0_i32 : i32, i32
  }
  func.func @transform_4(%arg0: i32) -> (i32, i32) {
    %c0_i32 = arith.constant 0 : i32
    %c0_i32_0 = arith.constant 0 : i32
    return %arg0, %c0_i32 : i32, i32
  }
}

module attributes {stable_mosaic.version = 11 : i64} {
  func.func @_fused_linear_kernel(%arg0: i32, %arg1: memref<40x64xbf16, #tpu.memory_space<vmem>>, %arg2: memref<1x64xf32, #tpu.memory_space<vmem>>, %arg3: memref<1x64xf32, #tpu.memory_space<vmem>>, %arg4: memref<64x256xbf16, #tpu.memory_space<vmem>>, %arg5: memref<1x256xf32, #tpu.memory_space<vmem>>, %arg6: memref<40x256xbf16, #tpu.memory_space<vmem>>) attributes {dimension_semantics = [#tpu.dimension_semantics<parallel>], iteration_bounds = array<i64: 1>, scalar_prefetch = 0 : i64, scratch_operands = 0 : i64, tpu.core_type = #tpu.core_type<tc>, window_params = [{transform_indices = @transform_0, window_bounds = array<i64: 40, 64>}, {pipeline_mode = #tpu.pipeline_mode<synchronous>, transform_indices = @transform_1, window_bounds = array<i64: 1, 64>}, {pipeline_mode = #tpu.pipeline_mode<synchronous>, transform_indices = @transform_2, window_bounds = array<i64: 1, 64>}, {pipeline_mode = #tpu.pipeline_mode<synchronous>, transform_indices = @transform_3, window_bounds = array<i64: 64, 256>}, {pipeline_mode = #tpu.pipeline_mode<synchronous>, transform_indices = @transform_4, window_bounds = array<i64: 1, 256>}, {transform_indices = @transform_5, window_bounds = array<i64: 40, 256>}]} {
    %c0 = arith.constant 0 : index
    %c0_0 = arith.constant 0 : index
    %0 = vector.load %arg1[%c0, %c0_0] : memref<40x64xbf16, #tpu.memory_space<vmem>>, vector<40x64xbf16>
    %1 = arith.extf %0 : vector<40x64xbf16> to vector<40x64xf32>
    %cst = arith.constant dense<0.000000e+00> : vector<40xf32>
    %2 = vector.multi_reduction <add>, %1, %cst [1] : vector<40x64xf32> to vector<40xf32>
    %3 = vector.shape_cast %2 : vector<40xf32> to vector<40x1xf32>
    %cst_1 = arith.constant 6.400000e+01 : f32
    %4 = vector.broadcast %cst_1 : f32 to vector<40x1xf32>
    %5 = arith.divf %3, %4 : vector<40x1xf32>
    %6 = vector.broadcast %5 : vector<40x1xf32> to vector<40x64xf32>
    %7 = arith.subf %1, %6 : vector<40x64xf32>
    %8 = arith.mulf %7, %7 : vector<40x64xf32>
    %cst_2 = arith.constant dense<0.000000e+00> : vector<40xf32>
    %9 = vector.multi_reduction <add>, %8, %cst_2 [1] : vector<40x64xf32> to vector<40xf32>
    %10 = vector.shape_cast %9 : vector<40xf32> to vector<40x1xf32>
    %cst_3 = arith.constant 6.400000e+01 : f32
    %11 = vector.broadcast %cst_3 : f32 to vector<40x1xf32>
    %12 = arith.divf %10, %11 : vector<40x1xf32>
    %13 = vector.broadcast %5 : vector<40x1xf32> to vector<40x64xf32>
    %14 = arith.subf %1, %13 : vector<40x64xf32>
    %cst_4 = arith.constant 9.99999974E-6 : f32
    %15 = vector.broadcast %cst_4 : f32 to vector<40x1xf32>
    %16 = arith.addf %12, %15 : vector<40x1xf32>
    %17 = math.rsqrt %16 : vector<40x1xf32>
    %18 = vector.broadcast %17 : vector<40x1xf32> to vector<40x64xf32>
    %19 = arith.mulf %14, %18 : vector<40x64xf32>
    %c0_5 = arith.constant 0 : index
    %c0_6 = arith.constant 0 : index
    %20 = vector.load %arg2[%c0_5, %c0_6] : memref<1x64xf32, #tpu.memory_space<vmem>>, vector<1x64xf32>
    %21 = vector.broadcast %20 : vector<1x64xf32> to vector<40x64xf32>
    %22 = arith.mulf %19, %21 : vector<40x64xf32>
    %c0_7 = arith.constant 0 : index
    %c0_8 = arith.constant 0 : index
    %23 = vector.load %arg3[%c0_7, %c0_8] : memref<1x64xf32, #tpu.memory_space<vmem>>, vector<1x64xf32>
    %24 = vector.broadcast %23 : vector<1x64xf32> to vector<40x64xf32>
    %25 = arith.addf %22, %24 : vector<40x64xf32>
    %26 = arith.truncf %25 : vector<40x64xf32> to vector<40x64xbf16>
    %c0_9 = arith.constant 0 : index
    %c0_10 = arith.constant 0 : index
    %27 = vector.load %arg4[%c0_9, %c0_10] : memref<64x256xbf16, #tpu.memory_space<vmem>>, vector<64x256xbf16>
    %cst_11 = arith.constant dense<0.000000e+00> : vector<40x256xf32>
    %28 = tpu.matmul %26, %27, %cst_11 {dimension_numbers = #tpu.dot_dimension_numbers<[1], [0], [0], [1], [0, 0, 1, 1], [], []>} : vector<40x64xbf16>, vector<64x256xbf16>, vector<40x256xf32> -> vector<40x256xf32>
    %c0_12 = arith.constant 0 : index
    %c0_13 = arith.constant 0 : index
    %29 = vector.load %arg5[%c0_12, %c0_13] : memref<1x256xf32, #tpu.memory_space<vmem>>, vector<1x256xf32>
    %30 = vector.broadcast %29 : vector<1x256xf32> to vector<40x256xf32>
    %31 = arith.addf %28, %30 : vector<40x256xf32>
    %cst_14 = arith.constant 1.702000e+00 : f32
    %32 = vector.broadcast %cst_14 : f32 to vector<40x256xf32>
    %33 = arith.mulf %32, %31 : vector<40x256xf32>
    %34 = arith.negf %33 : vector<40x256xf32>
    %35 = math.exp %34 : vector<40x256xf32>
    %cst_15 = arith.constant 1.000000e+00 : f32
    %36 = vector.broadcast %cst_15 : f32 to vector<40x256xf32>
    %37 = arith.addf %36, %35 : vector<40x256xf32>
    %38 = arith.divf %36, %37 : vector<40x256xf32>
    %39 = arith.mulf %31, %38 : vector<40x256xf32>
    %40 = arith.truncf %39 : vector<40x256xf32> to vector<40x256xbf16>
    %c0_16 = arith.constant 0 : index
    %c0_17 = arith.constant 0 : index
    %41 = vector.load %arg6[%c0_16, %c0_17] : memref<40x256xbf16, #tpu.memory_space<vmem>>, vector<40x256xbf16>
    tpu.vector_store %arg6[%c0_16, %c0_17], %40 {strides = array<i32>} : memref<40x256xbf16, #tpu.memory_space<vmem>>, vector<40x256xbf16>,
    return
  }
  func.func @transform_0(%arg0: i32) -> (i32, i32) {
    %c0_i32 = arith.constant 0 : i32
    %c0_i32_0 = arith.constant 0 : i32
    return %arg0, %c0_i32 : i32, i32
  }
  func.func @transform_1(%arg0: i32) -> (i32, i32) {
    %c0_i32 = arith.constant 0 : i32
    %c0_i32_0 = arith.constant 0 : i32
    %c0_i32_1 = arith.constant 0 : i32
    return %c0_i32, %c0_i32_0 : i32, i32
  }
  func.func @transform_2(%arg0: i32) -> (i32, i32) {
    %c0_i32 = arith.constant 0 : i32
    %c0_i32_0 = arith.constant 0 : i32
    %c0_i32_1 = arith.constant 0 : i32
    return %c0_i32, %c0_i32_0 : i32, i32
  }
  func.func @transform_3(%arg0: i32) -> (i32, i32) {
    %c0_i32 = arith.constant 0 : i32
    %c0_i32_0 = arith.constant 0 : i32
    %c0_i32_1 = arith.constant 0 : i32
    return %c0_i32, %c0_i32_0 : i32, i32
  }
  func.func @transform_4(%arg0: i32) -> (i32, i32) {
    %c0_i32 = arith.constant 0 : i32
    %c0_i32_0 = arith.constant 0 : i32
    %c0_i32_1 = arith.constant 0 : i32
    return %c0_i32, %c0_i32_0 : i32, i32
  }
  func.func @transform_5(%arg0: i32) -> (i32, i32) {
    %c0_i32 = arith.constant 0 : i32
    %c0_i32_0 = arith.constant 0 : i32
    return %arg0, %c0_i32 : i32, i32
  }
}

module attributes {stable_mosaic.version = 11 : i64} {
  func.func @_fused_linear_kernel(%arg0: i32, %arg1: memref<40x256xbf16, #tpu.memory_space<vmem>>, %arg2: memref<256x64xbf16, #tpu.memory_space<vmem>>, %arg3: memref<1x64xf32, #tpu.memory_space<vmem>>, %arg4: memref<40x64xbf16, #tpu.memory_space<vmem>>, %arg5: memref<40x64xbf16, #tpu.memory_space<vmem>>) attributes {dimension_semantics = [#tpu.dimension_semantics<parallel>], iteration_bounds = array<i64: 1>, scalar_prefetch = 0 : i64, scratch_operands = 0 : i64, tpu.core_type = #tpu.core_type<tc>, window_params = [{transform_indices = @transform_0, window_bounds = array<i64: 40, 256>}, {pipeline_mode = #tpu.pipeline_mode<synchronous>, transform_indices = @transform_1, window_bounds = array<i64: 256, 64>}, {pipeline_mode = #tpu.pipeline_mode<synchronous>, transform_indices = @transform_2, window_bounds = array<i64: 1, 64>}, {transform_indices = @transform_3, window_bounds = array<i64: 40, 64>}, {transform_indices = @transform_4, window_bounds = array<i64: 40, 64>}]} {
    %c0 = arith.constant 0 : index
    %c0_0 = arith.constant 0 : index
    %0 = vector.load %arg1[%c0, %c0_0] : memref<40x256xbf16, #tpu.memory_space<vmem>>, vector<40x256xbf16>
    %c0_1 = arith.constant 0 : index
    %c0_2 = arith.constant 0 : index
    %1 = vector.load %arg2[%c0_1, %c0_2] : memref<256x64xbf16, #tpu.memory_space<vmem>>, vector<256x64xbf16>
    %cst = arith.constant dense<0.000000e+00> : vector<40x64xf32>
    %2 = tpu.matmul %0, %1, %cst {dimension_numbers = #tpu.dot_dimension_numbers<[1], [0], [0], [1], [0, 0, 1, 1], [], []>} : vector<40x256xbf16>, vector<256x64xbf16>, vector<40x64xf32> -> vector<40x64xf32>
    %c0_3 = arith.constant 0 : index
    %c0_4 = arith.constant 0 : index
    %3 = vector.load %arg3[%c0_3, %c0_4] : memref<1x64xf32, #tpu.memory_space<vmem>>, vector<1x64xf32>
    %4 = vector.broadcast %3 : vector<1x64xf32> to vector<40x64xf32>
    %5 = arith.addf %2, %4 : vector<40x64xf32>
    %c0_5 = arith.constant 0 : index
    %c0_6 = arith.constant 0 : index
    %6 = vector.load %arg4[%c0_5, %c0_6] : memref<40x64xbf16, #tpu.memory_space<vmem>>, vector<40x64xbf16>
    %7 = arith.extf %6 : vector<40x64xbf16> to vector<40x64xf32>
    %8 = arith.addf %5, %7 : vector<40x64xf32>
    %9 = arith.truncf %8 : vector<40x64xf32> to vector<40x64xbf16>
    %c0_7 = arith.constant 0 : index
    %c0_8 = arith.constant 0 : index
    %10 = vector.load %arg5[%c0_7, %c0_8] : memref<40x64xbf16, #tpu.memory_space<vmem>>, vector<40x64xbf16>
    tpu.vector_store %arg5[%c0_7, %c0_8], %9 {strides = array<i32>} : memref<40x64xbf16, #tpu.memory_space<vmem>>, vector<40x64xbf16>,
    return
  }
  func.func @transform_0(%arg0: i32) -> (i32, i32) {
    %c0_i32 = arith.constant 0 : i32
    %c0_i32_0 = arith.constant 0 : i32
    return %arg0, %c0_i32 : i32, i32
  }
  func.func @transform_1(%arg0: i32) -> (i32, i32) {
    %c0_i32 = arith.constant 0 : i32
    %c0_i32_0 = arith.constant 0 : i32
    %c0_i32_1 = arith.constant 0 : i32
    return %c0_i32, %c0_i32_0 : i32, i32
  }
  func.func @transform_2(%arg0: i32) -> (i32, i32) {
    %c0_i32 = arith.constant 0 : i32
    %c0_i32_0 = arith.constant 0 : i32
    %c0_i32_1 = arith.constant 0 : i32
    return %c0_i32, %c0_i32_0 : i32, i32
  }
  func.func @transform_3(%arg0: i32) -> (i32, i32) {
    %c0_i32 = arith.constant 0 : i32
    %c0_i32_0 = arith.constant 0 : i32
    return %arg0, %c0_i32 : i32, i32
  }
  func.func @transform_4(%arg0: i32) -> (i32, i32) {
    %c0_i32 = arith.constant 0 : i32
    %c0_i32_0 = arith.constant 0 : i32
    return %arg0, %c0_i32 : i32, i32
  }
}

module attributes {stable_mosaic.version = 11 : i64} {
  func.func @_fused_linear_kernel(%arg0: i32, %arg1: memref<8x64xbf16, #tpu.memory_space<vmem>>, %arg2: memref<1x64xf32, #tpu.memory_space<vmem>>, %arg3: memref<1x64xf32, #tpu.memory_space<vmem>>, %arg4: memref<64x64xbf16, #tpu.memory_space<vmem>>, %arg5: memref<8x64xbf16, #tpu.memory_space<vmem>>) attributes {dimension_semantics = [#tpu.dimension_semantics<parallel>], iteration_bounds = array<i64: 1>, scalar_prefetch = 0 : i64, scratch_operands = 0 : i64, tpu.core_type = #tpu.core_type<tc>, window_params = [{transform_indices = @transform_0, window_bounds = array<i64: 8, 64>}, {pipeline_mode = #tpu.pipeline_mode<synchronous>, transform_indices = @transform_1, window_bounds = array<i64: 1, 64>}, {pipeline_mode = #tpu.pipeline_mode<synchronous>, transform_indices = @transform_2, window_bounds = array<i64: 1, 64>}, {pipeline_mode = #tpu.pipeline_mode<synchronous>, transform_indices = @transform_3, window_bounds = array<i64: 64, 64>}, {transform_indices = @transform_4, window_bounds = array<i64: 8, 64>}]} {
    %c0 = arith.constant 0 : index
    %c0_0 = arith.constant 0 : index
    %0 = vector.load %arg1[%c0, %c0_0] : memref<8x64xbf16, #tpu.memory_space<vmem>>, vector<8x64xbf16>
    %1 = arith.extf %0 : vector<8x64xbf16> to vector<8x64xf32>
    %cst = arith.constant dense<0.000000e+00> : vector<8xf32>
    %2 = vector.multi_reduction <add>, %1, %cst [1] : vector<8x64xf32> to vector<8xf32>
    %3 = vector.shape_cast %2 : vector<8xf32> to vector<8x1xf32>
    %cst_1 = arith.constant 6.400000e+01 : f32
    %4 = vector.broadcast %cst_1 : f32 to vector<8x1xf32>
    %5 = arith.divf %3, %4 : vector<8x1xf32>
    %6 = vector.broadcast %5 : vector<8x1xf32> to vector<8x64xf32>
    %7 = arith.subf %1, %6 : vector<8x64xf32>
    %8 = arith.mulf %7, %7 : vector<8x64xf32>
    %cst_2 = arith.constant dense<0.000000e+00> : vector<8xf32>
    %9 = vector.multi_reduction <add>, %8, %cst_2 [1] : vector<8x64xf32> to vector<8xf32>
    %10 = vector.shape_cast %9 : vector<8xf32> to vector<8x1xf32>
    %cst_3 = arith.constant 6.400000e+01 : f32
    %11 = vector.broadcast %cst_3 : f32 to vector<8x1xf32>
    %12 = arith.divf %10, %11 : vector<8x1xf32>
    %13 = vector.broadcast %5 : vector<8x1xf32> to vector<8x64xf32>
    %14 = arith.subf %1, %13 : vector<8x64xf32>
    %cst_4 = arith.constant 9.99999974E-6 : f32
    %15 = vector.broadcast %cst_4 : f32 to vector<8x1xf32>
    %16 = arith.addf %12, %15 : vector<8x1xf32>
    %17 = math.rsqrt %16 : vector<8x1xf32>
    %18 = vector.broadcast %17 : vector<8x1xf32> to vector<8x64xf32>
    %19 = arith.mulf %14, %18 : vector<8x64xf32>
    %c0_5 = arith.constant 0 : index
    %c0_6 = arith.constant 0 : index
    %20 = vector.load %arg2[%c0_5, %c0_6] : memref<1x64xf32, #tpu.memory_space<vmem>>, vector<1x64xf32>
    %21 = vector.broadcast %20 : vector<1x64xf32> to vector<8x64xf32>
    %22 = arith.mulf %19, %21 : vector<8x64xf32>
    %c0_7 = arith.constant 0 : index
    %c0_8 = arith.constant 0 : index
    %23 = vector.load %arg3[%c0_7, %c0_8] : memref<1x64xf32, #tpu.memory_space<vmem>>, vector<1x64xf32>
    %24 = vector.broadcast %23 : vector<1x64xf32> to vector<8x64xf32>
    %25 = arith.addf %22, %24 : vector<8x64xf32>
    %26 = arith.truncf %25 : vector<8x64xf32> to vector<8x64xbf16>
    %c0_9 = arith.constant 0 : index
    %c0_10 = arith.constant 0 : index
    %27 = vector.load %arg4[%c0_9, %c0_10] : memref<64x64xbf16, #tpu.memory_space<vmem>>, vector<64x64xbf16>
    %cst_11 = arith.constant dense<0.000000e+00> : vector<8x64xf32>
    %28 = tpu.matmul %26, %27, %cst_11 {dimension_numbers = #tpu.dot_dimension_numbers<[1], [0], [0], [1], [0, 0, 1, 1], [], []>} : vector<8x64xbf16>, vector<64x64xbf16>, vector<8x64xf32> -> vector<8x64xf32>
    %29 = arith.truncf %28 : vector<8x64xf32> to vector<8x64xbf16>
    %c0_12 = arith.constant 0 : index
    %c0_13 = arith.constant 0 : index
    %30 = vector.load %arg5[%c0_12, %c0_13] : memref<8x64xbf16, #tpu.memory_space<vmem>>, vector<8x64xbf16>
    tpu.vector_store %arg5[%c0_12, %c0_13], %29 {strides = array<i32>} : memref<8x64xbf16, #tpu.memory_space<vmem>>, vector<8x64xbf16>,
    return
  }
  func.func @transform_0(%arg0: i32) -> (i32, i32) {
    %c0_i32 = arith.constant 0 : i32
    %c0_i32_0 = arith.constant 0 : i32
    return %arg0, %c0_i32 : i32, i32
  }
  func.func @transform_1(%arg0: i32) -> (i32, i32) {
    %c0_i32 = arith.constant 0 : i32
    %c0_i32_0 = arith.constant 0 : i32
    %c0_i32_1 = arith.constant 0 : i32
    return %c0_i32, %c0_i32_0 : i32, i32
  }
  func.func @transform_2(%arg0: i32) -> (i32, i32) {
    %c0_i32 = arith.constant 0 : i32
    %c0_i32_0 = arith.constant 0 : i32
    %c0_i32_1 = arith.constant 0 : i32
    return %c0_i32, %c0_i32_0 : i32, i32
  }
  func.func @transform_3(%arg0: i32) -> (i32, i32) {
    %c0_i32 = arith.constant 0 : i32
    %c0_i32_0 = arith.constant 0 : i32
    %c0_i32_1 = arith.constant 0 : i32
    return %c0_i32, %c0_i32_0 : i32, i32
  }
  func.func @transform_4(%arg0: i32) -> (i32, i32) {
    %c0_i32 = arith.constant 0 : i32
    %c0_i32_0 = arith.constant 0 : i32
    return %arg0, %c0_i32 : i32, i32
  }
}

module attributes {stable_mosaic.version = 11 : i64} {
  func.func @_fused_linear_kernel(%arg0: i32, %arg1: memref<48x64xbf16, #tpu.memory_space<vmem>>, %arg2: memref<1x64xf32, #tpu.memory_space<vmem>>, %arg3: memref<1x64xf32, #tpu.memory_space<vmem>>, %arg4: memref<64x192xbf16, #tpu.memory_space<vmem>>, %arg5: memref<1x192xf32, #tpu.memory_space<vmem>>, %arg6: memref<48x192xbf16, #tpu.memory_space<vmem>>) attributes {dimension_semantics = [#tpu.dimension_semantics<parallel>], iteration_bounds = array<i64: 1>, scalar_prefetch = 0 : i64, scratch_operands = 0 : i64, tpu.core_type = #tpu.core_type<tc>, window_params = [{transform_indices = @transform_0, window_bounds = array<i64: 48, 64>}, {pipeline_mode = #tpu.pipeline_mode<synchronous>, transform_indices = @transform_1, window_bounds = array<i64: 1, 64>}, {pipeline_mode = #tpu.pipeline_mode<synchronous>, transform_indices = @transform_2, window_bounds = array<i64: 1, 64>}, {pipeline_mode = #tpu.pipeline_mode<synchronous>, transform_indices = @transform_3, window_bounds = array<i64: 64, 192>}, {pipeline_mode = #tpu.pipeline_mode<synchronous>, transform_indices = @transform_4, window_bounds = array<i64: 1, 192>}, {transform_indices = @transform_5, window_bounds = array<i64: 48, 192>}]} {
    %c0 = arith.constant 0 : index
    %c0_0 = arith.constant 0 : index
    %0 = vector.load %arg1[%c0, %c0_0] : memref<48x64xbf16, #tpu.memory_space<vmem>>, vector<48x64xbf16>
    %1 = arith.extf %0 : vector<48x64xbf16> to vector<48x64xf32>
    %cst = arith.constant dense<0.000000e+00> : vector<48xf32>
    %2 = vector.multi_reduction <add>, %1, %cst [1] : vector<48x64xf32> to vector<48xf32>
    %3 = vector.shape_cast %2 : vector<48xf32> to vector<48x1xf32>
    %cst_1 = arith.constant 6.400000e+01 : f32
    %4 = vector.broadcast %cst_1 : f32 to vector<48x1xf32>
    %5 = arith.divf %3, %4 : vector<48x1xf32>
    %6 = vector.broadcast %5 : vector<48x1xf32> to vector<48x64xf32>
    %7 = arith.subf %1, %6 : vector<48x64xf32>
    %8 = arith.mulf %7, %7 : vector<48x64xf32>
    %cst_2 = arith.constant dense<0.000000e+00> : vector<48xf32>
    %9 = vector.multi_reduction <add>, %8, %cst_2 [1] : vector<48x64xf32> to vector<48xf32>
    %10 = vector.shape_cast %9 : vector<48xf32> to vector<48x1xf32>
    %cst_3 = arith.constant 6.400000e+01 : f32
    %11 = vector.broadcast %cst_3 : f32 to vector<48x1xf32>
    %12 = arith.divf %10, %11 : vector<48x1xf32>
    %13 = vector.broadcast %5 : vector<48x1xf32> to vector<48x64xf32>
    %14 = arith.subf %1, %13 : vector<48x64xf32>
    %cst_4 = arith.constant 9.99999974E-6 : f32
    %15 = vector.broadcast %cst_4 : f32 to vector<48x1xf32>
    %16 = arith.addf %12, %15 : vector<48x1xf32>
    %17 = math.rsqrt %16 : vector<48x1xf32>
    %18 = vector.broadcast %17 : vector<48x1xf32> to vector<48x64xf32>
    %19 = arith.mulf %14, %18 : vector<48x64xf32>
    %c0_5 = arith.constant 0 : index
    %c0_6 = arith.constant 0 : index
    %20 = vector.load %arg2[%c0_5, %c0_6] : memref<1x64xf32, #tpu.memory_space<vmem>>, vector<1x64xf32>
    %21 = vector.broadcast %20 : vector<1x64xf32> to vector<48x64xf32>
    %22 = arith.mulf %19, %21 : vector<48x64xf32>
    %c0_7 = arith.constant 0 : index
    %c0_8 = arith.constant 0 : index
    %23 = vector.load %arg3[%c0_7, %c0_8] : memref<1x64xf32, #tpu.memory_space<vmem>>, vector<1x64xf32>
    %24 = vector.broadcast %23 : vector<1x64xf32> to vector<48x64xf32>
    %25 = arith.addf %22, %24 : vector<48x64xf32>
    %26 = arith.truncf %25 : vector<48x64xf32> to vector<48x64xbf16>
    %c0_9 = arith.constant 0 : index
    %c0_10 = arith.constant 0 : index
    %27 = vector.load %arg4[%c0_9, %c0_10] : memref<64x192xbf16, #tpu.memory_space<vmem>>, vector<64x192xbf16>
    %cst_11 = arith.constant dense<0.000000e+00> : vector<48x192xf32>
    %28 = tpu.matmul %26, %27, %cst_11 {dimension_numbers = #tpu.dot_dimension_numbers<[1], [0], [0], [1], [0, 0, 1, 1], [], []>} : vector<48x64xbf16>, vector<64x192xbf16>, vector<48x192xf32> -> vector<48x192xf32>
    %c0_12 = arith.constant 0 : index
    %c0_13 = arith.constant 0 : index
    %29 = vector.load %arg5[%c0_12, %c0_13] : memref<1x192xf32, #tpu.memory_space<vmem>>, vector<1x192xf32>
    %30 = vector.broadcast %29 : vector<1x192xf32> to vector<48x192xf32>
    %31 = arith.addf %28, %30 : vector<48x192xf32>
    %32 = arith.truncf %31 : vector<48x192xf32> to vector<48x192xbf16>
    %c0_14 = arith.constant 0 : index
    %c0_15 = arith.constant 0 : index
    %33 = vector.load %arg6[%c0_14, %c0_15] : memref<48x192xbf16, #tpu.memory_space<vmem>>, vector<48x192xbf16>
    tpu.vector_store %arg6[%c0_14, %c0_15], %32 {strides = array<i32>} : memref<48x192xbf16, #tpu.memory_space<vmem>>, vector<48x192xbf16>,
    return
  }
  func.func @transform_0(%arg0: i32) -> (i32, i32) {
    %c0_i32 = arith.constant 0 : i32
    %c0_i32_0 = arith.constant 0 : i32
    return %arg0, %c0_i32 : i32, i32
  }
  func.func @transform_1(%arg0: i32) -> (i32, i32) {
    %c0_i32 = arith.constant 0 : i32
    %c0_i32_0 = arith.constant 0 : i32
    %c0_i32_1 = arith.constant 0 : i32
    return %c0_i32, %c0_i32_0 : i32, i32
  }
  func.func @transform_2(%arg0: i32) -> (i32, i32) {
    %c0_i32 = arith.constant 0 : i32
    %c0_i32_0 = arith.constant 0 : i32
    %c0_i32_1 = arith.constant 0 : i32
    return %c0_i32, %c0_i32_0 : i32, i32
  }
  func.func @transform_3(%arg0: i32) -> (i32, i32) {
    %c0_i32 = arith.constant 0 : i32
    %c0_i32_0 = arith.constant 0 : i32
    %c0_i32_1 = arith.constant 0 : i32
    return %c0_i32, %c0_i32_0 : i32, i32
  }
  func.func @transform_4(%arg0: i32) -> (i32, i32) {
    %c0_i32 = arith.constant 0 : i32
    %c0_i32_0 = arith.constant 0 : i32
    %c0_i32_1 = arith.constant 0 : i32
    return %c0_i32, %c0_i32_0 : i32, i32
  }
  func.func @transform_5(%arg0: i32) -> (i32, i32) {
    %c0_i32 = arith.constant 0 : i32
    %c0_i32_0 = arith.constant 0 : i32
    return %arg0, %c0_i32 : i32, i32
  }
}

module attributes {stable_mosaic.version = 11 : i64} {
  func.func @_attention_kernel(%arg0: i32, %arg1: memref<1x16x192xbf16, #tpu.memory_space<vmem>>, %arg2: memref<1x16x64xbf16, #tpu.memory_space<vmem>>) attributes {dimension_semantics = [#tpu.dimension_semantics<parallel>], iteration_bounds = array<i64: 3>, scalar_prefetch = 0 : i64, scratch_operands = 0 : i64, tpu.core_type = #tpu.core_type<tc>, window_params = [{transform_indices = @transform_0, window_bounds = array<i64: 1, 16, 192>}, {transform_indices = @transform_1, window_bounds = array<i64: 1, 16, 64>}]} {
    %0 = tpu.iota {dimensions = array<i32: 0>} : vector<16x16xi32>
    %1 = tpu.iota {dimensions = array<i32: 1>} : vector<16x16xi32>
    %2 = arith.cmpi sgt, %1, %0 : vector<16x16xi32>
    %cst = arith.constant -1.000000e+09 : f32
    %cst_0 = arith.constant 0.000000e+00 : f32
    %3 = vector.broadcast %cst : f32 to vector<16x16xf32>
    %4 = vector.broadcast %cst_0 : f32 to vector<16x16xf32>
    %5 = arith.select %2, %3, %4 : vector<16x16xi1>, vector<16x16xf32>
    %c0 = arith.constant 0 : index
    %c0_1 = arith.constant 0 : index
    %c0_2 = arith.constant 0 : index
    %6 = vector.load %arg1[%c0, %c0_1, %c0_2] : memref<1x16x192xbf16, #tpu.memory_space<vmem>>, vector<1x16x64xbf16>
    %7 = vector.shape_cast %6 : vector<1x16x64xbf16> to vector<16x64xbf16>
    %c0_3 = arith.constant 0 : index
    %c0_4 = arith.constant 0 : index
    %c64 = arith.constant 64 : index
    %8 = vector.load %arg1[%c0_3, %c0_4, %c64] : memref<1x16x192xbf16, #tpu.memory_space<vmem>>, vector<1x16x64xbf16>
    %9 = vector.shape_cast %8 : vector<1x16x64xbf16> to vector<16x64xbf16>
    %c0_5 = arith.constant 0 : index
    %c0_6 = arith.constant 0 : index
    %c128 = arith.constant 128 : index
    %10 = vector.load %arg1[%c0_5, %c0_6, %c128] : memref<1x16x192xbf16, #tpu.memory_space<vmem>>, vector<1x16x64xbf16>
    %11 = vector.shape_cast %10 : vector<1x16x64xbf16> to vector<16x64xbf16>
    %12 = vector.extract_strided_slice %7 {offsets = [0, 0], sizes = [16, 16], strides = [1, 1]} : vector<16x64xbf16> to vector<16x16xbf16>
    %13 = vector.extract_strided_slice %9 {offsets = [0, 0], sizes = [16, 16], strides = [1, 1]} : vector<16x64xbf16> to vector<16x16xbf16>
    %14 = vector.extract_strided_slice %11 {offsets = [0, 0], sizes = [16, 16], strides = [1, 1]} : vector<16x64xbf16> to vector<16x16xbf16>
    %cst_7 = arith.constant dense<0.000000e+00> : vector<16x16xf32>
    %15 = tpu.matmul %12, %13, %cst_7 {dimension_numbers = #tpu.dot_dimension_numbers<[1], [1], [0], [0], [0, 0, 1, 0], [], []>} : vector<16x16xbf16>, vector<16x16xbf16>, vector<16x16xf32> -> vector<16x16xf32>
    %cst_8 = arith.constant 2.500000e-01 : f32
    %16 = vector.broadcast %cst_8 : f32 to vector<16x16xf32>
    %17 = arith.mulf %15, %16 : vector<16x16xf32>
    %18 = arith.addf %17, %5 : vector<16x16xf32>
    %cst_9 = arith.constant dense<0xFF800000> : vector<16xf32>
    %19 = vector.multi_reduction <maximumf>, %18, %cst_9 [1] : vector<16x16xf32> to vector<16xf32>
    %20 = vector.shape_cast %19 : vector<16xf32> to vector<16x1xf32>
    %21 = vector.broadcast %20 : vector<16x1xf32> to vector<16x16xf32>
    %22 = arith.subf %18, %21 : vector<16x16xf32>
    %23 = math.exp %22 : vector<16x16xf32>
    %cst_10 = arith.constant dense<0.000000e+00> : vector<16xf32>
    %24 = vector.multi_reduction <add>, %23, %cst_10 [1] : vector<16x16xf32> to vector<16xf32>
    %25 = vector.shape_cast %24 : vector<16xf32> to vector<16x1xf32>
    %26 = tpu.reciprocal %25 {approx = true} : vector<16x1xf32> -> vector<16x1xf32>
    %27 = vector.broadcast %26 : vector<16x1xf32> to vector<16x16xf32>
    %28 = arith.mulf %23, %27 : vector<16x16xf32>
    %29 = arith.truncf %28 : vector<16x16xf32> to vector<16x16xbf16>
    %cst_11 = arith.constant dense<0.000000e+00> : vector<16x16xf32>
    %30 = tpu.matmul %29, %14, %cst_11 {dimension_numbers = #tpu.dot_dimension_numbers<[1], [0], [0], [1], [0, 0, 1, 1], [], []>} : vector<16x16xbf16>, vector<16x16xbf16>, vector<16x16xf32> -> vector<16x16xf32>
    %31 = arith.truncf %30 : vector<16x16xf32> to vector<16x16xbf16>
    %c0_12 = arith.constant 0 : index
    %c0_13 = arith.constant 0 : index
    %c0_14 = arith.constant 0 : index
    %32 = vector.load %arg2[%c0_12, %c0_13, %c0_14] : memref<1x16x64xbf16, #tpu.memory_space<vmem>>, vector<1x16x16xbf16>
    %33 = vector.shape_cast %32 : vector<1x16x16xbf16> to vector<16x16xbf16>
    %34 = vector.shape_cast %31 : vector<16x16xbf16> to vector<1x16x16xbf16>
    tpu.vector_store %arg2[%c0_12, %c0_13, %c0_14], %34 {strides = array<i32>} : memref<1x16x64xbf16, #tpu.memory_space<vmem>>, vector<1x16x16xbf16>,
    %35 = vector.extract_strided_slice %7 {offsets = [0, 16], sizes = [16, 16], strides = [1, 1]} : vector<16x64xbf16> to vector<16x16xbf16>
    %36 = vector.extract_strided_slice %9 {offsets = [0, 16], sizes = [16, 16], strides = [1, 1]} : vector<16x64xbf16> to vector<16x16xbf16>
    %37 = vector.extract_strided_slice %11 {offsets = [0, 16], sizes = [16, 16], strides = [1, 1]} : vector<16x64xbf16> to vector<16x16xbf16>
    %cst_15 = arith.constant dense<0.000000e+00> : vector<16x16xf32>
    %38 = tpu.matmul %35, %36, %cst_15 {dimension_numbers = #tpu.dot_dimension_numbers<[1], [1], [0], [0], [0, 0, 1, 0], [], []>} : vector<16x16xbf16>, vector<16x16xbf16>, vector<16x16xf32> -> vector<16x16xf32>
    %cst_16 = arith.constant 2.500000e-01 : f32
    %39 = vector.broadcast %cst_16 : f32 to vector<16x16xf32>
    %40 = arith.mulf %38, %39 : vector<16x16xf32>
    %41 = arith.addf %40, %5 : vector<16x16xf32>
    %cst_17 = arith.constant dense<0xFF800000> : vector<16xf32>
    %42 = vector.multi_reduction <maximumf>, %41, %cst_17 [1] : vector<16x16xf32> to vector<16xf32>
    %43 = vector.shape_cast %42 : vector<16xf32> to vector<16x1xf32>
    %44 = vector.broadcast %43 : vector<16x1xf32> to vector<16x16xf32>
    %45 = arith.subf %41, %44 : vector<16x16xf32>
    %46 = math.exp %45 : vector<16x16xf32>
    %cst_18 = arith.constant dense<0.000000e+00> : vector<16xf32>
    %47 = vector.multi_reduction <add>, %46, %cst_18 [1] : vector<16x16xf32> to vector<16xf32>
    %48 = vector.shape_cast %47 : vector<16xf32> to vector<16x1xf32>
    %49 = tpu.reciprocal %48 {approx = true} : vector<16x1xf32> -> vector<16x1xf32>
    %50 = vector.broadcast %49 : vector<16x1xf32> to vector<16x16xf32>
    %51 = arith.mulf %46, %50 : vector<16x16xf32>
    %52 = arith.truncf %51 : vector<16x16xf32> to vector<16x16xbf16>
    %cst_19 = arith.constant dense<0.000000e+00> : vector<16x16xf32>
    %53 = tpu.matmul %52, %37, %cst_19 {dimension_numbers = #tpu.dot_dimension_numbers<[1], [0], [0], [1], [0, 0, 1, 1], [], []>} : vector<16x16xbf16>, vector<16x16xbf16>, vector<16x16xf32> -> vector<16x16xf32>
    %54 = arith.truncf %53 : vector<16x16xf32> to vector<16x16xbf16>
    %c0_20 = arith.constant 0 : index
    %c0_21 = arith.constant 0 : index
    %c16 = arith.constant 16 : index
    %55 = vector.load %arg2[%c0_20, %c0_21, %c16] : memref<1x16x64xbf16, #tpu.memory_space<vmem>>, vector<1x16x16xbf16>
    %56 = vector.shape_cast %55 : vector<1x16x16xbf16> to vector<16x16xbf16>
    %57 = vector.shape_cast %54 : vector<16x16xbf16> to vector<1x16x16xbf16>
    tpu.vector_store %arg2[%c0_20, %c0_21, %c16], %57 {strides = array<i32>} : memref<1x16x64xbf16, #tpu.memory_space<vmem>>, vector<1x16x16xbf16>,
    %58 = vector.extract_strided_slice %7 {offsets = [0, 32], sizes = [16, 16], strides = [1, 1]} : vector<16x64xbf16> to vector<16x16xbf16>
    %59 = vector.extract_strided_slice %9 {offsets = [0, 32], sizes = [16, 16], strides = [1, 1]} : vector<16x64xbf16> to vector<16x16xbf16>
    %60 = vector.extract_strided_slice %11 {offsets = [0, 32], sizes = [16, 16], strides = [1, 1]} : vector<16x64xbf16> to vector<16x16xbf16>
    %cst_22 = arith.constant dense<0.000000e+00> : vector<16x16xf32>
    %61 = tpu.matmul %58, %59, %cst_22 {dimension_numbers = #tpu.dot_dimension_numbers<[1], [1], [0], [0], [0, 0, 1, 0], [], []>} : vector<16x16xbf16>, vector<16x16xbf16>, vector<16x16xf32> -> vector<16x16xf32>
    %cst_23 = arith.constant 2.500000e-01 : f32
    %62 = vector.broadcast %cst_23 : f32 to vector<16x16xf32>
    %63 = arith.mulf %61, %62 : vector<16x16xf32>
    %64 = arith.addf %63, %5 : vector<16x16xf32>
    %cst_24 = arith.constant dense<0xFF800000> : vector<16xf32>
    %65 = vector.multi_reduction <maximumf>, %64, %cst_24 [1] : vector<16x16xf32> to vector<16xf32>
    %66 = vector.shape_cast %65 : vector<16xf32> to vector<16x1xf32>
    %67 = vector.broadcast %66 : vector<16x1xf32> to vector<16x16xf32>
    %68 = arith.subf %64, %67 : vector<16x16xf32>
    %69 = math.exp %68 : vector<16x16xf32>
    %cst_25 = arith.constant dense<0.000000e+00> : vector<16xf32>
    %70 = vector.multi_reduction <add>, %69, %cst_25 [1] : vector<16x16xf32> to vector<16xf32>
    %71 = vector.shape_cast %70 : vector<16xf32> to vector<16x1xf32>
    %72 = tpu.reciprocal %71 {approx = true} : vector<16x1xf32> -> vector<16x1xf32>
    %73 = vector.broadcast %72 : vector<16x1xf32> to vector<16x16xf32>
    %74 = arith.mulf %69, %73 : vector<16x16xf32>
    %75 = arith.truncf %74 : vector<16x16xf32> to vector<16x16xbf16>
    %cst_26 = arith.constant dense<0.000000e+00> : vector<16x16xf32>
    %76 = tpu.matmul %75, %60, %cst_26 {dimension_numbers = #tpu.dot_dimension_numbers<[1], [0], [0], [1], [0, 0, 1, 1], [], []>} : vector<16x16xbf16>, vector<16x16xbf16>, vector<16x16xf32> -> vector<16x16xf32>
    %77 = arith.truncf %76 : vector<16x16xf32> to vector<16x16xbf16>
    %c0_27 = arith.constant 0 : index
    %c0_28 = arith.constant 0 : index
    %c32 = arith.constant 32 : index
    %78 = vector.load %arg2[%c0_27, %c0_28, %c32] : memref<1x16x64xbf16, #tpu.memory_space<vmem>>, vector<1x16x16xbf16>
    %79 = vector.shape_cast %78 : vector<1x16x16xbf16> to vector<16x16xbf16>
    %80 = vector.shape_cast %77 : vector<16x16xbf16> to vector<1x16x16xbf16>
    tpu.vector_store %arg2[%c0_27, %c0_28, %c32], %80 {strides = array<i32>} : memref<1x16x64xbf16, #tpu.memory_space<vmem>>, vector<1x16x16xbf16>,
    %81 = vector.extract_strided_slice %7 {offsets = [0, 48], sizes = [16, 16], strides = [1, 1]} : vector<16x64xbf16> to vector<16x16xbf16>
    %82 = vector.extract_strided_slice %9 {offsets = [0, 48], sizes = [16, 16], strides = [1, 1]} : vector<16x64xbf16> to vector<16x16xbf16>
    %83 = vector.extract_strided_slice %11 {offsets = [0, 48], sizes = [16, 16], strides = [1, 1]} : vector<16x64xbf16> to vector<16x16xbf16>
    %cst_29 = arith.constant dense<0.000000e+00> : vector<16x16xf32>
    %84 = tpu.matmul %81, %82, %cst_29 {dimension_numbers = #tpu.dot_dimension_numbers<[1], [1], [0], [0], [0, 0, 1, 0], [], []>} : vector<16x16xbf16>, vector<16x16xbf16>, vector<16x16xf32> -> vector<16x16xf32>
    %cst_30 = arith.constant 2.500000e-01 : f32
    %85 = vector.broadcast %cst_30 : f32 to vector<16x16xf32>
    %86 = arith.mulf %84, %85 : vector<16x16xf32>
    %87 = arith.addf %86, %5 : vector<16x16xf32>
    %cst_31 = arith.constant dense<0xFF800000> : vector<16xf32>
    %88 = vector.multi_reduction <maximumf>, %87, %cst_31 [1] : vector<16x16xf32> to vector<16xf32>
    %89 = vector.shape_cast %88 : vector<16xf32> to vector<16x1xf32>
    %90 = vector.broadcast %89 : vector<16x1xf32> to vector<16x16xf32>
    %91 = arith.subf %87, %90 : vector<16x16xf32>
    %92 = math.exp %91 : vector<16x16xf32>
    %cst_32 = arith.constant dense<0.000000e+00> : vector<16xf32>
    %93 = vector.multi_reduction <add>, %92, %cst_32 [1] : vector<16x16xf32> to vector<16xf32>
    %94 = vector.shape_cast %93 : vector<16xf32> to vector<16x1xf32>
    %95 = tpu.reciprocal %94 {approx = true} : vector<16x1xf32> -> vector<16x1xf32>
    %96 = vector.broadcast %95 : vector<16x1xf32> to vector<16x16xf32>
    %97 = arith.mulf %92, %96 : vector<16x16xf32>
    %98 = arith.truncf %97 : vector<16x16xf32> to vector<16x16xbf16>
    %cst_33 = arith.constant dense<0.000000e+00> : vector<16x16xf32>
    %99 = tpu.matmul %98, %83, %cst_33 {dimension_numbers = #tpu.dot_dimension_numbers<[1], [0], [0], [1], [0, 0, 1, 1], [], []>} : vector<16x16xbf16>, vector<16x16xbf16>, vector<16x16xf32> -> vector<16x16xf32>
    %100 = arith.truncf %99 : vector<16x16xf32> to vector<16x16xbf16>
    %c0_34 = arith.constant 0 : index
    %c0_35 = arith.constant 0 : index
    %c48 = arith.constant 48 : index
    %101 = vector.load %arg2[%c0_34, %c0_35, %c48] : memref<1x16x64xbf16, #tpu.memory_space<vmem>>, vector<1x16x16xbf16>
    %102 = vector.shape_cast %101 : vector<1x16x16xbf16> to vector<16x16xbf16>
    %103 = vector.shape_cast %100 : vector<16x16xbf16> to vector<1x16x16xbf16>
    tpu.vector_store %arg2[%c0_34, %c0_35, %c48], %103 {strides = array<i32>} : memref<1x16x64xbf16, #tpu.memory_space<vmem>>, vector<1x16x16xbf16>,
    return
  }
  func.func @transform_0(%arg0: i32) -> (i32, i32, i32) {
    %c0_i32 = arith.constant 0 : i32
    %c0_i32_0 = arith.constant 0 : i32
    %c0_i32_1 = arith.constant 0 : i32
    return %arg0, %c0_i32, %c0_i32_0 : i32, i32, i32
  }
  func.func @transform_1(%arg0: i32) -> (i32, i32, i32) {
    %c0_i32 = arith.constant 0 : i32
    %c0_i32_0 = arith.constant 0 : i32
    %c0_i32_1 = arith.constant 0 : i32
    return %arg0, %c0_i32, %c0_i32_0 : i32, i32, i32
  }
}

module attributes {stable_mosaic.version = 11 : i64} {
  func.func @_fused_linear_kernel(%arg0: i32, %arg1: memref<48x64xbf16, #tpu.memory_space<vmem>>, %arg2: memref<64x64xbf16, #tpu.memory_space<vmem>>, %arg3: memref<1x64xf32, #tpu.memory_space<vmem>>, %arg4: memref<48x64xbf16, #tpu.memory_space<vmem>>, %arg5: memref<48x64xbf16, #tpu.memory_space<vmem>>) attributes {dimension_semantics = [#tpu.dimension_semantics<parallel>], iteration_bounds = array<i64: 1>, scalar_prefetch = 0 : i64, scratch_operands = 0 : i64, tpu.core_type = #tpu.core_type<tc>, window_params = [{transform_indices = @transform_0, window_bounds = array<i64: 48, 64>}, {pipeline_mode = #tpu.pipeline_mode<synchronous>, transform_indices = @transform_1, window_bounds = array<i64: 64, 64>}, {pipeline_mode = #tpu.pipeline_mode<synchronous>, transform_indices = @transform_2, window_bounds = array<i64: 1, 64>}, {transform_indices = @transform_3, window_bounds = array<i64: 48, 64>}, {transform_indices = @transform_4, window_bounds = array<i64: 48, 64>}]} {
    %c0 = arith.constant 0 : index
    %c0_0 = arith.constant 0 : index
    %0 = vector.load %arg1[%c0, %c0_0] : memref<48x64xbf16, #tpu.memory_space<vmem>>, vector<48x64xbf16>
    %c0_1 = arith.constant 0 : index
    %c0_2 = arith.constant 0 : index
    %1 = vector.load %arg2[%c0_1, %c0_2] : memref<64x64xbf16, #tpu.memory_space<vmem>>, vector<64x64xbf16>
    %cst = arith.constant dense<0.000000e+00> : vector<48x64xf32>
    %2 = tpu.matmul %0, %1, %cst {dimension_numbers = #tpu.dot_dimension_numbers<[1], [0], [0], [1], [0, 0, 1, 1], [], []>} : vector<48x64xbf16>, vector<64x64xbf16>, vector<48x64xf32> -> vector<48x64xf32>
    %c0_3 = arith.constant 0 : index
    %c0_4 = arith.constant 0 : index
    %3 = vector.load %arg3[%c0_3, %c0_4] : memref<1x64xf32, #tpu.memory_space<vmem>>, vector<1x64xf32>
    %4 = vector.broadcast %3 : vector<1x64xf32> to vector<48x64xf32>
    %5 = arith.addf %2, %4 : vector<48x64xf32>
    %c0_5 = arith.constant 0 : index
    %c0_6 = arith.constant 0 : index
    %6 = vector.load %arg4[%c0_5, %c0_6] : memref<48x64xbf16, #tpu.memory_space<vmem>>, vector<48x64xbf16>
    %7 = arith.extf %6 : vector<48x64xbf16> to vector<48x64xf32>
    %8 = arith.addf %5, %7 : vector<48x64xf32>
    %9 = arith.truncf %8 : vector<48x64xf32> to vector<48x64xbf16>
    %c0_7 = arith.constant 0 : index
    %c0_8 = arith.constant 0 : index
    %10 = vector.load %arg5[%c0_7, %c0_8] : memref<48x64xbf16, #tpu.memory_space<vmem>>, vector<48x64xbf16>
    tpu.vector_store %arg5[%c0_7, %c0_8], %9 {strides = array<i32>} : memref<48x64xbf16, #tpu.memory_space<vmem>>, vector<48x64xbf16>,
    return
  }
  func.func @transform_0(%arg0: i32) -> (i32, i32) {
    %c0_i32 = arith.constant 0 : i32
    %c0_i32_0 = arith.constant 0 : i32
    return %arg0, %c0_i32 : i32, i32
  }
  func.func @transform_1(%arg0: i32) -> (i32, i32) {
    %c0_i32 = arith.constant 0 : i32
    %c0_i32_0 = arith.constant 0 : i32
    %c0_i32_1 = arith.constant 0 : i32
    return %c0_i32, %c0_i32_0 : i32, i32
  }
  func.func @transform_2(%arg0: i32) -> (i32, i32) {
    %c0_i32 = arith.constant 0 : i32
    %c0_i32_0 = arith.constant 0 : i32
    %c0_i32_1 = arith.constant 0 : i32
    return %c0_i32, %c0_i32_0 : i32, i32
  }
  func.func @transform_3(%arg0: i32) -> (i32, i32) {
    %c0_i32 = arith.constant 0 : i32
    %c0_i32_0 = arith.constant 0 : i32
    return %arg0, %c0_i32 : i32, i32
  }
  func.func @transform_4(%arg0: i32) -> (i32, i32) {
    %c0_i32 = arith.constant 0 : i32
    %c0_i32_0 = arith.constant 0 : i32
    return %arg0, %c0_i32 : i32, i32
  }
}

module attributes {stable_mosaic.version = 11 : i64} {
  func.func @_fused_linear_kernel(%arg0: i32, %arg1: memref<48x64xbf16, #tpu.memory_space<vmem>>, %arg2: memref<1x64xf32, #tpu.memory_space<vmem>>, %arg3: memref<1x64xf32, #tpu.memory_space<vmem>>, %arg4: memref<64x256xbf16, #tpu.memory_space<vmem>>, %arg5: memref<1x256xf32, #tpu.memory_space<vmem>>, %arg6: memref<48x256xbf16, #tpu.memory_space<vmem>>) attributes {dimension_semantics = [#tpu.dimension_semantics<parallel>], iteration_bounds = array<i64: 1>, scalar_prefetch = 0 : i64, scratch_operands = 0 : i64, tpu.core_type = #tpu.core_type<tc>, window_params = [{transform_indices = @transform_0, window_bounds = array<i64: 48, 64>}, {pipeline_mode = #tpu.pipeline_mode<synchronous>, transform_indices = @transform_1, window_bounds = array<i64: 1, 64>}, {pipeline_mode = #tpu.pipeline_mode<synchronous>, transform_indices = @transform_2, window_bounds = array<i64: 1, 64>}, {pipeline_mode = #tpu.pipeline_mode<synchronous>, transform_indices = @transform_3, window_bounds = array<i64: 64, 256>}, {pipeline_mode = #tpu.pipeline_mode<synchronous>, transform_indices = @transform_4, window_bounds = array<i64: 1, 256>}, {transform_indices = @transform_5, window_bounds = array<i64: 48, 256>}]} {
    %c0 = arith.constant 0 : index
    %c0_0 = arith.constant 0 : index
    %0 = vector.load %arg1[%c0, %c0_0] : memref<48x64xbf16, #tpu.memory_space<vmem>>, vector<48x64xbf16>
    %1 = arith.extf %0 : vector<48x64xbf16> to vector<48x64xf32>
    %cst = arith.constant dense<0.000000e+00> : vector<48xf32>
    %2 = vector.multi_reduction <add>, %1, %cst [1] : vector<48x64xf32> to vector<48xf32>
    %3 = vector.shape_cast %2 : vector<48xf32> to vector<48x1xf32>
    %cst_1 = arith.constant 6.400000e+01 : f32
    %4 = vector.broadcast %cst_1 : f32 to vector<48x1xf32>
    %5 = arith.divf %3, %4 : vector<48x1xf32>
    %6 = vector.broadcast %5 : vector<48x1xf32> to vector<48x64xf32>
    %7 = arith.subf %1, %6 : vector<48x64xf32>
    %8 = arith.mulf %7, %7 : vector<48x64xf32>
    %cst_2 = arith.constant dense<0.000000e+00> : vector<48xf32>
    %9 = vector.multi_reduction <add>, %8, %cst_2 [1] : vector<48x64xf32> to vector<48xf32>
    %10 = vector.shape_cast %9 : vector<48xf32> to vector<48x1xf32>
    %cst_3 = arith.constant 6.400000e+01 : f32
    %11 = vector.broadcast %cst_3 : f32 to vector<48x1xf32>
    %12 = arith.divf %10, %11 : vector<48x1xf32>
    %13 = vector.broadcast %5 : vector<48x1xf32> to vector<48x64xf32>
    %14 = arith.subf %1, %13 : vector<48x64xf32>
    %cst_4 = arith.constant 9.99999974E-6 : f32
    %15 = vector.broadcast %cst_4 : f32 to vector<48x1xf32>
    %16 = arith.addf %12, %15 : vector<48x1xf32>
    %17 = math.rsqrt %16 : vector<48x1xf32>
    %18 = vector.broadcast %17 : vector<48x1xf32> to vector<48x64xf32>
    %19 = arith.mulf %14, %18 : vector<48x64xf32>
    %c0_5 = arith.constant 0 : index
    %c0_6 = arith.constant 0 : index
    %20 = vector.load %arg2[%c0_5, %c0_6] : memref<1x64xf32, #tpu.memory_space<vmem>>, vector<1x64xf32>
    %21 = vector.broadcast %20 : vector<1x64xf32> to vector<48x64xf32>
    %22 = arith.mulf %19, %21 : vector<48x64xf32>
    %c0_7 = arith.constant 0 : index
    %c0_8 = arith.constant 0 : index
    %23 = vector.load %arg3[%c0_7, %c0_8] : memref<1x64xf32, #tpu.memory_space<vmem>>, vector<1x64xf32>
    %24 = vector.broadcast %23 : vector<1x64xf32> to vector<48x64xf32>
    %25 = arith.addf %22, %24 : vector<48x64xf32>
    %26 = arith.truncf %25 : vector<48x64xf32> to vector<48x64xbf16>
    %c0_9 = arith.constant 0 : index
    %c0_10 = arith.constant 0 : index
    %27 = vector.load %arg4[%c0_9, %c0_10] : memref<64x256xbf16, #tpu.memory_space<vmem>>, vector<64x256xbf16>
    %cst_11 = arith.constant dense<0.000000e+00> : vector<48x256xf32>
    %28 = tpu.matmul %26, %27, %cst_11 {dimension_numbers = #tpu.dot_dimension_numbers<[1], [0], [0], [1], [0, 0, 1, 1], [], []>} : vector<48x64xbf16>, vector<64x256xbf16>, vector<48x256xf32> -> vector<48x256xf32>
    %c0_12 = arith.constant 0 : index
    %c0_13 = arith.constant 0 : index
    %29 = vector.load %arg5[%c0_12, %c0_13] : memref<1x256xf32, #tpu.memory_space<vmem>>, vector<1x256xf32>
    %30 = vector.broadcast %29 : vector<1x256xf32> to vector<48x256xf32>
    %31 = arith.addf %28, %30 : vector<48x256xf32>
    %cst_14 = arith.constant 1.702000e+00 : f32
    %32 = vector.broadcast %cst_14 : f32 to vector<48x256xf32>
    %33 = arith.mulf %32, %31 : vector<48x256xf32>
    %34 = arith.negf %33 : vector<48x256xf32>
    %35 = math.exp %34 : vector<48x256xf32>
    %cst_15 = arith.constant 1.000000e+00 : f32
    %36 = vector.broadcast %cst_15 : f32 to vector<48x256xf32>
    %37 = arith.addf %36, %35 : vector<48x256xf32>
    %38 = arith.divf %36, %37 : vector<48x256xf32>
    %39 = arith.mulf %31, %38 : vector<48x256xf32>
    %40 = arith.truncf %39 : vector<48x256xf32> to vector<48x256xbf16>
    %c0_16 = arith.constant 0 : index
    %c0_17 = arith.constant 0 : index
    %41 = vector.load %arg6[%c0_16, %c0_17] : memref<48x256xbf16, #tpu.memory_space<vmem>>, vector<48x256xbf16>
    tpu.vector_store %arg6[%c0_16, %c0_17], %40 {strides = array<i32>} : memref<48x256xbf16, #tpu.memory_space<vmem>>, vector<48x256xbf16>,
    return
  }
  func.func @transform_0(%arg0: i32) -> (i32, i32) {
    %c0_i32 = arith.constant 0 : i32
    %c0_i32_0 = arith.constant 0 : i32
    return %arg0, %c0_i32 : i32, i32
  }
  func.func @transform_1(%arg0: i32) -> (i32, i32) {
    %c0_i32 = arith.constant 0 : i32
    %c0_i32_0 = arith.constant 0 : i32
    %c0_i32_1 = arith.constant 0 : i32
    return %c0_i32, %c0_i32_0 : i32, i32
  }
  func.func @transform_2(%arg0: i32) -> (i32, i32) {
    %c0_i32 = arith.constant 0 : i32
    %c0_i32_0 = arith.constant 0 : i32
    %c0_i32_1 = arith.constant 0 : i32
    return %c0_i32, %c0_i32_0 : i32, i32
  }
  func.func @transform_3(%arg0: i32) -> (i32, i32) {
    %c0_i32 = arith.constant 0 : i32
    %c0_i32_0 = arith.constant 0 : i32
    %c0_i32_1 = arith.constant 0 : i32
    return %c0_i32, %c0_i32_0 : i32, i32
  }
  func.func @transform_4(%arg0: i32) -> (i32, i32) {
    %c0_i32 = arith.constant 0 : i32
    %c0_i32_0 = arith.constant 0 : i32
    %c0_i32_1 = arith.constant 0 : i32
    return %c0_i32, %c0_i32_0 : i32, i32
  }
  func.func @transform_5(%arg0: i32) -> (i32, i32) {
    %c0_i32 = arith.constant 0 : i32
    %c0_i32_0 = arith.constant 0 : i32
    return %arg0, %c0_i32 : i32, i32
  }
}

module attributes {stable_mosaic.version = 11 : i64} {
  func.func @_fused_linear_kernel(%arg0: i32, %arg1: memref<48x256xbf16, #tpu.memory_space<vmem>>, %arg2: memref<256x64xbf16, #tpu.memory_space<vmem>>, %arg3: memref<1x64xf32, #tpu.memory_space<vmem>>, %arg4: memref<48x64xbf16, #tpu.memory_space<vmem>>, %arg5: memref<48x64xbf16, #tpu.memory_space<vmem>>) attributes {dimension_semantics = [#tpu.dimension_semantics<parallel>], iteration_bounds = array<i64: 1>, scalar_prefetch = 0 : i64, scratch_operands = 0 : i64, tpu.core_type = #tpu.core_type<tc>, window_params = [{transform_indices = @transform_0, window_bounds = array<i64: 48, 256>}, {pipeline_mode = #tpu.pipeline_mode<synchronous>, transform_indices = @transform_1, window_bounds = array<i64: 256, 64>}, {pipeline_mode = #tpu.pipeline_mode<synchronous>, transform_indices = @transform_2, window_bounds = array<i64: 1, 64>}, {transform_indices = @transform_3, window_bounds = array<i64: 48, 64>}, {transform_indices = @transform_4, window_bounds = array<i64: 48, 64>}]} {
    %c0 = arith.constant 0 : index
    %c0_0 = arith.constant 0 : index
    %0 = vector.load %arg1[%c0, %c0_0] : memref<48x256xbf16, #tpu.memory_space<vmem>>, vector<48x256xbf16>
    %c0_1 = arith.constant 0 : index
    %c0_2 = arith.constant 0 : index
    %1 = vector.load %arg2[%c0_1, %c0_2] : memref<256x64xbf16, #tpu.memory_space<vmem>>, vector<256x64xbf16>
    %cst = arith.constant dense<0.000000e+00> : vector<48x64xf32>
    %2 = tpu.matmul %0, %1, %cst {dimension_numbers = #tpu.dot_dimension_numbers<[1], [0], [0], [1], [0, 0, 1, 1], [], []>} : vector<48x256xbf16>, vector<256x64xbf16>, vector<48x64xf32> -> vector<48x64xf32>
    %c0_3 = arith.constant 0 : index
    %c0_4 = arith.constant 0 : index
    %3 = vector.load %arg3[%c0_3, %c0_4] : memref<1x64xf32, #tpu.memory_space<vmem>>, vector<1x64xf32>
    %4 = vector.broadcast %3 : vector<1x64xf32> to vector<48x64xf32>
    %5 = arith.addf %2, %4 : vector<48x64xf32>
    %c0_5 = arith.constant 0 : index
    %c0_6 = arith.constant 0 : index
    %6 = vector.load %arg4[%c0_5, %c0_6] : memref<48x64xbf16, #tpu.memory_space<vmem>>, vector<48x64xbf16>
    %7 = arith.extf %6 : vector<48x64xbf16> to vector<48x64xf32>
    %8 = arith.addf %5, %7 : vector<48x64xf32>
    %9 = arith.truncf %8 : vector<48x64xf32> to vector<48x64xbf16>
    %c0_7 = arith.constant 0 : index
    %c0_8 = arith.constant 0 : index
    %10 = vector.load %arg5[%c0_7, %c0_8] : memref<48x64xbf16, #tpu.memory_space<vmem>>, vector<48x64xbf16>
    tpu.vector_store %arg5[%c0_7, %c0_8], %9 {strides = array<i32>} : memref<48x64xbf16, #tpu.memory_space<vmem>>, vector<48x64xbf16>,
    return
  }
  func.func @transform_0(%arg0: i32) -> (i32, i32) {
    %c0_i32 = arith.constant 0 : i32
    %c0_i32_0 = arith.constant 0 : i32
    return %arg0, %c0_i32 : i32, i32
  }
  func.func @transform_1(%arg0: i32) -> (i32, i32) {
    %c0_i32 = arith.constant 0 : i32
    %c0_i32_0 = arith.constant 0 : i32
    %c0_i32_1 = arith.constant 0 : i32
    return %c0_i32, %c0_i32_0 : i32, i32
  }
  func.func @transform_2(%arg0: i32) -> (i32, i32) {
    %c0_i32 = arith.constant 0 : i32
    %c0_i32_0 = arith.constant 0 : i32
    %c0_i32_1 = arith.constant 0 : i32
    return %c0_i32, %c0_i32_0 : i32, i32
  }
  func.func @transform_3(%arg0: i32) -> (i32, i32) {
    %c0_i32 = arith.constant 0 : i32
    %c0_i32_0 = arith.constant 0 : i32
    return %arg0, %c0_i32 : i32, i32
  }
  func.func @transform_4(%arg0: i32) -> (i32, i32) {
    %c0_i32 = arith.constant 0 : i32
    %c0_i32_0 = arith.constant 0 : i32
    return %arg0, %c0_i32 : i32, i32
  }
}

module attributes {stable_mosaic.version = 11 : i64} {
  func.func @_clip_logits_kernel(%arg0: memref<2x64xbf16, #tpu.memory_space<vmem>>, %arg1: memref<3x64xbf16, #tpu.memory_space<vmem>>, %arg2: memref<1xf32, #tpu.memory_space<smem>>, %arg3: memref<2x3xf32, #tpu.memory_space<vmem>>) attributes {dimension_semantics = [], scalar_prefetch = 0 : i64, scratch_operands = 0 : i64, tpu.core_type = #tpu.core_type<tc>} {
    %c0 = arith.constant 0 : index
    %c0_0 = arith.constant 0 : index
    %0 = vector.load %arg0[%c0, %c0_0] : memref<2x64xbf16, #tpu.memory_space<vmem>>, vector<2x64xbf16>
    %1 = arith.extf %0 : vector<2x64xbf16> to vector<2x64xf32>
    %c0_1 = arith.constant 0 : index
    %c0_2 = arith.constant 0 : index
    %2 = vector.load %arg1[%c0_1, %c0_2] : memref<3x64xbf16, #tpu.memory_space<vmem>>, vector<3x64xbf16>
    %3 = arith.extf %2 : vector<3x64xbf16> to vector<3x64xf32>
    %4 = arith.mulf %1, %1 : vector<2x64xf32>
    %cst = arith.constant dense<0.000000e+00> : vector<2xf32>
    %5 = vector.multi_reduction <add>, %4, %cst [1] : vector<2x64xf32> to vector<2xf32>
    %6 = vector.shape_cast %5 : vector<2xf32> to vector<2x1xf32>
    %7 = math.rsqrt %6 : vector<2x1xf32>
    %8 = vector.broadcast %7 : vector<2x1xf32> to vector<2x64xf32>
    %9 = arith.mulf %1, %8 : vector<2x64xf32>
    %10 = arith.mulf %3, %3 : vector<3x64xf32>
    %cst_3 = arith.constant dense<0.000000e+00> : vector<3xf32>
    %11 = vector.multi_reduction <add>, %10, %cst_3 [1] : vector<3x64xf32> to vector<3xf32>
    %12 = vector.shape_cast %11 : vector<3xf32> to vector<3x1xf32>
    %13 = math.rsqrt %12 : vector<3x1xf32>
    %14 = vector.broadcast %13 : vector<3x1xf32> to vector<3x64xf32>
    %15 = arith.mulf %3, %14 : vector<3x64xf32>
    %cst_4 = arith.constant dense<0.000000e+00> : vector<2x3xf32>
    %16 = tpu.matmul %9, %15, %cst_4 {dimension_numbers = #tpu.dot_dimension_numbers<[1], [1], [0], [0], [0, 0, 1, 0], [], []>} : vector<2x64xf32>, vector<3x64xf32>, vector<2x3xf32> -> vector<2x3xf32>
    %c0_5 = arith.constant 0 : index
    %17 = memref.load %arg2[%c0_5] : memref<1xf32, #tpu.memory_space<smem>>
    %18 = vector.broadcast %17 : f32 to vector<2x3xf32>
    %19 = arith.mulf %18, %16 : vector<2x3xf32>
    %c0_6 = arith.constant 0 : index
    %c0_7 = arith.constant 0 : index
    %20 = vector.load %arg3[%c0_6, %c0_7] : memref<2x3xf32, #tpu.memory_space<vmem>>, vector<2x3xf32>
    tpu.vector_store %arg3[%c0_6, %c0_7], %19 {strides = array<i32>} : memref<2x3xf32, #tpu.memory_space<vmem>>, vector<2x3xf32>,
    return
  }
}

</mosaic_0001>

<bundles_post_ra>
// kernel: custom_clip_forward.25
= control target key start
LH: loop header
LB: loop body
LE: loop exit
PB: predicated region body
PF: predicated region fallthrough
CT: control target
= control target key end

     0   :  { %vm130_vm0 = vcmask 523264   ;;  %vm179_vm1 = vcmask 519168   ;;  %s371_s1 = inlined_call_operand.vmem [shape: bf16[192,64], index: 1, kind: input, shape index: {}]   ;;  %s372_s0 = inlined_call_operand.vmem [shape: bf16[32,192], index: 0, kind: input, shape index: {}]   ;;  %s373_s2 = inlined_call_operand.vmem [shape: bf16[32,64], index: 2, kind: output, shape index: {}]  }
   0x1   :  { %v265_v0 = vld [vmem:[%s371_s1 + $0x38] sm:$0xff]  ;;  %v264_v2 = vld [vmem:[%s371_s1 + $0x30] sm:$0xff]  ;;  %v263_v4 = vld [vmem:[%s371_s1 + $0x28] sm:$0xff] }
   0x2   :  { %v269_v1 = vld [vmem:[%s371_s1 + $0x58] sm:$0xff]  ;;  %137 = vmatpush.bf16.msra.mxu0 %v265_v0  ;;  %270 = vmatpush.bf16.msra.mxu2 %v265_v0  ;;  %v268_v3 = vld [vmem:[%s371_s1 + $0x50] sm:$0xff]  ;;  %v267_v5 = vld [vmem:[%s371_s1 + $0x48] sm:$0xff] }
   0x3   :  { %160 = vmatpush.bf16.msra.mxu1 %v269_v1  ;;  %v262_v6 = vld [vmem:[%s371_s1 + $0x20] sm:$0xff]  ;;  %v192_v9 = vld [vmem:[%s372_s0 + $0x8] sm:$0xf0]  ;;  %v261_v11 = vld [vmem:[%s371_s1 + $0x18] sm:$0xff] }
   0x4   :  { %v266_v7 = vld [vmem:[%s371_s1 + $0x40] sm:$0xff]  ;;  %v260_v12 = vld [vmem:[%s371_s1 + $0x10] sm:$0xff]  ;;  %v259_v13 = vld [vmem:[%s371_s1 + $0x8] sm:$0xff] }
   0x5   :  { %v254_v8 = vld [vmem:[%s372_s0 + $0x4] sm:$0xf]  ;;  %v190_v15 = vld [vmem:[%s372_s0] sm:$0xf]  ;;  %v255_v16 = vld [vmem:[%s372_s0 + $0x4] sm:$0xf0] }
   0x6   :  { %138 = vmatpush.bf16.msra.mxu0 %v264_v2  ;;  %271 = vmatpush.bf16.msra.mxu2 %v264_v2  ;;  %v195_v10 = vor.u32 %v254_v8, %v192_v9  ;;  %v258_v14 = vld [vmem:[%s371_s1] sm:$0xff]  ;;  %v198_v17 = vld [vmem:[%s372_s0 + $0x10] sm:$0xf]  ;;  %v257_v18 = vld [vmem:[%s372_s0 + $0x14] sm:$0xf0]  ;;  %v191_v21 = vor.u32 %v255_v16, %v190_v15 }
   0x7   :  { %161 = vmatpush.bf16.msra.mxu1 %v268_v3  ;;  %v256_v19 = vld [vmem:[%s372_s0 + $0x14] sm:$0xf]  ;;  %v200_v20 = vld [vmem:[%s372_s0 + $0x18] sm:$0xf0]  ;;  %v199_v22 = vor.u32 %v257_v18, %v198_v17 }
   0x8   :  { %v203_v23 = vor.u32 %v256_v19, %v200_v20 }
   0xa   :  { %139 = vmatpush.bf16.msra.mxu0 %v263_v4  ;;  %272 = vmatpush.bf16.msra.mxu2 %v263_v4 }
   0xb   :  { %162 = vmatpush.bf16.msra.mxu1 %v267_v5 }
   0xe   :  { %140 = vmatpush.bf16.msra.mxu0 %v262_v6  ;;  %273 = vmatpush.bf16.msra.mxu2 %v262_v6 }
   0xf   :  { %163 = vmatpush.bf16.msra.mxu1 %v266_v7 }
  0x12   :  { %252 = vmatmul.msk.bf16.vlgmr.msra.gmra.mxu1 %vm130_vm0, %v195_v10  ;;  %141 = vmatpush.bf16.msra.mxu0 %v261_v11 }
  0x13   :  { %274 = vmatpush.bf16.msra.mxu2 %v261_v11 }
  0x16   :  { %142 = vmatpush.bf16.msra.mxu0 %v260_v12 }
  0x17   :  { %275 = vmatpush.bf16.msra.mxu2 %v260_v12 }
  0x1a   :  { %143 = vmatpush.bf16.msra.mxu0 %v259_v13 }
  0x1b   :  { %276 = vmatpush.bf16.msra.mxu2 %v259_v13 }
  0x1e   :  { %144 = vmatpush.bf16.msra.mxu0 %v258_v14 }
  0x1f   :  { %277 = vmatpush.bf16.msra.mxu2 %v258_v14 }
  0x21   :  { %145 = vmatmul.bf16.vlgmr.msra.gmra.mxu0 %v191_v21 }
  0x22   :  { %150 = vmatmul.bf16.vlgmr.msra.gmra.mxu2 %v199_v22  ;;  %253 = vmatmul.msk.bf16.gmra.mxu1 %vm130_vm0, %v203_v23 }
  0x8f   :  { %v165_v24 = vpop.f32.mrf.mxu1 }
  0x97   :  { %v167_v25 = vpop.f32.mrf.mxu1 }
  0x9e   :  { %v146_v26 = vpop.f32.mrf.mxu0 }
  0x9f   :  { %v166_v27 = vadd.f32 %v165_v24, %v146_v26  ;;  %v170_v29 = vpop.f32.mrf.mxu1 }
  0xa1   :  { %v175_v28 = vpack.c.bf16 %v166_v27, %v166_v27 }
  0xa3   :  { %180 = vst.msk [vmem:[%s373_s2] sm:$0xf] %vm179_vm1, %v175_v28 }
  0xa5   :  { %v151_v30 = vpop.f32.mrf.mxu2 }
  0xa6   :  { %v171_v31 = vadd.f32 %v170_v29, %v151_v30  ;;  %v148_v32 = vpop.f32.mrf.mxu0 }
  0xa7   :  { %v168_v33 = vadd.f32 %v167_v25, %v148_v32  ;;  %v172_v36 = vpop.f32.mrf.mxu1 }
  0xa8   :  { %v177_v34 = vpack.c.bf16 %v171_v31, %v171_v31 }
  0xa9   :  { %v176_v35 = vpack.c.bf16 %v168_v33, %v168_v33 }
  0xaa   :  { %182 = vst.msk [vmem:[%s373_s2 + $0x8] sm:$0xf] %vm179_vm1, %v177_v34 }
  0xab   :  { %181 = vst.msk [vmem:[%s373_s2 + $0x4] sm:$0xf] %vm179_vm1, %v176_v35 }
  0xad   :  { %v153_v37 = vpop.f32.mrf.mxu2 }
  0xae   :  { %v173_v38 = vadd.f32 %v172_v36, %v153_v37 }
  0xb0   :  { %v178_v39 = vpack.c.bf16 %v173_v38, %v173_v38 }
  0xb2   :  { %183 = vst.msk [vmem:[%s373_s2 + $0xc] sm:$0xf] %vm179_vm1, %v178_v39 }

// kernel: custom_clip_forward.27
= control target key start
LH: loop header
LB: loop body
LE: loop exit
PB: predicated region body
PF: predicated region fallthrough
CT: control target
= control target key end

     0   :  { %vm31_vm0 = vcmask 523264   ;;  %v374_v13 = vmov 64.0   ;;  %s571_s0 = inlined_call_operand.vmem [shape: bf16[40,64], index: 0, kind: input, shape index: {}]   ;;  %s572_s1 = inlined_call_operand.vmem [shape: f32[1,64], index: 1, kind: input, shape index: {}]   ;;  %s573_s2 = inlined_call_operand.vmem [shape: f32[1,64], index: 2, kind: input, shape index: {}]   ;;  %s574_s3 = inlined_call_operand.vmem [shape: bf16[64,192], index: 3, kind: input, shape index: {}]   ;;  %s575_s4 = inlined_call_operand.vmem [shape: f32[1,192], index: 4, kind: input, shape index: {}]   ;;  %s576_s5 = inlined_call_operand.vmem [shape: bf16[40,192], index: 5, kind: output, shape index: {}]  }
   0x1   :  { %v25_v0 = vld [vmem:[%s571_s0 + $0x10] sm:$0xf]  ;;  %v350_v1 = vld [vmem:[%s571_s0 + $0x8] sm:$0xff]   ;;  %v343_v4 = vld [vmem:[%s571_s0] sm:$0xff]   ;;  %362 = vrcp.f32 %v374_v13 }
   0x2   :  { %v30_v2 = vunpack.c.l.bf16 %v25_v0  ;;  %v348_v3 = vunpack.c.l.bf16 %v350_v1  ;;  %v345_v5 = vunpack.c.h.bf16 %v343_v4  ;;  %v349_v9 = vunpack.c.h.bf16 %v350_v1  ;;  %v322_v45 = vld [vmem:[%s574_s3 + $0x30] sm:$0xf]  ;;  %v341_v46 = vld [vmem:[%s574_s3 + $0x34] sm:$0xf0]  ;;  %v340_v47 = vld [vmem:[%s574_s3 + $0x34] sm:$0xf] }
   0x3   :  { %v344_v10 = vunpack.c.l.bf16 %v343_v4  ;;  %v323_v48 = vor.u32 %v341_v46, %v322_v45  ;;  %v324_v49 = vld [vmem:[%s574_s3 + $0x38] sm:$0xf0]  ;;  %v314_v51 = vld [vmem:[%s574_s3 + $0x20] sm:$0xf]  ;;  %v339_v52 = vld [vmem:[%s574_s3 + $0x24] sm:$0xf0] }
   0x4   :  { %v44_v6 = vsel %vm31_vm0, %v30_v2, 0.0  ;;  %v38_v7 = vsel %vm31_vm0, %v348_v3, 0.0  ;;  %v35_v8 = vsel %vm31_vm0, %v345_v5, 0.0  ;;  %v41_v11 = vsel %vm31_vm0, %v349_v9, 0.0  ;;  %v338_v53 = vld [vmem:[%s574_s3 + $0x24] sm:$0xf] }
   0x5   :  { %45 = vadd.xlane.f32.xlu1 %v44_v6  ;;  %39 = vadd.xlane.f32.xlu0 %v38_v7  ;;  %v32_v12 = vsel %vm31_vm0, %v344_v10, 0.0  ;;  %v327_v50 = vor.u32 %v340_v47, %v324_v49  ;;  %v315_v54 = vor.u32 %v339_v52, %v314_v51  ;;  %v316_v55 = vld [vmem:[%s574_s3 + $0x28] sm:$0xf0]  ;;  %v306_v57 = vld [vmem:[%s574_s3 + $0x10] sm:$0xf] }
   0x6   :  { %36 = vadd.xlane.f32.xlu2 %v35_v8  ;;  %351 = vmatpush.bf16.msra.mxu2 %v323_v48  ;;  %v319_v56 = vor.u32 %v338_v53, %v316_v55  ;;  %v337_v58 = vld [vmem:[%s574_s3 + $0x14] sm:$0xf0]  ;;  %v336_v59 = vld [vmem:[%s574_s3 + $0x14] sm:$0xf]  ;;  %v308_v61 = vld [vmem:[%s574_s3 + $0x18] sm:$0xf0] }
   0x7   :  { %v363_v14 = vpop.eup %362  ;;  %237 = vmatpush.bf16.msra.mxu0 %v323_v48  ;;  %355 = vmatpush.bf16.msra.mxu3 %v327_v50  ;;  %v307_v60 = vor.u32 %v337_v58, %v306_v57  ;;  %v311_v0 = vor.u32 %v336_v59, %v308_v61  ;;  %v335_v4 = vld [vmem:[%s574_s3 + $0x4] sm:$0xf0]  ;;  %v300_v8 = vld [vmem:[%s574_s3 + $0x8] sm:$0xf0]  ;;  %v360_v48 = vld [vmem:[%s572_s1] ss:$0 sm:$0xff] }
   0x8   :  { %v48_v15 = vmul.f32 64.0, %v363_v14  ;;  %vm52_vm1 = vweird.f32 %v363_v14  ;;  %260 = vmatpush.bf16.msra.mxu1 %v327_v50  ;;  %v361_v57 = vld [vmem:[%s573_s2] ss:$0 sm:$0xff] }
   0xa   :  { %v49_v16 = vsub.f32 1.0, %v48_v15  ;;  %352 = vmatpush.bf16.msra.mxu2 %v315_v54 }
   0xb   :  { %238 = vmatpush.bf16.msra.mxu0 %v315_v54  ;;  %356 = vmatpush.bf16.msra.mxu3 %v319_v56 }
   0xc   :  { %v50_v17 = vmul.f32 %v363_v14, %v49_v16  ;;  %261 = vmatpush.bf16.msra.mxu1 %v319_v56 }
   0xd   :  { %42 = vadd.xlane.f32.xlu0 %v41_v11  ;;  %33 = vadd.xlane.f32.xlu1 %v32_v12 }
   0xe   :  { %v51_v18 = vadd.f32 %v363_v14, %v50_v17  ;;  %353 = vmatpush.bf16.msra.mxu2 %v307_v60 }
   0xf   :  { %239 = vmatpush.bf16.msra.mxu0 %v307_v60  ;;  %357 = vmatpush.bf16.msra.mxu3 %v311_v0 }
  0x10   :  { %v419_v19 = vsel %vm52_vm1, %v363_v14, %v51_v18  ;;  %262 = vmatpush.bf16.msra.mxu1 %v311_v0 }
  0x78   :  { %v46_v20 = vpop.xlane.xlu1 %45  ;;  %v40_v21 = vpop.xlane.xlu0 %39 }
  0x79   :  { %v58_v22 = vmul.f32 %v419_v19, %v46_v20  ;;  %v56_v23 = vmul.f32 %v419_v19, %v40_v21  ;;  %v37_v28 = vpop.xlane.xlu2 %36 }
  0x7a   :  { %v55_v35 = vmul.f32 %v419_v19, %v37_v28 }
  0x7b   :  { %v423_v24 = vsub.f32 %v30_v2, %v58_v22  ;;  %v425_v25 = vsub.f32 %v348_v3, %v56_v23  ;;  %v298_v3 = vld [vmem:[%s574_s3] sm:$0xf] }
  0x7c   :  { %v442_v39 = vsub.f32 %v345_v5, %v55_v35  ;;  %v334_v5 = vld [vmem:[%s574_s3 + $0x4] sm:$0xf]  ;;  %v299_v7 = vor.u32 %v335_v4, %v298_v3 }
  0x7d   :  { %v66_v26 = vmul.f32 %v425_v25, %v425_v25  ;;  %v68_v27 = vmul.f32 %v423_v24, %v423_v24 }
  0x7e   :  { %v65_v43 = vmul.f32 %v442_v39, %v442_v39  ;;  %354 = vmatpush.bf16.msra.mxu2 %v299_v7  ;;  %240 = vmatpush.bf16.msra.mxu0 %v299_v7 }
  0x7f   :  { %v75_v29 = vsel %vm31_vm0, %v66_v26, 0.0  ;;  %v81_v30 = vsel %vm31_vm0, %v68_v27, 0.0 }
  0x80   :  { %v43_v31 = vpop.xlane.xlu0 %42  ;;  %76 = vadd.xlane.f32.xlu2 %v75_v29  ;;  %82 = vadd.xlane.f32.xlu1 %v81_v30  ;;  %v34_v32 = vpop.xlane.xlu1 %33  ;;  %v72_v44 = vsel %vm31_vm0, %v65_v43, 0.0 }
  0x81   :  { %v57_v33 = vmul.f32 %v419_v19, %v43_v31  ;;  %v54_v34 = vmul.f32 %v419_v19, %v34_v32 }
  0x83   :  { %v436_v36 = vsub.f32 %v349_v9, %v57_v33  ;;  %v438_v37 = vsub.f32 %v344_v10, %v54_v34  ;;  %v303_v9 = vor.u32 %v334_v5, %v300_v8 }
  0x85   :  { %v67_v38 = vmul.f32 %v436_v36, %v436_v36  ;;  %v64_v40 = vmul.f32 %v438_v37, %v438_v37  ;;  %358 = vmatpush.bf16.msra.mxu3 %v303_v9  ;;  %263 = vmatpush.bf16.msra.mxu1 %v303_v9 }
  0x87   :  { %v78_v41 = vsel %vm31_vm0, %v67_v38, 0.0  ;;  %v69_v42 = vsel %vm31_vm0, %v64_v40, 0.0 }
  0x88   :  { %79 = vadd.xlane.f32.xlu0 %v78_v41  ;;  %70 = vadd.xlane.f32.xlu2 %v69_v42 }
  0x90   :  { %73 = vadd.xlane.f32.xlu0 %v72_v44 }
  0xf3   :  { %v77_v62 = vpop.xlane.xlu2 %76  ;;  %v83_v63 = vpop.xlane.xlu1 %82 }
  0xf4   :  { %v86_v1 = vmul.f32 %v77_v62, %v419_v19  ;;  %v88_v2 = vmul.f32 %v83_v63, %v419_v19 }
  0xf6   :  { %v91_v6 = vadd.f32 1e-05, %v86_v1  ;;  %v501_v10 = vadd.f32 1e-05, %v88_v2 }
  0xf8   :  { %364 = vrsqrt.f32 %v91_v6  ;;  %vm120_vm3 = vweird.f32 %v91_v6  ;;  %vm140_vm11 = vweird.f32 %v501_v10 }
  0xf9   :  { %366 = vrsqrt.f32 %v501_v10 }
  0xfb   :  { %v80_v11 = vpop.xlane.xlu0 %79  ;;  %v71_v12 = vpop.xlane.xlu2 %70 }
  0xfc   :  { %v87_v13 = vmul.f32 %v80_v11, %v419_v19  ;;  %v84_v14 = vmul.f32 %v71_v12, %v419_v19 }
  0xfe   :  { %v365_v15 = vpop.eup %364  ;;  %v92_v16 = vadd.f32 1e-05, %v87_v13  ;;  %v89_v17 = vadd.f32 1e-05, %v84_v14 }
  0xff   :  { %v115_v18 = vmul.f32 %v365_v15, %v91_v6  ;;  %v506_v21 = vpop.eup %366  ;;  %vm121_vm2 = vweird.f32 %v365_v15 }
 0x100   :  { %368 = vrsqrt.f32 %v92_v16  ;;  %v135_v28 = vmul.f32 %v506_v21, %v501_v10  ;;  %vm122_vm4 = vmor %vm120_vm3, %vm121_vm2  ;;  %vm100_vm6 = vweird.f32 %v89_v17  ;;  %vm130_vm8 = vweird.f32 %v92_v16 }
 0x101   :  { %v116_v20 = vmul.f32 %v365_v15, %v115_v18  ;;  %370 = vrsqrt.f32 %v89_v17  ;;  %vm141_vm12 = vweird.f32 %v506_v21  ;;  %vm284_vm2 = vcmask 1043456  }
 0x102   :  { %v136_v35 = vmul.f32 %v506_v21, %v135_v28  ;;  %vm142_vm15 = vmor %vm140_vm11, %vm141_vm12  ;;  %vm285_vm3 = vcmask 523268  }
 0x103   :  { %v117_v22 = vmul.f32 0.5, %v116_v20  ;;  %v74_v23 = vpop.xlane.xlu0 %73 }
 0x104   :  { %v85_v26 = vmul.f32 %v74_v23, %v419_v19  ;;  %v137_v43 = vmul.f32 0.5, %v136_v35 }
 0x105   :  { %v118_v27 = vsub.f32 1.5, %v117_v22 }
 0x106   :  { %v369_v29 = vpop.eup %368  ;;  %v90_v30 = vadd.f32 1e-05, %v85_v26  ;;  %v138_v53 = vsub.f32 1.5, %v137_v43 }
 0x107   :  { %v371_v31 = vpop.eup %370  ;;  %v119_v32 = vmul.f32 %v365_v15, %v118_v27  ;;  %v125_v33 = vmul.f32 %v369_v29, %v92_v16  ;;  %vm131_vm5 = vweird.f32 %v369_v29 }
 0x108   :  { %v95_v34 = vmul.f32 %v371_v31, %v89_v17  ;;  %372 = vrsqrt.f32 %v90_v30  ;;  %vm101_vm7 = vweird.f32 %v371_v31  ;;  %vm132_vm9 = vmor %vm130_vm8, %vm131_vm5  ;;  %v139_v61 = vmul.f32 %v506_v21, %v138_v53 }
 0x109   :  { %v126_v38 = vmul.f32 %v369_v29, %v125_v33  ;;  %v123_v41 = vsel %vm122_vm4, %v365_v15, %v119_v32  ;;  %vm516_vm10 = vmor %vm100_vm6, %vm101_vm7  ;;  %vm110_vm13 = vweird.f32 %v90_v30 }
 0x10a   :  { %v96_v40 = vmul.f32 %v371_v31, %v95_v34  ;;  %v146_v46 = vmul.f32 %v123_v41, %v425_v25  ;;  %v143_v3 = vsel %vm142_vm15, %v506_v21, %v139_v61  ;;  %vm542_vm4 = vmor %vm285_vm3, %vm284_vm2 }
 0x10b   :  { %v127_v19 = vmul.f32 0.5, %v126_v38  ;;  %v148_v8 = vmul.f32 %v143_v3, %v423_v24 }
 0x10c   :  { %v97_v42 = vmul.f32 0.5, %v96_v40  ;;  %v155_v25 = vmul.f32 %v360_v48, %v146_v46 }
 0x10d   :  { %v128_v44 = vsub.f32 1.5, %v127_v19  ;;  %v157_v11 = vmul.f32 %v360_v48, %v148_v8 }
 0x10e   :  { %v373_v45 = vpop.eup %372  ;;  %v98_v47 = vsub.f32 1.5, %v97_v42  ;;  %v164_v63 = vadd.f32 %v361_v57, %v155_v25 }
 0x10f   :  { %v129_v49 = vmul.f32 %v369_v29, %v128_v44  ;;  %v105_v50 = vmul.f32 %v373_v45, %v90_v30  ;;  %vm111_vm14 = vweird.f32 %v373_v45  ;;  %v166_v12 = vadd.f32 %v361_v57, %v157_v11 }
 0x110   :  { %v99_v51 = vmul.f32 %v371_v31, %v98_v47  ;;  %vm112_vm1 = vmor %vm110_vm13, %vm111_vm14 }
 0x111   :  { %v133_v54 = vsel %vm132_vm9, %v369_v29, %v129_v49  ;;  %v106_v55 = vmul.f32 %v373_v45, %v105_v50  ;;  %v169_v13 = vpack.c.bf16 %v166_v12, %v166_v12 }
 0x112   :  { %v147_v56 = vmul.f32 %v133_v54, %v436_v36  ;;  %v103_v58 = vsel %vm516_vm10, %v371_v31, %v99_v51 }
 0x113   :  { %v107_v59 = vmul.f32 0.5, %v106_v55  ;;  %v144_v36 = vmul.f32 %v103_v58, %v438_v37 }
 0x114   :  { %v156_v60 = vmul.f32 %v360_v48, %v147_v56 }
 0x115   :  { %v108_v62 = vsub.f32 1.5, %v107_v59  ;;  %v153_v6 = vmul.f32 %v360_v48, %v144_v36 }
 0x116   :  { %v165_v0 = vadd.f32 %v361_v57, %v156_v60 }
 0x117   :  { %v109_v1 = vmul.f32 %v373_v45, %v108_v62  ;;  %v162_v9 = vadd.f32 %v361_v57, %v153_v6 }
 0x118   :  { %v168_v2 = vpack.c.bf16 %v165_v0, %v164_v63 }
 0x119   :  { %v113_v4 = vsel %vm112_vm1, %v373_v45, %v109_v1 }
 0x11a   :  { %v145_v5 = vmul.f32 %v113_v4, %v442_v39  ;;  %329 = vmatmul.msk.bf16.vlgmr.msra.gmra.mxu2 %vm31_vm0, %v168_v2  ;;  %332 = vmatmul.msk.bf16.vlgmr.msra.gmra.mxu3 %vm31_vm0, %v168_v2  ;;  %v178_v39 = vld [vmem:[%s575_s4] sm:$0x3] }
 0x11b   :  { %v180_v14 = vperm.slane %v178_v39, 0  ;;  %v181_v24 = vperm.slane %v178_v39, 1 }
 0x11c   :  { %v154_v7 = vmul.f32 %v360_v48, %v145_v5 }
 0x11e   :  { %v163_v37 = vadd.f32 %v361_v57, %v154_v7 }
 0x120   :  { %v167_v10 = vpack.c.bf16 %v163_v37, %v162_v9 }
 0x122   :  { %328 = vmatmul.msk.bf16.vlgmr.msra.gmra.mxu0 %vm31_vm0, %v167_v10  ;;  %331 = vmatmul.msk.bf16.vlgmr.msra.gmra.mxu1 %vm31_vm0, %v167_v10 }
 0x12a   :  { %330 = vmatmul.msk.bf16.gmra.mxu2 %vm31_vm0, %v169_v13  ;;  %333 = vmatmul.msk.bf16.gmra.mxu3 %vm31_vm0, %v169_v13 }
 0x19d   :  { %v247_v15 = vpop.f32.mrf.mxu2  ;;  %v270_v16 = vpop.f32.mrf.mxu3 }
 0x19e   :  { %v248_v17 = vadd.f32 %v247_v15, %v180_v14  ;;  %v271_v18 = vadd.f32 %v270_v16, %v181_v24 }
 0x19f   :  { %v242_v21 = vpop.f32.mrf.mxu0  ;;  %v265_v22 = vpop.f32.mrf.mxu1 }
 0x1a0   :  { %v281_v23 = vpack.c.bf16 %v271_v18, %v248_v17  ;;  %v243_v26 = vadd.f32 %v242_v21, %v180_v14  ;;  %v266_v27 = vadd.f32 %v265_v22, %v181_v24 }
 0x1a2   :  { %289 = vst.msk [vmem:[%s576_s5 + $0x10] sm:$0xff] %vm542_vm4, %v281_v23  ;;  %v279_v28 = vpack.c.bf16 %v266_v27, %v243_v26 }
 0x1a4   :  { %287 = vst.msk [vmem:[%s576_s5] sm:$0xff] %vm542_vm4, %v279_v28 }
 0x1a5   :  { %v249_v29 = vpop.f32.mrf.mxu2  ;;  %v272_v30 = vpop.f32.mrf.mxu3 }
 0x1a6   :  { %v250_v31 = vadd.f32 %v249_v29, %v180_v14  ;;  %v273_v32 = vadd.f32 %v272_v30, %v181_v24 }
 0x1a7   :  { %v244_v33 = vpop.f32.mrf.mxu0  ;;  %v267_v34 = vpop.f32.mrf.mxu1 }
 0x1a8   :  { %v282_v35 = vpack.c.bf16 %v273_v32, %v250_v31  ;;  %v245_v38 = vadd.f32 %v244_v33, %v180_v14  ;;  %v268_v40 = vadd.f32 %v267_v34, %v181_v24 }
 0x1aa   :  { %290 = vst.msk [vmem:[%s576_s5 + $0x18] sm:$0xff] %vm542_vm4, %v282_v35  ;;  %v280_v41 = vpack.c.bf16 %v268_v40, %v245_v38 }
 0x1ac   :  { %288 = vst.msk [vmem:[%s576_s5 + $0x8] sm:$0xff] %vm542_vm4, %v280_v41 }
 0x1ad   :  { %v252_v19 = vpop.f32.mrf.mxu2  ;;  %v275_v42 = vpop.f32.mrf.mxu3 }
 0x1ae   :  { %v253_v43 = vadd.f32 %v252_v19, %v180_v14  ;;  %v276_v44 = vadd.f32 %v275_v42, %v181_v24 }
 0x1b0   :  { %v283_v45 = vpack.c.bf16 %v276_v44, %v253_v43 }
 0x1b2   :  { %291 = vst.msk [vmem:[%s576_s5 + $0x20] sm:$0xff] %vm542_vm4, %v283_v45 }
 0x1b5   :  { %v254_v46 = vpop.f32.mrf.mxu2  ;;  %v277_v47 = vpop.f32.mrf.mxu3 }

// kernel: custom_clip_forward.26
= control target key start
LH: loop header
LB: loop body
LE: loop exit
PB: predicated region body
PF: predicated region fallthrough
CT: control target
= control target key end

     0   :  { %s440_s15 = smov 0   ;;  %s494_s0 = inlined_call_operand.vmem [shape: bf16[2,17,64], index: 0, kind: input, shape index: {}]   ;;  %s495_s1 = inlined_call_operand.vmem [shape: bf16[17,64], index: 1, kind: input, shape index: {}]   ;;  %s496_s2 = inlined_call_operand.vmem [shape: f32[1,64], index: 2, kind: input, shape index: {}]   ;;  %s497_s3 = inlined_call_operand.vmem [shape: f32[1,64], index: 3, kind: input, shape index: {}]   ;;  %s498_s4 = inlined_call_operand.vmem [shape: bf16[2,17,64], index: 4, kind: output, shape index: {}]  }
   0x1 LB: > { %s369_s16 = sadd.s32 4294967295, %s412_s15   ;;  %p373_p0 = scmp.ge.s32.totalorder %s412_s15, 1  ;;  %s412_s15 = sphi %s440_s15, %s14_s15  }
   0x2   : > { %p162_p1 = scmp.lt.s32.totalorder %s412_s15, 3 }
   0x4   : > { %p163_p2 = pnand %p373_p0, %p162_p1 }
   0x5   : > { %p188_p3 = scmp.lt.s32.totalorder (!%p163_p2), %s369_s16, 1 }
   0x6   : > { %166 = sbr.rel (%p163_p2) target bundleno = 307 (0x133), region = 36 }
   0xb   : > { %s500_s16 = smov (!%p188_p3, %s369_s16), 1  ;;  %v206_v0 = vld [vmem:[%s495_s1 + $0x8] sm:$0x1]  ;;  %v383_v1 = vld [vmem:[%s495_s1] sm:$0xff]   ;;  %vm220_vm0 = vcmask 516096   ;;  %vm213_vm1 = vcmask 523264  }
   0xc   : > { %s386_s19 = smul.u32 12, %s500_s16  ;;  %v209_v2 = vunpack.c.l.bf16 %v206_v0  ;;  %v385_v3 = vunpack.c.h.bf16 %v383_v1  ;;  %v384_v10 = vunpack.c.l.bf16 %v383_v1  ;;  %v414_v16 = vmov 64.0   ;;  %v396_v55 = vld [vmem:[%s496_s2] ss:$0 sm:$0xff] }
   0xd   : > { %398 = vrcp.f32 %v414_v16  ;;  %v397_v58 = vld [vmem:[%s497_s3] ss:$0 sm:$0xff]  ;;  %vm309_vm6 = vsmask.f32 256  ;;  %vm305_vm12 = vcmask 519168  }
   0xe   : > { %s192_s24 = scalar_lea.vmem %s494_s0, %s386_s19  ;;  %s483_s5 = scalar_lea.vmem %s498_s4, %s386_s19  ;;  %vm310_vm8 = vmand %vm220_vm0, %vm309_vm6 }
   0xf   : > { %v200_v4 = vld [vmem:[%s192_s24 + $0x8] sm:$0x1]  ;;  %v379_v5 = vld [vmem:[%s192_s24] sm:$0xff]  }
  0x10   : > { %v203_v6 = vunpack.c.l.bf16 %v200_v4  ;;  %v381_v7 = vunpack.c.h.bf16 %v379_v5  ;;  %v380_v9 = vunpack.c.l.bf16 %v379_v5  ;;  %v311_v1 = vld [vmem:[%s483_s5 + $0x8] sm:$0x1] }
  0x12   : > { %v212_v8 = vadd.f32 %v209_v2, %v203_v6  ;;  %v211_v11 = vadd.f32 %v385_v3, %v381_v7  ;;  %v210_v14 = vadd.f32 %v384_v10, %v380_v9 }
  0x13   : > { %v399_v17 = vpop.eup %398 }
  0x14   : > { %v221_v12 = vsel %vm220_vm0, %v212_v8, 0.0  ;;  %v217_v13 = vsel %vm213_vm1, %v211_v11, 0.0  ;;  %v214_v15 = vsel %vm213_vm1, %v210_v14, 0.0  ;;  %v225_v18 = vmul.f32 64.0, %v399_v17 }
  0x15   : > { %222 = vadd.xlane.f32.xlu0 %v221_v12  ;;  %218 = vadd.xlane.f32.xlu1 %v217_v13  ;;  %vm229_vm2 = vweird.f32 %v399_v17 }
  0x16   : > { %v226_v19 = vsub.f32 1.0, %v225_v18 }
  0x18   : > { %v227_v20 = vmul.f32 %v399_v17, %v226_v19 }
  0x1a   : > { %v228_v21 = vadd.f32 %v399_v17, %v227_v20 }
  0x1c   : > { %v230_v22 = vsel %vm229_vm2, %v399_v17, %v228_v21 }
  0x1d   : > { %215 = vadd.xlane.f32.xlu0 %v214_v15 }
  0x88   : > { %v223_v23 = vpop.xlane.xlu0 %222  ;;  %v219_v27 = vpop.xlane.xlu1 %218 }
  0x89   : > { %v233_v24 = vmul.f32 %v230_v22, %v223_v23  ;;  %v232_v31 = vmul.f32 %v230_v22, %v219_v27 }
  0x8b   : > { %v236_v25 = vsub.f32 %v212_v8, %v233_v24  ;;  %v466_v33 = vsub.f32 %v211_v11, %v232_v31 }
  0x8d   : > { %v239_v26 = vmul.f32 %v236_v25, %v236_v25  ;;  %v238_v36 = vmul.f32 %v466_v33, %v466_v33 }
  0x8f   : > { %v246_v28 = vsel %vm220_vm0, %v239_v26, 0.0  ;;  %v243_v37 = vsel %vm213_vm1, %v238_v36, 0.0 }
  0x90   : > { %247 = vadd.xlane.f32.xlu1 %v246_v28  ;;  %v216_v29 = vpop.xlane.xlu0 %215 }
  0x91   : > { %v231_v30 = vmul.f32 %v230_v22, %v216_v29 }
  0x93   : > { %v234_v32 = vsub.f32 %v210_v14, %v231_v30 }
  0x95   : > { %v237_v34 = vmul.f32 %v234_v32, %v234_v32 }
  0x97   : > { %v240_v35 = vsel %vm213_vm1, %v237_v34, 0.0 }
  0x98   : > { %241 = vadd.xlane.f32.xlu2 %v240_v35 }
  0xa0   : > { %244 = vadd.xlane.f32.xlu2 %v243_v37 }
 0x103   : > { %v248_v38 = vpop.xlane.xlu1 %247 }
 0x104   : > { %v251_v39 = vmul.f32 %v248_v38, %v230_v22 }
 0x106   : > { %v254_v40 = vadd.f32 1e-05, %v251_v39 }
 0x108   : > { %400 = vrsqrt.f32 %v254_v40  ;;  %vm281_vm4 = vweird.f32 %v254_v40 }
 0x10b   : > { %v242_v41 = vpop.xlane.xlu2 %241 }
 0x10c   : > { %v249_v42 = vmul.f32 %v242_v41, %v230_v22 }
 0x10e   : > { %v401_v43 = vpop.eup %400  ;;  %v252_v44 = vadd.f32 1e-05, %v249_v42 }
 0x10f   : > { %v276_v45 = vmul.f32 %v401_v43, %v254_v40  ;;  %vm282_vm3 = vweird.f32 %v401_v43 }
 0x110   : > { %402 = vrsqrt.f32 %v252_v44  ;;  %vm283_vm5 = vmor %vm281_vm4, %vm282_vm3  ;;  %vm261_vm9 = vweird.f32 %v252_v44 }
 0x111   : > { %v277_v46 = vmul.f32 %v401_v43, %v276_v45 }
 0x113   : > { %v278_v47 = vmul.f32 0.5, %v277_v46  ;;  %v245_v48 = vpop.xlane.xlu2 %244 }
 0x114   : > { %v250_v49 = vmul.f32 %v245_v48, %v230_v22 }
 0x115   : > { %v279_v50 = vsub.f32 1.5, %v278_v47 }
 0x116   : > { %v403_v51 = vpop.eup %402  ;;  %v253_v52 = vadd.f32 1e-05, %v250_v49 }
 0x117   : > { %v280_v53 = vmul.f32 %v401_v43, %v279_v50  ;;  %v256_v54 = vmul.f32 %v403_v51, %v252_v44  ;;  %vm262_vm7 = vweird.f32 %v403_v51 }
 0x118   : > { %404 = vrsqrt.f32 %v253_v52  ;;  %vm263_vm10 = vmor %vm261_vm9, %vm262_vm7  ;;  %vm271_vm13 = vweird.f32 %v253_v52 }
 0x119   : > { %v284_v56 = vsel %vm283_vm5, %v401_v43, %v280_v53  ;;  %v257_v57 = vmul.f32 %v403_v51, %v256_v54 }
 0x11a   : > { %v287_v59 = vmul.f32 %v284_v56, %v236_v25 }
 0x11b   : > { %v258_v60 = vmul.f32 0.5, %v257_v57 }
 0x11c   : > { %v294_v61 = vmul.f32 %v396_v55, %v287_v59 }
 0x11d   : > { %v259_v62 = vsub.f32 1.5, %v258_v60 }
 0x11e   : > { %v405_v63 = vpop.eup %404  ;;  %v301_v0 = vadd.f32 %v397_v58, %v294_v61 }
 0x11f   : > { %v260_v2 = vmul.f32 %v403_v51, %v259_v62  ;;  %v266_v3 = vmul.f32 %v405_v63, %v253_v52  ;;  %vm272_vm11 = vweird.f32 %v405_v63 }
 0x120   : > { %v304_v4 = vpack.c.bf16 %v301_v0, %v301_v0  ;;  %vm273_vm14 = vmor %vm271_vm13, %vm272_vm11 }
 0x121   : > { %v264_v5 = vsel %vm263_vm10, %v403_v51, %v260_v2  ;;  %v267_v6 = vmul.f32 %v405_v63, %v266_v3 }
 0x122   : > { %v312_v7 = vsel %vm310_vm8, %v304_v4, %v311_v1  ;;  %v285_v8 = vmul.f32 %v264_v5, %v234_v32 }
 0x123   : > { %313 = vst [vmem:[%s483_s5 + $0x8] sm:$0x1] %v312_v7  ;;  %v268_v9 = vmul.f32 0.5, %v267_v6 }
 0x124   : > { %v292_v10 = vmul.f32 %v396_v55, %v285_v8 }
 0x125   : > { %v269_v11 = vsub.f32 1.5, %v268_v9 }
 0x126   : > { %v299_v12 = vadd.f32 %v397_v58, %v292_v10 }
 0x127   : > { %v270_v13 = vmul.f32 %v405_v63, %v269_v11 }
 0x128   : > { %v302_v14 = vpack.c.bf16 %v299_v12, %v299_v12 }
 0x129   : > { %v274_v15 = vsel %vm273_vm14, %v405_v63, %v270_v13 }
 0x12a   : > { %306 = vst.msk [vmem:[%s483_s5] sm:$0xf] %vm305_vm12, %v302_v14  ;;  %v286_v16 = vmul.f32 %v274_v15, %v466_v33 }
 0x12c   : > { %v293_v17 = vmul.f32 %v396_v55, %v286_v16 }
 0x12e   : > { %v300_v18 = vadd.f32 %v397_v58, %v293_v17 }
 0x130   : > { %v303_v19 = vpack.c.bf16 %v300_v18, %v300_v18 }
 0x132   : > { %307 = vst.msk [vmem:[%s483_s5 + $0x4] sm:$0xf] %vm305_vm12, %v303_v19 }
 0x133 PF: > { %s14_s15 = sadd.s32 1, %s412_s15  }
 0x134   : > { %p11_p4 = scmp.ge.s32.totalorder %s14_s15, 4  }
 0x136   :  { %13 = sbr.rel (!%p11_p4) target bundleno = 1 (0x1), region = 66 }

// kernel: custom_clip_forward.28
= control target key start
LH: loop header
LB: loop body
LE: loop exit
PB: predicated region body
PF: predicated region fallthrough
CT: control target
= control target key end

     0   :  { %s833_s6 = smov 0   ;;  %s1025_s0 = inlined_call_operand.vmem [shape: bf16[2,17,192], index: 0, kind: input, shape index: {}]   ;;  %s1026_s1 = inlined_call_operand.vmem [shape: bf16[2,17,64], index: 1, kind: output, shape index: {}]  }
   0x1 LB: > { %s706_s7 = sadd.s32 4294967295, %s813_s6   ;;  %p710_p0 = scmp.ge.s32.totalorder %s813_s6, 1  ;;  %s813_s6 = sphi %s833_s6, %s11_s6  }
   0x2   : > { %p87_p1 = scmp.lt.s32.totalorder %s813_s6, 3 }
   0x4   : > { %p88_p2 = pnand %p710_p0, %p87_p1 }
   0x5   : > { %p107_p3 = scmp.lt.s32.totalorder (!%p88_p2), %s706_s7, 1  ;;  %s815_s12 = smov (!%p88_p2), 64  }
   0x6   : > { %91 = sbr.rel (%p88_p2) target bundleno = 1363 (0x553), region = 24  ;;  %s816_s13 = smov (!%p88_p2), 48  }
   0x7   : > { %s817_s14 = smov (!%p88_p2), 112   ;;  %s818_s15 = smov (!%p88_p2), 32  }
   0x8   : > { %s820_s16 = smov (!%p88_p2), 16   ;;  %s821_s17 = smov (!%p88_p2), 96  }
   0x9   : > { %s822_s18 = smov (!%p88_p2), 80  }
   0xb   : > { %s1028_s7 = smov (!%p107_p3, %s706_s7), 1  ;;  %vm136_vm0 = vcmask 130048   ;;  %vm170_vm1 = vcmask 138240   ;;  %vm177_vm2 = vcmask 131072   ;;  %vm222_vm3 = vcmask 1040384  }
   0xc   : > { %s741_s8 = smul.u32 24, %s1028_s7  ;;  %v819_v42 = vmov 0   ;;  %vm249_vm4 = vcmask 125952   ;;  %vm252_vm5 = vcmask 122880   ;;  %vm253_vm6 = vsmask.f32 256 }
   0xd   : > { %v883_v43 = vsel %vm222_vm3, 65535, %v819_v42  ;;  %s742_s19 = smul.u32 12, %s1028_s7  ;;  %vm254_vm7 = vmand %vm252_vm5, %vm253_vm6  ;;  %vm381_vm8 = vcmask 257152   ;;  %vm384_vm9 = vcmask 254080   ;;  %vm512_vm11 = vcmask 388352  }
   0xe   : > { %s847_s11 = scalar_lea.vmem %s1025_s0, %s741_s8  ;;  %vm385_vm10 = vmand %vm384_vm9, %vm253_vm6  ;;  %vm515_vm12 = vcmask 385280   ;;  %vm643_vm14 = vcmask 519552   ;;  %vm646_vm15 = vcmask 516480  }
   0xf   : > { %v120_v0 = vld [vmem:[%s847_s11 + $0x10] sm:$0x1]  ;;  %v715_v3 = vld [vmem:[%s847_s11] sm:$0xf]  ;;  %v739_v4 = vld [vmem:[%s847_s11 + $0x4] sm:$0xf0]  ;;  %s929_s22 = scalar_lea.vmem %s1026_s1, %s742_s19 }
  0x10   : > { %v129_v1 = vunpack.c.l.b16 %v120_v0  ;;  %v855_v5 = vor.u32 %v739_v4, %v715_v3  ;;  %v123_v38 = vld [vmem:[%s847_s11 + $0x14] sm:$0x1]  ;;  %v721_v46 = vld [vmem:[%s847_s11 + $0x4] sm:$0xf]  ;;  %v740_v47 = vld [vmem:[%s847_s11 + $0x8] sm:$0xf0] }
  0x11   : > { %v212_v40 = vunpack.c.l.b16 %v123_v38  ;;  %v893_v48 = vor.u32 %v740_v47, %v721_v46  ;;  %vm516_vm13 = vmand %vm515_vm12, %vm253_vm6 }
  0x12   : > { %v850_v2 = vpack.c.b16 %v129_v1, %v129_v1 }
  0x13   : > { %v885_v44 = vpack.c.b16 %v212_v40, %v212_v40 }
  0x14   : > { %134 = vrot.lane.b32.xlu0 %v850_v2, %s815_s12 }
  0x15   : > { %v226_v45 = vand.u32 %v883_v43, %v885_v44 }
  0x17   : > { %234 = vmatpush.bf16.msra.mxu1 %v226_v45 }
  0x1b   : > { %235 = vmatpush.bf16.msra.mxu1 %v893_v48 }
  0x1c   : > { %132 = vrot.lane.b32.xlu0 %v855_v5, %s815_s12 }
  0x24   : > { %262 = vrot.lane.b32.xlu0 %v855_v5, %s816_s13 }
  0x86   : > { %v135_v6 = vpop.permute.xlu0 %134 }
  0x87   : > { %v147_v7 = vsel %vm136_vm0, %v135_v6, 0 }
  0x88   : > { %155 = vmatpush.bf16.xpose.msra.mxu0 %v147_v7 }
  0x8e   : > { %v133_v8 = vpop.permute.xlu0 %132 }
  0x8f   : > { %v144_v9 = vsel %vm136_vm0, %v133_v8, 0 }
  0x90   : > { %156 = vmatpush.bf16.xpose.msra.mxu0 %v144_v9 }
  0x96   : > { %v263_v37 = vpop.permute.xlu0 %262 }
  0x97   : > { %717 = vmatmul.msk.bf16.vlgmr.msra.gmra.mxu0 %vm136_vm0, %v855_v5  ;;  %v273_v39 = vsel %vm136_vm0, %v263_v37, 0 }
  0xa7   : > { %718 = vmatmul.msk.bf16.gmra.mxu0 %vm136_vm0, %v850_v2 }
 0x114   : > { %v158_v10 = vpop.f32.mrf.mxu0 }
 0x115   : > { %v167_v11 = vmul.f32 0.25, %v158_v10 }
 0x117   : > { %v171_v12 = vsel %vm170_vm1, %v167_v11, -inf }
 0x118   : > { %172 = vmax.xlane.f32.xlu1 %v171_v12 }
 0x11c   : > { %v160_v13 = vpop.f32.mrf.mxu0 }
 0x11d   : > { %v168_v14 = vmul.f32 0.25, %v160_v13 }
 0x11f   : > { %v174_v15 = vsel %vm170_vm1, %v168_v14, -inf }
 0x120   : > { %175 = vmax.xlane.f32.xlu1 %v174_v15 }
 0x124   : > { %v163_v16 = vpop.f32.mrf.mxu0 }
 0x125   : > { %v169_v17 = vmul.f32 0.25, %v163_v16 }
 0x127   : > { %v178_v18 = vsel %vm177_vm2, %v169_v17, -inf }
 0x128   : > { %179 = vmax.xlane.f32.xlu2 %v178_v18 }
 0x12c   : > { %v165_v19 = vpop.f32.mrf.mxu0 }
 0x139   : > { %258 = vrot.lane.b32.xlu1 %v855_v5, %s817_s14 }
 0x140   : > { %264 = vrot.lane.b32.xlu2 %v850_v2, %s816_s13 }
 0x141   : > { %395 = vrot.lane.b32.xlu1 %v850_v2, %s818_s15 }
 0x149   : > { %260 = vrot.lane.b32.xlu1 %v850_v2, %s817_s14 }
 0x18b   : > { %v173_v20 = vpop.xlane.xlu1 %172 }
 0x18c   : > { %v181_v21 = vsub.f32 %v167_v11, %v173_v20 }
 0x18e   : > { %v184_v22 = vmul.f32 1.442695, %v181_v21 }
 0x190   : > { %759 = vpow2.f32 %v184_v22 }
 0x193   : > { %v176_v23 = vpop.xlane.xlu1 %175 }
 0x194   : > { %v182_v24 = vsub.f32 %v168_v14, %v176_v23 }
 0x196   : > { %v760_v25 = vpop.eup %759  ;;  %v186_v26 = vmul.f32 1.442695, %v182_v24  ;;  %v255_v24 = vld [vmem:[%s929_s22 + $0x8] sm:$0x1] }
 0x197   : > { %v190_v27 = vsel %vm170_vm1, %v760_v25, 0.0 }
 0x198   : > { %761 = vpow2.f32 %v186_v26  ;;  %191 = vadd.xlane.f32.xlu1 %v190_v27 }
 0x19b   : > { %v180_v28 = vpop.xlane.xlu2 %179 }
 0x19c   : > { %v183_v29 = vsub.f32 %v169_v17, %v180_v28 }
 0x19e   : > { %v762_v30 = vpop.eup %761  ;;  %v188_v31 = vmul.f32 1.442695, %v183_v29 }
 0x19f   : > { %v193_v32 = vsel %vm170_vm1, %v762_v30, 0.0 }
 0x1a0   : > { %763 = vpow2.f32 %v188_v31  ;;  %194 = vadd.xlane.f32.xlu0 %v193_v32 }
 0x1a3   : > { %v265_v33 = vpop.permute.xlu2 %264 }
 0x1a4   : > { %v276_v34 = vsel %vm136_vm0, %v265_v33, 0 }
 0x1a5   : > { %284 = vmatpush.bf16.xpose.msra.mxu2 %v276_v34 }
 0x1a6   : > { %v764_v35 = vpop.eup %763 }
 0x1a7   : > { %v196_v36 = vsel %vm177_vm2, %v764_v35, 0.0 }
 0x1a8   : > { %197 = vadd.xlane.f32.xlu2 %v196_v36 }
 0x1ab   : > { %v259_v41 = vpop.permute.xlu1 %258 }
 0x1ad   : > { %285 = vmatpush.bf16.xpose.msra.mxu2 %v273_v39 }
 0x1b1   : > { %393 = vrot.lane.b32.xlu1 %v855_v5, %s818_s15 }
 0x1b3   : > { %v396_v49 = vpop.permute.xlu1 %395 }
 0x1b4   : > { %526 = vrot.lane.b32.xlu0 %v850_v2, %s820_s16  ;;  %725 = vmatmul.msk.bf16.vlgmr.msra.gmra.mxu2 %vm136_vm0, %v259_v41  ;;  %v407_v50 = vsel %vm136_vm0, %v396_v49, 0 }
 0x1b5   : > { %415 = vmatpush.bf16.xpose.msrb.mxu1 %v407_v50 }
 0x1b9   : > { %389 = vrot.lane.b32.xlu1 %v855_v5, %s821_s17 }
 0x1bb   : > { %v261_v51 = vpop.permute.xlu1 %260 }
 0x1bc   : > { %391 = vrot.lane.b32.xlu0 %v850_v2, %s821_s17 }
 0x1c0   : > { %524 = vrot.lane.b32.xlu2 %v855_v5, %s820_s16 }
 0x1c1   : > { %520 = vrot.lane.b32.xlu1 %v855_v5, %s822_s18 }
 0x1c4   : > { %726 = vmatmul.msk.bf16.gmra.mxu2 %vm136_vm0, %v261_v51 }
 0x1c9   : > { %522 = vrot.lane.b32.xlu1 %v850_v2, %s822_s18 }
 0x20b   : > { %v192_v52 = vpop.xlane.xlu1 %191 }
 0x20c   : > { %765 = vrcp.f32 %v192_v52 }
 0x212   : > { %v766_v54 = vpop.eup %765 }
 0x213   : > { %v195_v53 = vpop.xlane.xlu0 %194  ;;  %v202_v56 = vmul.f32 %v766_v54, %v760_v25 }
 0x214   : > { %767 = vrcp.f32 %v195_v53 }
 0x21a   : > { %v768_v55 = vpop.eup %767 }
 0x21b   : > { %v203_v57 = vmul.f32 %v768_v55, %v762_v30  ;;  %v198_v58 = vpop.xlane.xlu2 %197 }
 0x21c   : > { %769 = vrcp.f32 %v198_v58 }
 0x21d   : > { %v205_v59 = vpack.c.bf16 %v203_v57, %v202_v56 }
 0x21f   : > { %723 = vmatmul.msk.bf16.vlgmr.msra.gmra.mxu1 %vm170_vm1, %v205_v59 }
 0x222   : > { %v770_v62 = vpop.eup %769 }
 0x223   : > { %v394_v60 = vpop.permute.xlu1 %393  ;;  %v204_v1 = vmul.f32 %v770_v62, %v764_v35  ;;  %v525_v2 = vpop.permute.xlu2 %524 }
 0x224   : > { %v404_v61 = vsel %vm136_vm0, %v394_v60, 0  ;;  %v535_v5 = vsel %vm136_vm0, %v525_v2, 0 }
 0x225   : > { %416 = vmatpush.bf16.xpose.msrb.mxu1 %v404_v61  ;;  %v206_v4 = vpack.c.bf16 %v204_v1, %v204_v1 }
 0x226   : > { %v527_v63 = vpop.permute.xlu0 %526 }
 0x227   : > { %v538_v0 = vsel %vm136_vm0, %v527_v63, 0 }
 0x228   : > { %546 = vmatpush.bf16.xpose.msrb.mxu0 %v538_v0 }
 0x22b   : > { %v390_v3 = vpop.permute.xlu1 %389 }
 0x22e   : > { %v392_v17 = vpop.permute.xlu0 %391 }
 0x22f   : > { %724 = vmatmul.msk.bf16.gmra.mxu1 %vm170_vm1, %v206_v4 }
 0x230   : > { %547 = vmatpush.bf16.xpose.msrb.mxu0 %v535_v5 }
 0x233   : > { %v521_v6 = vpop.permute.xlu1 %520 }
 0x237   : > { %v287_v7 = vpop.f32.mrf.mxu2  ;;  %733 = vmatmul.msk.bf16.vlgmr.msrb.gmra.mxu0 %vm136_vm0, %v521_v6 }
 0x238   : > { %v296_v8 = vmul.f32 0.25, %v287_v7 }
 0x23a   : > { %v299_v9 = vsel %vm170_vm1, %v296_v8, -inf }
 0x23b   : > { %300 = vmax.xlane.f32.xlu0 %v299_v9  ;;  %v523_v13 = vpop.permute.xlu1 %522 }
 0x23f   : > { %v289_v10 = vpop.f32.mrf.mxu2  ;;  %729 = vmatmul.msk.bf16.vlgmr.msrb.gmra.mxu1 %vm136_vm0, %v390_v3 }
 0x240   : > { %v297_v11 = vmul.f32 0.25, %v289_v10 }
 0x242   : > { %v302_v12 = vsel %vm170_vm1, %v297_v11, -inf }
 0x243   : > { %303 = vmax.xlane.f32.xlu1 %v302_v12 }
 0x247   : > { %v292_v14 = vpop.f32.mrf.mxu2  ;;  %734 = vmatmul.msk.bf16.gmra.mxu0 %vm136_vm0, %v523_v13 }
 0x248   : > { %v298_v15 = vmul.f32 0.25, %v292_v14 }
 0x24a   : > { %v305_v16 = vsel %vm177_vm2, %v298_v15, -inf }
 0x24b   : > { %306 = vmax.xlane.f32.xlu2 %v305_v16 }
 0x24f   : > { %730 = vmatmul.msk.bf16.gmra.mxu1 %vm136_vm0, %v392_v17  ;;  %v294_v18 = vpop.f32.mrf.mxu2  ;;  %vm647_vm0 = vmand %vm646_vm15, %vm253_vm6 }
 0x263   : > { %336 = vrot.lane.b32.xlu2 %v885_v44, %s817_s14 }
 0x29c   : > { %v237_v19 = vpop.f32.mrf.mxu1 }
 0x29d   : > { %v246_v20 = vpack.c.bf16 %v237_v19, %v237_v19 }
 0x29f   : > { %250 = vst.msk [vmem:[%s929_s22] sm:$0xf] %vm249_vm4, %v246_v20 }
 0x2a4   : > { %v239_v21 = vpop.f32.mrf.mxu1 }
 0x2a5   : > { %v247_v22 = vpack.c.bf16 %v239_v21, %v239_v21 }
 0x2a7   : > { %251 = vst.msk [vmem:[%s929_s22 + $0x4] sm:$0xf] %vm249_vm4, %v247_v22 }
 0x2ac   : > { %v242_v23 = vpop.f32.mrf.mxu1 }
 0x2ad   : > { %v248_v25 = vpack.c.bf16 %v242_v23, %v242_v23 }
 0x2ae   : > { %v301_v26 = vpop.xlane.xlu0 %300 }
 0x2af   : > { %v256_v27 = vsel %vm254_vm7, %v248_v25, %v255_v24  ;;  %v308_v28 = vsub.f32 %v296_v8, %v301_v26 }
 0x2b0   : > { %257 = vst [vmem:[%s929_s22 + $0x8] sm:$0x1] %v256_v27 }
 0x2b1   : > { %v311_v29 = vmul.f32 1.442695, %v308_v28 }
 0x2b3   : > { %771 = vpow2.f32 %v311_v29 }
 0x2b4   : > { %v244_v30 = vpop.f32.mrf.mxu1  ;;  %v549_v31 = vpop.f32.mrf.mxu0 }
 0x2b5   : > { %v558_v32 = vmul.f32 0.25, %v549_v31 }
 0x2b6   : > { %v304_v33 = vpop.xlane.xlu1 %303 }
 0x2b7   : > { %v309_v34 = vsub.f32 %v297_v11, %v304_v33  ;;  %v561_v35 = vsel %vm170_vm1, %v558_v32, -inf }
 0x2b8   : > { %562 = vmax.xlane.f32.xlu1 %v561_v35 }
 0x2b9   : > { %v313_v36 = vmul.f32 1.442695, %v309_v34  ;;  %v937_v37 = vpop.eup %771 }
 0x2ba   : > { %v317_v46 = vsel %vm170_vm1, %v937_v37, 0.0 }
 0x2bb   : > { %773 = vpow2.f32 %v313_v36 }
 0x2bc   : > { %v418_v38 = vpop.f32.mrf.mxu1  ;;  %v551_v39 = vpop.f32.mrf.mxu0 }
 0x2bd   : > { %v939_v40 = vmul.f32 0.25, %v551_v39  ;;  %v427_v0 = vmul.f32 0.25, %v418_v38 }
 0x2be   : > { %v307_v41 = vpop.xlane.xlu2 %306 }
 0x2bf   : > { %v310_v42 = vsub.f32 %v298_v15, %v307_v41  ;;  %v564_v45 = vsel %vm170_vm1, %v939_v40, -inf  ;;  %v430_v1 = vsel %vm170_vm1, %v427_v0, -inf }
 0x2c0   : > { %565 = vmax.xlane.f32.xlu0 %v564_v45  ;;  %318 = vadd.xlane.f32.xlu1 %v317_v46 }
 0x2c1   : > { %v315_v47 = vmul.f32 1.442695, %v310_v42  ;;  %v774_v49 = vpop.eup %773 }
 0x2c2   : > { %v320_v55 = vsel %vm170_vm1, %v774_v49, 0.0 }
 0x2c3   : > { %775 = vpow2.f32 %v315_v47 }
 0x2c4   : > { %v420_v50 = vpop.f32.mrf.mxu1  ;;  %v554_v51 = vpop.f32.mrf.mxu0 }
 0x2c5   : > { %v428_v52 = vmul.f32 0.25, %v420_v50  ;;  %v945_v53 = vmul.f32 0.25, %v554_v51 }
 0x2c6   : > { %v337_v2 = vpop.permute.xlu2 %336 }
 0x2c7   : > { %v433_v54 = vsel %vm170_vm1, %v428_v52, -inf  ;;  %v567_v56 = vsel %vm177_vm2, %v945_v53, -inf  ;;  %v346_v3 = vand.u32 %v337_v2, %v883_v43 }
 0x2c8   : > { %434 = vmax.xlane.f32.xlu2 %v433_v54  ;;  %321 = vadd.xlane.f32.xlu0 %v320_v55 }
 0x2c9   : > { %568 = vmax.xlane.f32.xlu1 %v567_v56  ;;  %v776_v59 = vpop.eup %775  ;;  %354 = vmatpush.bf16.msra.mxu3 %v346_v3 }
 0x2ca   : > { %v323_v62 = vsel %vm177_vm2, %v776_v59, 0.0 }
 0x2cc   : > { %v423_v57 = vpop.f32.mrf.mxu1  ;;  %v556_v58 = vpop.f32.mrf.mxu0 }
 0x2cd   : > { %v429_v60 = vmul.f32 0.25, %v423_v57 }
 0x2cf   : > { %v436_v61 = vsel %vm177_vm2, %v429_v60, -inf }
 0x2d0   : > { %437 = vmax.xlane.f32.xlu2 %v436_v61 }
 0x2d1   : > { %324 = vadd.xlane.f32.xlu1 %v323_v62 }
 0x2d4   : > { %v425_v63 = vpop.f32.mrf.mxu1 }
 0x2dc   : > { %334 = vrot.lane.b32.xlu0 %v893_v48, %s817_s14 }
 0x306   : > { %431 = vmax.xlane.f32.xlu0 %v430_v1 }
 0x31a   : > { %465 = vrot.lane.b32.xlu0 %v893_v48, %s821_s17 }
 0x32b   : > { %v563_v4 = vpop.xlane.xlu1 %562 }
 0x32c   : > { %v570_v5 = vsub.f32 %v558_v32, %v563_v4 }
 0x32e   : > { %v573_v6 = vmul.f32 1.442695, %v570_v5 }
 0x330   : > { %777 = vpow2.f32 %v573_v6 }
 0x333   : > { %v566_v7 = vpop.xlane.xlu0 %565  ;;  %v319_v9 = vpop.xlane.xlu1 %318 }
 0x336   : > { %v959_v12 = vpop.eup %777 }
 0x337   : > { %v579_v15 = vsel %vm170_vm1, %v959_v12, 0.0 }
 0x33b   : > { %v435_v8 = vpop.xlane.xlu2 %434  ;;  %v322_v13 = vpop.xlane.xlu0 %321 }
 0x33c   : > { %v440_v10 = vsub.f32 %v428_v52, %v435_v8  ;;  %v569_v18 = vpop.xlane.xlu1 %568 }
 0x33d   : > { %v572_v33 = vsub.f32 %v945_v53, %v569_v18 }
 0x33e   : > { %v444_v11 = vmul.f32 1.442695, %v440_v10 }
 0x33f   : > { %v577_v36 = vmul.f32 1.442695, %v572_v33 }
 0x340   : > { %779 = vpow2.f32 %v444_v11 }
 0x341   : > { %781 = vrcp.f32 %v322_v13 }
 0x342   : > { %783 = vrcp.f32 %v319_v9 }
 0x343   : > { %v438_v14 = vpop.xlane.xlu2 %437 }
 0x344   : > { %v441_v16 = vsub.f32 %v429_v60, %v438_v14  ;;  %580 = vadd.xlane.f32.xlu0 %v579_v15  ;;  %v325_v28 = vpop.xlane.xlu1 %324 }
 0x346   : > { %v963_v17 = vpop.eup %779  ;;  %v446_v19 = vmul.f32 1.442695, %v441_v16 }
 0x347   : > { %v451_v20 = vsel %vm170_vm1, %v963_v17, 0.0  ;;  %v782_v21 = vpop.eup %781 }
 0x348   : > { %785 = vpow2.f32 %v446_v19  ;;  %452 = vadd.xlane.f32.xlu2 %v451_v20  ;;  %v784_v22 = vpop.eup %783  ;;  %v330_v23 = vmul.f32 %v782_v21, %v774_v49 }
 0x349   : > { %v329_v26 = vmul.f32 %v784_v22, %v937_v37  ;;  %787 = vrcp.f32 %v325_v28 }
 0x34b   : > { %v332_v29 = vpack.c.bf16 %v330_v23, %v329_v26 }
 0x34e   : > { %v967_v24 = vpop.eup %785  ;;  %v335_v25 = vpop.permute.xlu0 %334 }
 0x34f   : > { %355 = vmatpush.bf16.msra.mxu3 %v335_v25  ;;  %v454_v27 = vsel %vm177_vm2, %v967_v24, 0.0  ;;  %v788_v30 = vpop.eup %787 }
 0x350   : > { %455 = vadd.xlane.f32.xlu0 %v454_v27  ;;  %v331_v31 = vmul.f32 %v788_v30, %v776_v59 }
 0x352   : > { %727 = vmatmul.msk.bf16.vlgmr.msra.gmra.mxu3 %vm170_vm1, %v332_v29  ;;  %v333_v32 = vpack.c.bf16 %v331_v31, %v331_v31 }
 0x360   : > { %598 = vrot.lane.b32.xlu2 %v885_v44, %s822_s18 }
 0x362   : > { %728 = vmatmul.msk.bf16.gmra.mxu3 %vm170_vm1, %v333_v32 }
 0x364   : > { %596 = vrot.lane.b32.xlu0 %v893_v48, %s822_s18  ;;  %v571_v48 = vsub.f32 %v939_v40, %v566_v7 }
 0x366   : > { %v575_v45 = vmul.f32 1.442695, %v571_v48 }
 0x379   : > { %v432_v34 = vpop.xlane.xlu0 %431 }
 0x37a   : > { %v439_v35 = vsub.f32 %v427_v0, %v432_v34 }
 0x37c   : > { %v442_v37 = vmul.f32 1.442695, %v439_v35 }
 0x37e   : > { %789 = vpow2.f32 %v442_v37 }
 0x37f   : > { %791 = vpow2.f32 %v577_v36 }
 0x380   : > { %793 = vpow2.f32 %v575_v45 }
 0x384   : > { %v790_v38 = vpop.eup %789 }
 0x385   : > { %v979_v39 = vpop.eup %791  ;;  %v448_v41 = vsel %vm170_vm1, %v790_v38, 0.0 }
 0x386   : > { %449 = vadd.xlane.f32.xlu1 %v448_v41  ;;  %v585_v42 = vsel %vm177_vm2, %v979_v39, 0.0  ;;  %v794_v46 = vpop.eup %793 }
 0x387   : > { %v582_v49 = vsel %vm170_vm1, %v794_v46, 0.0 }
 0x389   : > { %586 = vadd.xlane.f32.xlu2 %v585_v42 }
 0x38c   : > { %v466_v57 = vpop.permute.xlu0 %465 }
 0x39f   : > { %467 = vrot.lane.b32.xlu1 %v885_v44, %s821_s17 }
 0x3b7   : > { %v581_v59 = vpop.xlane.xlu0 %580 }
 0x3bb   : > { %v453_v47 = vpop.xlane.xlu2 %452 }
 0x3c3   : > { %v599_v50 = vpop.permute.xlu2 %598  ;;  %v456_v2 = vpop.xlane.xlu0 %455 }
 0x3c4   : > { %v608_v51 = vand.u32 %v599_v50, %v883_v43 }
 0x3c6   : > { %616 = vmatpush.bf16.msrb.mxu2 %v608_v51 }
 0x3c9   : > { %583 = vadd.xlane.f32.xlu1 %v582_v49 }
 0x3d5   : > { %v357_v52 = vpop.f32.mrf.mxu3 }
 0x3d6   : > { %v366_v53 = vpack.c.bf16 %v357_v52, %v357_v52  ;;  %v597_v5 = vpop.permute.xlu0 %596 }
 0x3d7   : > { %617 = vmatpush.bf16.msrb.mxu2 %v597_v5 }
 0x3d8   : > { %372 = vrot.lane.b32.xlu0 %v366_v53, %s820_s16 }
 0x3dd   : > { %v359_v54 = vpop.f32.mrf.mxu3 }
 0x3de   : > { %v367_v56 = vpack.c.bf16 %v359_v54, %v359_v54 }
 0x3e5   : > { %v362_v55 = vpop.f32.mrf.mxu3 }
 0x3e6   : > { %v368_v44 = vpack.c.bf16 %v362_v55, %v362_v55 }
 0x3e8   : > { %376 = vrot.lane.b32.xlu1 %v368_v44, %s820_s16 }
 0x3ed   : > { %v364_v40 = vpop.f32.mrf.mxu3 }
 0x3f0   : > { %374 = vrot.lane.b32.xlu1 %v367_v56, %s820_s16 }
 0x3f9   : > { %v450_v58 = vpop.xlane.xlu1 %449 }
 0x3fa   : > { %795 = vrcp.f32 %v450_v58 }
 0x3fb   : > { %797 = vrcp.f32 %v453_v47 }
 0x3fc   : > { %799 = vrcp.f32 %v456_v2  ;;  %v587_v13 = vpop.xlane.xlu2 %586 }
 0x3fd   : > { %801 = vrcp.f32 %v581_v59 }
 0x400   : > { %v796_v61 = vpop.eup %795 }
 0x401   : > { %v798_v63 = vpop.eup %797  ;;  %v460_v0 = vmul.f32 %v796_v61, %v790_v38 }
 0x402   : > { %v461_v1 = vmul.f32 %v798_v63, %v963_v17  ;;  %v800_v4 = vpop.eup %799 }
 0x403   : > { %v462_v6 = vmul.f32 %v800_v4, %v967_v24  ;;  %v802_v8 = vpop.eup %801 }
 0x404   : > { %v463_v3 = vpack.c.bf16 %v461_v1, %v460_v0  ;;  %v591_v10 = vmul.f32 %v802_v8, %v959_v12  ;;  %v386_v12 = vld [vmem:[%s929_s22 + $0x8] sm:$0x1] }
 0x405   : > { %v464_v7 = vpack.c.bf16 %v462_v6, %v462_v6 }
 0x411   : > { %v468_v60 = vpop.permute.xlu1 %467 }
 0x412   : > { %v477_v62 = vand.u32 %v468_v60, %v883_v43 }
 0x414   : > { %485 = vmatpush.bf16.msrb.mxu3 %v477_v62 }
 0x418   : > { %486 = vmatpush.bf16.msrb.mxu3 %v466_v57 }
 0x41b   : > { %731 = vmatmul.msk.bf16.vlgmr.msrb.gmra.mxu3 %vm170_vm1, %v463_v3 }
 0x42b   : > { %732 = vmatmul.msk.bf16.gmra.mxu3 %vm170_vm1, %v464_v7 }
 0x43c   : > { %v584_v43 = vpop.xlane.xlu1 %583 }
 0x43d   : > { %803 = vrcp.f32 %v584_v43 }
 0x43e   : > { %805 = vrcp.f32 %v587_v13 }
 0x443   : > { %v804_v9 = vpop.eup %803 }
 0x444   : > { %v592_v11 = vmul.f32 %v804_v9, %v794_v46  ;;  %v806_v16 = vpop.eup %805 }
 0x445   : > { %v593_v17 = vmul.f32 %v806_v16, %v979_v39 }
 0x446   : > { %v594_v14 = vpack.c.bf16 %v592_v11, %v591_v10 }
 0x447   : > { %v595_v18 = vpack.c.bf16 %v593_v17, %v593_v17 }
 0x448   : > { %735 = vmatmul.msk.bf16.vlgmr.msrb.gmra.mxu2 %vm170_vm1, %v594_v14 }
 0x44a   : > { %v373_v15 = vpop.permute.xlu0 %372 }
 0x44b   : > { %382 = vst.msk [vmem:[%s929_s22] sm:$0xf] %vm381_vm8, %v373_v15 }
 0x458   : > { %736 = vmatmul.msk.bf16.gmra.mxu2 %vm170_vm1, %v595_v18 }
 0x45a   : > { %v377_v19 = vpop.permute.xlu1 %376 }
 0x45b   : > { %v387_v20 = vsel %vm385_vm10, %v377_v19, %v386_v12 }
 0x45c   : > { %388 = vst [vmem:[%s929_s22 + $0x8] sm:$0x1] %v387_v20 }
 0x462   : > { %v375_v21 = vpop.permute.xlu1 %374 }
 0x463   : > { %383 = vst.msk [vmem:[%s929_s22 + $0x4] sm:$0xf] %vm381_vm8, %v375_v21  ;;  %v517_v37 = vld [vmem:[%s929_s22 + $0x8] sm:$0x1] }
 0x49e   : > { %v488_v22 = vpop.f32.mrf.mxu3 }
 0x49f   : > { %v497_v28 = vpack.c.bf16 %v488_v22, %v488_v22 }
 0x4a6   : > { %v490_v23 = vpop.f32.mrf.mxu3 }
 0x4a7   : > { %v498_v24 = vpack.c.bf16 %v490_v23, %v490_v23 }
 0x4a9   : > { %505 = vrot.lane.b32.xlu1 %v498_v24, %s818_s15 }
 0x4ae   : > { %v493_v25 = vpop.f32.mrf.mxu3 }
 0x4af   : > { %v499_v26 = vpack.c.bf16 %v493_v25, %v493_v25 }
 0x4b1   : > { %507 = vrot.lane.b32.xlu0 %v499_v26, %s818_s15 }
 0x4b6   : > { %v495_v27 = vpop.f32.mrf.mxu3 }
 0x4b9   : > { %503 = vrot.lane.b32.xlu0 %v497_v28, %s818_s15 }
 0x4cb   : > { %v619_v29 = vpop.f32.mrf.mxu2 }
 0x4cc   : > { %v628_v30 = vpack.c.bf16 %v619_v29, %v619_v29 }
 0x4ce   : > { %634 = vrot.lane.b32.xlu2 %v628_v30, %s816_s13 }
 0x4d3   : > { %v621_v31 = vpop.f32.mrf.mxu2 }
 0x4d4   : > { %v629_v32 = vpack.c.bf16 %v621_v31, %v621_v31 }
 0x4d6   : > { %636 = vrot.lane.b32.xlu1 %v629_v32, %s816_s13 }
 0x4db   : > { %v624_v33 = vpop.f32.mrf.mxu2 }
 0x4dc   : > { %v630_v34 = vpack.c.bf16 %v624_v33, %v624_v33 }
 0x4de   : > { %638 = vrot.lane.b32.xlu0 %v630_v34, %s816_s13 }
 0x4e3   : > { %v626_v35 = vpop.f32.mrf.mxu2 }
 0x51b   : > { %v506_v36 = vpop.permute.xlu1 %505 }
 0x51c   : > { %514 = vst.msk [vmem:[%s929_s22 + $0x4] sm:$0xf] %vm512_vm11, %v506_v36 }
 0x523   : > { %v508_v38 = vpop.permute.xlu0 %507 }
 0x524   : > { %v518_v39 = vsel %vm516_vm13, %v508_v38, %v517_v37 }
 0x525   : > { %519 = vst [vmem:[%s929_s22 + $0x8] sm:$0x1] %v518_v39 }
 0x528   : > { %v635_v42 = vpop.permute.xlu2 %634 }
 0x52b   : > { %v504_v41 = vpop.permute.xlu0 %503 }
 0x52c   : > { %513 = vst.msk [vmem:[%s929_s22] sm:$0xf] %vm512_vm11, %v504_v41  ;;  %v648_v45 = vld [vmem:[%s929_s22 + $0x8] sm:$0x1] }
 0x52d   : > { %644 = vst.msk [vmem:[%s929_s22] sm:$0xf] %vm643_vm14, %v635_v42 }
 0x548   : > { %v637_v48 = vpop.permute.xlu1 %636 }
 0x549   : > { %645 = vst.msk [vmem:[%s929_s22 + $0x4] sm:$0xf] %vm643_vm14, %v637_v48 }
 0x550   : > { %v639_v46 = vpop.permute.xlu0 %638 }
 0x551   : > { %v649_v47 = vsel %vm647_vm0, %v639_v46, %v648_v45 }
 0x552   : > { %650 = vst [vmem:[%s929_s22 + $0x8] sm:$0x1] %v649_v47 }
 0x553 PF: > { %s11_s6 = sadd.s32 1, %s813_s6  }
 0x554   : > { %p8_p4 = scmp.ge.s32.totalorder %s11_s6, 4  }
 0x556   :  { %10 = sbr.rel (!%p8_p4) target bundleno = 1 (0x1), region = 54 }

// kernel: custom_clip_forward.29
= control target key start
LH: loop header
LB: loop body
LE: loop exit
PB: predicated region body
PF: predicated region fallthrough
CT: control target
= control target key end

     0   :  { %vm72_vm0 = vcmask 523264   ;;  %vm125_vm1 = vcmask 519168   ;;  %s264_s1 = inlined_call_operand.vmem [shape: bf16[64,64], index: 1, kind: input, shape index: {}]   ;;  %s265_s2 = inlined_call_operand.vmem [shape: f32[1,64], index: 2, kind: input, shape index: {}]   ;;  %s266_s0 = inlined_call_operand.vmem [shape: bf16[40,64], index: 0, kind: input, shape index: {}]   ;;  %s267_s3 = inlined_call_operand.vmem [shape: bf16[40,64], index: 3, kind: input, shape index: {}]   ;;  %s268_s4 = inlined_call_operand.vmem [shape: bf16[40,64], index: 4, kind: output, shape index: {}]  }
   0x1   :  { %v167_v0 = vld [vmem:[%s264_s1 + $0x18] sm:$0xff]  ;;  %v166_v1 = vld [vmem:[%s264_s1 + $0x10] sm:$0xff]  ;;  %v165_v2 = vld [vmem:[%s264_s1 + $0x8] sm:$0xff] }
   0x2   :  { %86 = vmatpush.bf16.msra.mxu0 %v167_v0  ;;  %177 = vmatpush.bf16.msra.mxu1 %v167_v0  ;;  %v22_v3 = vld [vmem:[%s266_s0 + $0x10] sm:$0xf]  ;;  %v164_v4 = vld [vmem:[%s264_s1] sm:$0xff]  ;;  %v163_v7 = vld [vmem:[%s266_s0 + $0x8] sm:$0xff] }
   0x3   :  { %178 = vmatpush.bf16.msra.mxu2 %v167_v0  ;;  %v44_v5 = vunpack.c.l.b16 %v22_v3  ;;  %v162_v6 = vld [vmem:[%s266_s0] sm:$0xff]  ;;  %v176_v10 = vld [vmem:[%s267_s3 + $0x8] sm:$0xff]   ;;  %v109_v20 = vld [vmem:[%s267_s3 + $0x10] sm:$0xf] }
   0x4   :  { %v169_v9 = vld [vmem:[%s267_s3] sm:$0xff]   ;;  %v174_v13 = vunpack.c.l.bf16 %v176_v10  ;;  %v114_v23 = vunpack.c.l.bf16 %v109_v20  ;;  %v175_v26 = vunpack.c.h.bf16 %v176_v10 }
   0x5   :  { %v47_v8 = vpack.c.b16 %v44_v5, %v44_v5  ;;  %v185_v11 = vld [vmem:[%s265_s2] ss:$0 sm:$0xff]  ;;  %v170_v12 = vunpack.c.l.bf16 %v169_v9  ;;  %v171_v25 = vunpack.c.h.bf16 %v169_v9 }
   0x6   :  { %87 = vmatpush.bf16.msra.mxu0 %v166_v1  ;;  %179 = vmatpush.bf16.msra.mxu1 %v166_v1 }
   0x7   :  { %180 = vmatpush.bf16.msra.mxu2 %v166_v1 }
   0xa   :  { %88 = vmatpush.bf16.msra.mxu0 %v165_v2  ;;  %181 = vmatpush.bf16.msra.mxu1 %v165_v2 }
   0xb   :  { %182 = vmatpush.bf16.msra.mxu2 %v165_v2 }
   0xe   :  { %89 = vmatpush.bf16.msra.mxu0 %v164_v4  ;;  %183 = vmatpush.bf16.msra.mxu1 %v164_v4 }
   0xf   :  { %184 = vmatpush.bf16.msra.mxu2 %v164_v4 }
  0x11   :  { %159 = vmatmul.msk.bf16.vlgmr.msra.gmra.mxu0 %vm72_vm0, %v162_v6  ;;  %160 = vmatmul.msk.bf16.vlgmr.msra.gmra.mxu1 %vm72_vm0, %v163_v7 }
  0x12   :  { %161 = vmatmul.msk.bf16.vlgmr.msra.gmra.mxu2 %vm72_vm0, %v47_v8 }
  0x8e   :  { %v91_v14 = vpop.f32.mrf.mxu0  ;;  %v96_v15 = vpop.f32.mrf.mxu1 }
  0x8f   :  { %v92_v16 = vadd.f32 %v185_v11, %v91_v14  ;;  %v97_v17 = vadd.f32 %v185_v11, %v96_v15 }
  0x91   :  { %v115_v18 = vadd.f32 %v170_v12, %v92_v16  ;;  %v117_v19 = vadd.f32 %v174_v13, %v97_v17 }
  0x93   :  { %v120_v21 = vpack.c.bf16 %v115_v18, %v115_v18  ;;  %v122_v22 = vpack.c.bf16 %v117_v19, %v117_v19 }
  0x95   :  { %126 = vst.msk [vmem:[%s268_s4] sm:$0xf] %vm125_vm1, %v120_v21  ;;  %v101_v24 = vpop.f32.mrf.mxu2 }
  0x96   :  { %128 = vst.msk [vmem:[%s268_s4 + $0x8] sm:$0xf] %vm125_vm1, %v122_v22  ;;  %v102_v27 = vadd.f32 %v185_v11, %v101_v24  ;;  %v93_v28 = vpop.f32.mrf.mxu0  ;;  %v98_v29 = vpop.f32.mrf.mxu1 }
  0x97   :  { %v94_v30 = vadd.f32 %v185_v11, %v93_v28  ;;  %v99_v31 = vadd.f32 %v185_v11, %v98_v29 }
  0x98   :  { %v119_v32 = vadd.f32 %v114_v23, %v102_v27 }
  0x99   :  { %v116_v33 = vadd.f32 %v171_v25, %v94_v30  ;;  %v118_v34 = vadd.f32 %v175_v26, %v99_v31 }
  0x9a   :  { %v124_v35 = vpack.c.bf16 %v119_v32, %v119_v32 }
  0x9b   :  { %v121_v36 = vpack.c.bf16 %v116_v33, %v116_v33  ;;  %v123_v37 = vpack.c.bf16 %v118_v34, %v118_v34 }
  0x9c   :  { %130 = vst.msk [vmem:[%s268_s4 + $0x10] sm:$0xf] %vm125_vm1, %v124_v35 }
  0x9d   :  { %127 = vst.msk [vmem:[%s268_s4 + $0x4] sm:$0xf] %vm125_vm1, %v121_v36  ;;  %v103_v38 = vpop.f32.mrf.mxu2 }
  0x9e   :  { %129 = vst.msk [vmem:[%s268_s4 + $0xc] sm:$0xf] %vm125_vm1, %v123_v37 }

// kernel: custom_clip_forward.30
= control target key start
LH: loop header
LB: loop body
LE: loop exit
PB: predicated region body
PF: predicated region fallthrough
CT: control target
= control target key end

     0   :  { %vm31_vm0 = vcmask 523264   ;;  %v631_v13 = vmov 64.0   ;;  %s940_s0 = inlined_call_operand.vmem [shape: bf16[40,64], index: 0, kind: input, shape index: {}]   ;;  %s941_s1 = inlined_call_operand.vmem [shape: f32[1,64], index: 1, kind: input, shape index: {}]   ;;  %s942_s2 = inlined_call_operand.vmem [shape: f32[1,64], index: 2, kind: input, shape index: {}]   ;;  %s943_s3 = inlined_call_operand.vmem [shape: bf16[64,256], index: 3, kind: input, shape index: {}]   ;;  %s944_s4 = inlined_call_operand.vmem [shape: f32[1,256], index: 4, kind: input, shape index: {}]   ;;  %s945_s5 = inlined_call_operand.vmem [shape: bf16[40,256], index: 5, kind: output, shape index: {}]  }
   0x1   :  { %v567_v0 = vld [vmem:[%s940_s0 + $0x8] sm:$0xff]   ;;  %v560_v1 = vld [vmem:[%s940_s0] sm:$0xff]   ;;  %v25_v2 = vld [vmem:[%s940_s0 + $0x10] sm:$0xf]  ;;  %579 = vrcp.f32 %v631_v13 }
   0x2   :  { %v565_v3 = vunpack.c.l.bf16 %v567_v0  ;;  %v561_v4 = vunpack.c.l.bf16 %v560_v1  ;;  %v30_v5 = vunpack.c.l.bf16 %v25_v2  ;;  %v566_v9 = vunpack.c.h.bf16 %v567_v0  ;;  %v529_v45 = vld [vmem:[%s943_s3 + $0x30] sm:$0xf]  ;;  %v558_v46 = vld [vmem:[%s943_s3 + $0x34] sm:$0xf0]  ;;  %v557_v47 = vld [vmem:[%s943_s3 + $0x34] sm:$0xf] }
   0x3   :  { %v562_v10 = vunpack.c.h.bf16 %v560_v1  ;;  %v530_v48 = vor.u32 %v558_v46, %v529_v45  ;;  %v531_v49 = vld [vmem:[%s943_s3 + $0x38] sm:$0xf0]  ;;  %v521_v51 = vld [vmem:[%s943_s3 + $0x20] sm:$0xf]  ;;  %v556_v52 = vld [vmem:[%s943_s3 + $0x24] sm:$0xf0] }
   0x4   :  { %v38_v6 = vsel %vm31_vm0, %v565_v3, 0.0  ;;  %v32_v7 = vsel %vm31_vm0, %v561_v4, 0.0  ;;  %v44_v8 = vsel %vm31_vm0, %v30_v5, 0.0  ;;  %v41_v11 = vsel %vm31_vm0, %v566_v9, 0.0  ;;  %v555_v53 = vld [vmem:[%s943_s3 + $0x24] sm:$0xf] }
   0x5   :  { %39 = vadd.xlane.f32.xlu0 %v38_v6  ;;  %33 = vadd.xlane.f32.xlu1 %v32_v7  ;;  %v35_v12 = vsel %vm31_vm0, %v562_v10, 0.0  ;;  %v534_v50 = vor.u32 %v557_v47, %v531_v49  ;;  %v522_v54 = vor.u32 %v556_v52, %v521_v51  ;;  %v523_v55 = vld [vmem:[%s943_s3 + $0x28] sm:$0xf0]  ;;  %v513_v57 = vld [vmem:[%s943_s3 + $0x10] sm:$0xf] }
   0x6   :  { %45 = vadd.xlane.f32.xlu2 %v44_v8  ;;  %237 = vmatpush.bf16.msra.mxu0 %v530_v48  ;;  %v526_v56 = vor.u32 %v555_v53, %v523_v55  ;;  %v554_v58 = vld [vmem:[%s943_s3 + $0x14] sm:$0xf0]  ;;  %v553_v59 = vld [vmem:[%s943_s3 + $0x14] sm:$0xf]  ;;  %v515_v61 = vld [vmem:[%s943_s3 + $0x18] sm:$0xf0] }
   0x7   :  { %v580_v14 = vpop.eup %579  ;;  %568 = vmatpush.bf16.msra.mxu2 %v530_v48  ;;  %260 = vmatpush.bf16.msra.mxu1 %v534_v50  ;;  %v514_v60 = vor.u32 %v554_v58, %v513_v57  ;;  %v518_v0 = vor.u32 %v553_v59, %v515_v61  ;;  %v577_v52 = vld [vmem:[%s941_s1] ss:$0 sm:$0xff] }
   0x8   :  { %v48_v15 = vmul.f32 64.0, %v580_v14  ;;  %vm52_vm1 = vweird.f32 %v580_v14  ;;  %572 = vmatpush.bf16.msra.mxu3 %v534_v50 }
   0xa   :  { %v49_v16 = vsub.f32 1.0, %v48_v15  ;;  %238 = vmatpush.bf16.msra.mxu0 %v522_v54 }
   0xb   :  { %569 = vmatpush.bf16.msra.mxu2 %v522_v54  ;;  %261 = vmatpush.bf16.msra.mxu1 %v526_v56 }
   0xc   :  { %v50_v17 = vmul.f32 %v580_v14, %v49_v16  ;;  %573 = vmatpush.bf16.msra.mxu3 %v526_v56 }
   0xd   :  { %42 = vadd.xlane.f32.xlu0 %v41_v11  ;;  %36 = vadd.xlane.f32.xlu1 %v35_v12 }
   0xe   :  { %v51_v18 = vadd.f32 %v580_v14, %v50_v17  ;;  %239 = vmatpush.bf16.msra.mxu0 %v514_v60 }
   0xf   :  { %570 = vmatpush.bf16.msra.mxu2 %v514_v60  ;;  %262 = vmatpush.bf16.msra.mxu1 %v518_v0 }
  0x10   :  { %v676_v19 = vsel %vm52_vm1, %v580_v14, %v51_v18  ;;  %574 = vmatpush.bf16.msra.mxu3 %v518_v0 }
  0x78   :  { %v40_v20 = vpop.xlane.xlu0 %39  ;;  %v34_v21 = vpop.xlane.xlu1 %33 }
  0x79   :  { %v56_v22 = vmul.f32 %v676_v19, %v40_v20  ;;  %v54_v23 = vmul.f32 %v676_v19, %v34_v21  ;;  %v46_v28 = vpop.xlane.xlu2 %45 }
  0x7a   :  { %v58_v35 = vmul.f32 %v676_v19, %v46_v28 }
  0x7b   :  { %v680_v24 = vsub.f32 %v565_v3, %v56_v22  ;;  %v682_v25 = vsub.f32 %v561_v4, %v54_v23  ;;  %v505_v3 = vld [vmem:[%s943_s3] sm:$0xf]  ;;  %v552_v4 = vld [vmem:[%s943_s3 + $0x4] sm:$0xf0] }
  0x7c   :  { %v697_v38 = vsub.f32 %v30_v5, %v58_v35  ;;  %v551_v5 = vld [vmem:[%s943_s3 + $0x4] sm:$0xf]  ;;  %v506_v8 = vor.u32 %v552_v4, %v505_v3 }
  0x7d   :  { %v66_v26 = vmul.f32 %v680_v24, %v680_v24  ;;  %v64_v27 = vmul.f32 %v682_v25, %v682_v25 }
  0x7e   :  { %v68_v43 = vmul.f32 %v697_v38, %v697_v38  ;;  %240 = vmatpush.bf16.msra.mxu0 %v506_v8  ;;  %571 = vmatpush.bf16.msra.mxu2 %v506_v8 }
  0x7f   :  { %v75_v29 = vsel %vm31_vm0, %v66_v26, 0.0  ;;  %v69_v30 = vsel %vm31_vm0, %v64_v27, 0.0 }
  0x80   :  { %76 = vadd.xlane.f32.xlu2 %v75_v29  ;;  %v43_v31 = vpop.xlane.xlu0 %42  ;;  %70 = vadd.xlane.f32.xlu1 %v69_v30  ;;  %v37_v32 = vpop.xlane.xlu1 %36  ;;  %v81_v44 = vsel %vm31_vm0, %v68_v43, 0.0 }
  0x81   :  { %v57_v33 = vmul.f32 %v676_v19, %v43_v31  ;;  %v55_v34 = vmul.f32 %v676_v19, %v37_v32 }
  0x83   :  { %v693_v36 = vsub.f32 %v566_v9, %v57_v33  ;;  %v695_v37 = vsub.f32 %v562_v10, %v55_v34  ;;  %v507_v9 = vld [vmem:[%s943_s3 + $0x8] sm:$0xf0] }
  0x84   :  { %v510_v10 = vor.u32 %v551_v5, %v507_v9 }
  0x85   :  { %v67_v39 = vmul.f32 %v693_v36, %v693_v36  ;;  %v65_v40 = vmul.f32 %v695_v37, %v695_v37 }
  0x86   :  { %263 = vmatpush.bf16.msra.mxu1 %v510_v10  ;;  %575 = vmatpush.bf16.msra.mxu3 %v510_v10 }
  0x87   :  { %v78_v41 = vsel %vm31_vm0, %v67_v39, 0.0  ;;  %v72_v42 = vsel %vm31_vm0, %v65_v40, 0.0 }
  0x88   :  { %79 = vadd.xlane.f32.xlu0 %v78_v41  ;;  %73 = vadd.xlane.f32.xlu2 %v72_v42 }
  0x90   :  { %82 = vadd.xlane.f32.xlu0 %v81_v44 }
  0xf3   :  { %v77_v62 = vpop.xlane.xlu2 %76  ;;  %v71_v63 = vpop.xlane.xlu1 %70 }
  0xf4   :  { %v86_v1 = vmul.f32 %v77_v62, %v676_v19  ;;  %v84_v2 = vmul.f32 %v71_v63, %v676_v19 }
  0xf6   :  { %v91_v6 = vadd.f32 1e-05, %v86_v1  ;;  %v89_v7 = vadd.f32 1e-05, %v84_v2 }
  0xf8   :  { %581 = vrsqrt.f32 %v91_v6  ;;  %vm100_vm2 = vweird.f32 %v89_v7  ;;  %vm120_vm5 = vweird.f32 %v91_v6 }
  0xf9   :  { %583 = vrsqrt.f32 %v89_v7 }
  0xfb   :  { %v80_v11 = vpop.xlane.xlu0 %79  ;;  %v74_v12 = vpop.xlane.xlu2 %73 }
  0xfc   :  { %v87_v13 = vmul.f32 %v80_v11, %v676_v19  ;;  %v85_v14 = vmul.f32 %v74_v12, %v676_v19 }
  0xfe   :  { %v582_v15 = vpop.eup %581  ;;  %v92_v16 = vadd.f32 1e-05, %v87_v13  ;;  %v90_v17 = vadd.f32 1e-05, %v85_v14  ;;  %v178_v13 = vld [vmem:[%s944_s4] sm:$0x3] }
  0xff   :  { %v584_v18 = vpop.eup %583  ;;  %v115_v20 = vmul.f32 %v582_v15, %v91_v6  ;;  %vm121_vm4 = vweird.f32 %v582_v15  ;;  %v787_v14 = vperm.slane %v178_v13, 0 }
 0x100   :  { %v95_v21 = vmul.f32 %v584_v18, %v89_v7  ;;  %585 = vrsqrt.f32 %v92_v16  ;;  %vm101_vm3 = vweird.f32 %v584_v18  ;;  %vm122_vm7 = vmor %vm120_vm5, %vm121_vm4  ;;  %vm110_vm8 = vweird.f32 %v90_v17 }
 0x101   :  { %v116_v22 = vmul.f32 %v582_v15, %v115_v20  ;;  %587 = vrsqrt.f32 %v90_v17  ;;  %vm761_vm6 = vmor %vm100_vm2, %vm101_vm3  ;;  %vm130_vm11 = vweird.f32 %v92_v16 }
 0x102   :  { %v96_v23 = vmul.f32 %v584_v18, %v95_v21 }
 0x103   :  { %v117_v26 = vmul.f32 0.5, %v116_v22  ;;  %v83_v27 = vpop.xlane.xlu0 %82 }
 0x104   :  { %v97_v28 = vmul.f32 0.5, %v96_v23  ;;  %v88_v29 = vmul.f32 %v83_v27, %v676_v19 }
 0x105   :  { %v118_v30 = vsub.f32 1.5, %v117_v26 }
 0x106   :  { %v586_v31 = vpop.eup %585  ;;  %v98_v32 = vsub.f32 1.5, %v97_v28  ;;  %v93_v33 = vadd.f32 1e-05, %v88_v29 }
 0x107   :  { %v588_v34 = vpop.eup %587  ;;  %v119_v35 = vmul.f32 %v582_v15, %v118_v30  ;;  %v125_v39 = vmul.f32 %v586_v31, %v92_v16  ;;  %vm131_vm10 = vweird.f32 %v586_v31 }
 0x108   :  { %v99_v40 = vmul.f32 %v584_v18, %v98_v32  ;;  %v105_v41 = vmul.f32 %v588_v34, %v90_v17  ;;  %589 = vrsqrt.f32 %v93_v33  ;;  %vm111_vm9 = vweird.f32 %v588_v34  ;;  %vm132_vm13 = vmor %vm130_vm11, %vm131_vm10 }
 0x109   :  { %v126_v43 = vmul.f32 %v586_v31, %v125_v39  ;;  %v123_v44 = vsel %vm122_vm7, %v582_v15, %v119_v35  ;;  %vm112_vm12 = vmor %vm110_vm8, %vm111_vm9  ;;  %vm140_vm14 = vweird.f32 %v93_v33  ;;  %v789_v15 = vperm.slane %v178_v13, 1 }
 0x10a   :  { %v106_v19 = vmul.f32 %v588_v34, %v105_v41  ;;  %v103_v46 = vsel %vm761_vm6, %v584_v18, %v99_v40  ;;  %v146_v50 = vmul.f32 %v123_v44, %v680_v24  ;;  %v578_v24 = vld [vmem:[%s942_s2] ss:$0 sm:$0xff] }
 0x10b   :  { %v127_v45 = vmul.f32 0.5, %v126_v43  ;;  %v144_v53 = vmul.f32 %v103_v46, %v682_v25 }
 0x10c   :  { %v107_v47 = vmul.f32 0.5, %v106_v19  ;;  %v155_v61 = vmul.f32 %v577_v52, %v146_v50 }
 0x10d   :  { %v128_v48 = vsub.f32 1.5, %v127_v45  ;;  %v153_v25 = vmul.f32 %v577_v52, %v144_v53 }
 0x10e   :  { %v590_v49 = vpop.eup %589  ;;  %v108_v51 = vsub.f32 1.5, %v107_v47  ;;  %v164_v3 = vadd.f32 %v578_v24, %v155_v61 }
 0x10f   :  { %v129_v54 = vmul.f32 %v586_v31, %v128_v48  ;;  %v135_v55 = vmul.f32 %v590_v49, %v93_v33  ;;  %vm141_vm15 = vweird.f32 %v590_v49  ;;  %v162_v6 = vadd.f32 %v578_v24, %v153_v25 }
 0x110   :  { %v109_v56 = vmul.f32 %v588_v34, %v108_v51  ;;  %vm142_vm1 = vmor %vm140_vm14, %vm141_vm15 }
 0x111   :  { %v133_v57 = vsel %vm132_vm13, %v586_v31, %v129_v54  ;;  %v136_v58 = vmul.f32 %v590_v49, %v135_v55 }
 0x112   :  { %v147_v59 = vmul.f32 %v133_v57, %v693_v36  ;;  %v113_v60 = vsel %vm112_vm12, %v588_v34, %v109_v56 }
 0x113   :  { %v145_v62 = vmul.f32 %v113_v60, %v695_v37  ;;  %v137_v63 = vmul.f32 0.5, %v136_v58 }
 0x114   :  { %v156_v0 = vmul.f32 %v577_v52, %v147_v59 }
 0x115   :  { %v138_v1 = vsub.f32 1.5, %v137_v63  ;;  %v154_v2 = vmul.f32 %v577_v52, %v145_v62 }
 0x116   :  { %v165_v4 = vadd.f32 %v578_v24, %v156_v0 }
 0x117   :  { %v139_v5 = vmul.f32 %v590_v49, %v138_v1  ;;  %v163_v36 = vadd.f32 %v578_v24, %v154_v2 }
 0x118   :  { %v168_v7 = vpack.c.bf16 %v165_v4, %v164_v3 }
 0x119   :  { %v143_v8 = vsel %vm142_vm1, %v590_v49, %v139_v5  ;;  %v167_v9 = vpack.c.bf16 %v163_v36, %v162_v6 }
 0x11a   :  { %536 = vmatmul.msk.bf16.vlgmr.msra.gmra.mxu2 %vm31_vm0, %v168_v7  ;;  %539 = vmatmul.msk.bf16.vlgmr.msra.gmra.mxu3 %vm31_vm0, %v168_v7  ;;  %v148_v37 = vmul.f32 %v143_v8, %v697_v38 }
 0x11b   :  { %535 = vmatmul.msk.bf16.vlgmr.msra.gmra.mxu0 %vm31_vm0, %v167_v9  ;;  %538 = vmatmul.msk.bf16.vlgmr.msra.gmra.mxu1 %vm31_vm0, %v167_v9 }
 0x11c   :  { %v157_v10 = vmul.f32 %v577_v52, %v148_v37 }
 0x11e   :  { %v166_v11 = vadd.f32 %v578_v24, %v157_v10 }
 0x120   :  { %v169_v12 = vpack.c.bf16 %v166_v11, %v166_v11 }
 0x12a   :  { %537 = vmatmul.msk.bf16.gmra.mxu2 %vm31_vm0, %v169_v12  ;;  %540 = vmatmul.msk.bf16.gmra.mxu3 %vm31_vm0, %v169_v12 }
 0x198   :  { %v242_v16 = vpop.f32.mrf.mxu0  ;;  %v265_v17 = vpop.f32.mrf.mxu1 }
 0x199   :  { %v792_v18 = vadd.f32 %v242_v16, %v787_v14  ;;  %v795_v38 = vadd.f32 %v265_v17, %v789_v15 }
 0x19b   :  { %v541_v20 = vmul.f32 -1.702, %v792_v18  ;;  %v542_v21 = vmul.f32 -1.702, %v795_v38 }
 0x19d   :  { %v299_v22 = vmul.f32 1.442695, %v541_v20  ;;  %v301_v23 = vmul.f32 1.442695, %v542_v21  ;;  %v247_v26 = vpop.f32.mrf.mxu2  ;;  %v270_v27 = vpop.f32.mrf.mxu3 }
 0x19e   :  { %v800_v28 = vadd.f32 %v247_v26, %v787_v14  ;;  %v803_v29 = vadd.f32 %v270_v27, %v789_v15 }
 0x19f   :  { %591 = vpow2.f32 %v299_v22 }
 0x1a0   :  { %593 = vpow2.f32 %v301_v23  ;;  %v545_v30 = vmul.f32 -1.702, %v800_v28  ;;  %v546_v31 = vmul.f32 -1.702, %v803_v29  ;;  %v244_v32 = vpop.f32.mrf.mxu0  ;;  %v267_v33 = vpop.f32.mrf.mxu1 }
 0x1a1   :  { %v808_v34 = vadd.f32 %v244_v32, %v787_v14  ;;  %v811_v35 = vadd.f32 %v267_v33, %v789_v15 }
 0x1a2   :  { %v307_v39 = vmul.f32 1.442695, %v545_v30  ;;  %v309_v40 = vmul.f32 1.442695, %v546_v31 }
 0x1a3   :  { %v543_v41 = vmul.f32 -1.702, %v808_v34  ;;  %v544_v42 = vmul.f32 -1.702, %v811_v35 }
 0x1a4   :  { %595 = vpow2.f32 %v307_v39 }
 0x1a5   :  { %v592_v43 = vpop.eup %591  ;;  %597 = vpow2.f32 %v309_v40  ;;  %v303_v19 = vmul.f32 1.442695, %v543_v41  ;;  %v249_v44 = vpop.f32.mrf.mxu2  ;;  %v305_v48 = vmul.f32 1.442695, %v544_v42 }
 0x1a6   :  { %v272_v45 = vpop.f32.mrf.mxu3  ;;  %v594_v46 = vpop.eup %593  ;;  %v815_v47 = vadd.f32 1.0, %v592_v43  ;;  %v818_v49 = vadd.f32 %v249_v44, %v787_v14 }
 0x1a7   :  { %v820_v50 = vadd.f32 1.0, %v594_v46  ;;  %599 = vpow2.f32 %v303_v19  ;;  %v834_v60 = vadd.f32 %v272_v45, %v789_v15 }
 0x1a8   :  { %601 = vrcp.f32 %v815_v47  ;;  %v547_v52 = vmul.f32 -1.702, %v818_v49  ;;  %v338_v54 = vand.u32 2147483647, %v815_v47  ;;  %v340_v55 = vand.u32 2147483648, %v815_v47 }
 0x1a9   :  { %603 = vrcp.f32 %v820_v50  ;;  %v355_v56 = vand.u32 2147483648, %v820_v50  ;;  %v353_v58 = vand.u32 2147483647, %v820_v50  ;;  %vm334_vm0 = vweird.f32 %v815_v47 }
 0x1aa   :  { %v596_v51 = vpop.eup %595  ;;  %605 = vpow2.f32 %v305_v48  ;;  %vm349_vm2 = vweird.f32 %v820_v50  ;;  %v311_v25 = vmul.f32 1.442695, %v547_v52  ;;  %vm841_vm3 = vcmp.eq.f32.partialorder %v338_v54, 8.507059e+37 }
 0x1ab   :  { %v598_v53 = vpop.eup %597  ;;  %v828_v57 = vadd.f32 1.0, %v596_v51  ;;  %v341_v3 = vor.u32 1.1754944e-38, %v340_v55  ;;  %v356_v4 = vor.u32 1.1754944e-38, %v355_v56  ;;  %vm846_vm4 = vcmp.eq.f32.partialorder %v353_v58, 8.507059e+37 }
 0x1ac   :  { %v831_v59 = vadd.f32 1.0, %v598_v53  ;;  %v548_v9 = vmul.f32 -1.702, %v834_v60 }
 0x1ad   :  { %v600_v24 = vpop.eup %599  ;;  %607 = vrcp.f32 %v828_v57  ;;  %v252_v61 = vpop.f32.mrf.mxu2  ;;  %v398_v7 = vand.u32 2147483647, %v828_v57  ;;  %v400_v8 = vand.u32 2147483648, %v828_v57  ;;  %vm394_vm5 = vweird.f32 %v828_v57 }
 0x1ae   :  { %v275_v62 = vpop.f32.mrf.mxu3  ;;  %v602_v63 = vpop.eup %601  ;;  %609 = vrcp.f32 %v831_v59  ;;  %v413_v10 = vand.u32 2147483647, %v831_v59  ;;  %v415_v11 = vand.u32 2147483648, %v831_v59  ;;  %v855_v12 = vadd.f32 1.0, %v600_v24 }
 0x1af   :  { %v604_v0 = vpop.eup %603  ;;  %v330_v1 = vmul.f32 %v602_v63, %v815_v47  ;;  %611 = vpow2.f32 %v311_v25  ;;  %vm335_vm6 = vweird.f32 %v602_v63  ;;  %vm409_vm7 = vweird.f32 %v831_v59 }
 0x1b0   :  { %v606_v5 = vpop.eup %605  ;;  %v345_v6 = vmul.f32 %v604_v0, %v820_v50  ;;  %613 = vrcp.f32 %v855_v12  ;;  %vm350_vm8 = vweird.f32 %v604_v0  ;;  %vm863_vm9 = vcmp.eq.f32.partialorder %v398_v7, 8.507059e+37  ;;  %vm336_vm11 = vmor %vm334_vm0, %vm335_vm6 }
 0x1b1   :  { %v331_v37 = vsub.f32 1.0, %v330_v1  ;;  %v858_v16 = vadd.f32 1.0, %v606_v5  ;;  %v401_v27 = vor.u32 1.1754944e-38, %v400_v8  ;;  %vm868_vm10 = vcmp.eq.f32.partialorder %v413_v10, 8.507059e+37  ;;  %vm351_vm12 = vmor %vm349_vm2, %vm350_vm8 }
 0x1b2   :  { %v346_v13 = vsub.f32 1.0, %v345_v6  ;;  %v416_v33 = vor.u32 1.1754944e-38, %v415_v11  ;;  %v313_v43 = vmul.f32 1.442695, %v548_v9  ;;  %v880_v45 = vadd.f32 %v252_v61, %v787_v14 }
 0x1b3   :  { %v608_v17 = vpop.eup %607  ;;  %v332_v20 = vmul.f32 %v602_v63, %v331_v37  ;;  %615 = vrcp.f32 %v858_v16  ;;  %v883_v46 = vadd.f32 %v275_v62, %v789_v15  ;;  %v368_v58 = vand.u32 2147483647, %v855_v12 }
 0x1b4   :  { %v610_v21 = vpop.eup %609  ;;  %v347_v22 = vmul.f32 %v604_v0, %v346_v13  ;;  %v390_v23 = vmul.f32 %v608_v17, %v828_v57  ;;  %vm395_vm13 = vweird.f32 %v608_v17  ;;  %v370_v61 = vand.u32 2147483648, %v855_v12 }
 0x1b5   :  { %v333_v30 = vadd.f32 %v602_v63, %v332_v20  ;;  %v405_v31 = vmul.f32 %v610_v21, %v831_v59  ;;  %v254_v39 = vpop.f32.mrf.mxu2  ;;  %v612_v48 = vpop.eup %611  ;;  %vm410_vm14 = vweird.f32 %v610_v21  ;;  %vm396_vm15 = vmor %vm394_vm5, %vm395_vm13  ;;  %617 = vpow2.f32 %v313_v43 }
 0x1b6   :  { %v277_v40 = vpop.f32.mrf.mxu3  ;;  %v348_v41 = vadd.f32 %v604_v0, %v347_v22  ;;  %v391_v42 = vsub.f32 1.0, %v390_v23  ;;  %v614_v53 = vpop.eup %613  ;;  %v896_v62 = vadd.f32 1.0, %v612_v48  ;;  %vm411_vm1 = vmor %vm409_vm7, %vm410_vm14  ;;  %vm364_vm2 = vweird.f32 %v855_v12 }
 0x1b7   :  { %v337_v19 = vsel %vm336_vm11, %v602_v63, %v333_v30  ;;  %v406_v44 = vsub.f32 1.0, %v405_v31  ;;  %v360_v15 = vmul.f32 %v614_v53, %v855_v12  ;;  %vm365_vm0 = vweird.f32 %v614_v53 }
 0x1b8   :  { %v342_v47 = vsel %vm841_vm3, %v341_v3, %v337_v19  ;;  %v352_v51 = vsel %vm351_vm12, %v604_v0, %v348_v41  ;;  %v392_v52 = vmul.f32 %v608_v17, %v391_v42  ;;  %v549_v0 = vmul.f32 -1.702, %v880_v45  ;;  %vm366_vm3 = vmor %vm364_vm2, %vm365_vm0 }
 0x1b9   :  { %v479_v54 = vmul.f32 %v342_v47, %v792_v18  ;;  %v357_v50 = vsel %vm846_vm4, %v356_v4, %v352_v51  ;;  %v407_v55 = vmul.f32 %v610_v21, %v406_v44  ;;  %v616_v18 = vpop.eup %615  ;;  %619 = vrcp.f32 %v896_v62 }
 0x1ba   :  { %v480_v14 = vmul.f32 %v357_v50, %v795_v38  ;;  %v393_v56 = vadd.f32 %v608_v17, %v392_v52  ;;  %v361_v38 = vsub.f32 1.0, %v360_v15  ;;  %v375_v2 = vmul.f32 %v616_v18, %v858_v16 }
 0x1bb   :  { %v408_v24 = vadd.f32 %v610_v21, %v407_v55  ;;  %v371_v6 = vor.u32 1.1754944e-38, %v370_v61  ;;  %v385_v8 = vand.u32 2147483648, %v858_v16  ;;  %v315_v9 = vmul.f32 1.442695, %v549_v0  ;;  %v618_v10 = vpop.eup %617 }
 0x1bc   :  { %v489_v63 = vpack.c.bf16 %v480_v14, %v479_v54  ;;  %v397_v25 = vsel %vm396_vm15, %v608_v17, %v393_v56  ;;  %v362_v4 = vmul.f32 %v614_v53, %v361_v38  ;;  %v376_v36 = vsub.f32 1.0, %v375_v2 }
 0x1bd   :  { %v402_v1 = vsel %vm863_vm9, %v401_v27, %v397_v25  ;;  %v412_v57 = vsel %vm411_vm1, %v610_v21, %v408_v24  ;;  %v550_v37 = vmul.f32 -1.702, %v883_v46  ;;  %vm380_vm4 = vweird.f32 %v616_v18 }
 0x1be   :  { %494 = vst [vmem:[%s945_s5] sm:$0xff] %v489_v63  ;;  %v483_v3 = vmul.f32 %v402_v1, %v800_v28  ;;  %v417_v59 = vsel %vm868_vm10, %v416_v33, %v412_v57  ;;  %v363_v7 = vadd.f32 %v614_v53, %v362_v4  ;;  %v377_v11 = vmul.f32 %v616_v18, %v376_v36 }
 0x1bf   :  { %v484_v5 = vmul.f32 %v417_v59, %v803_v29  ;;  %v383_v13 = vand.u32 2147483647, %v858_v16  ;;  %vm369_vm5 = vcmp.eq.f32.partialorder %v368_v58, 8.507059e+37  ;;  %v326_v29 = vadd.f32 1.0, %v618_v10  ;;  %v620_v22 = vpop.eup %619 }
 0x1c0   :  { %v367_v17 = vsel %vm366_vm3, %v614_v53, %v363_v7  ;;  %621 = vpow2.f32 %v315_v9  ;;  %v378_v20 = vadd.f32 %v616_v18, %v377_v11  ;;  %vm379_vm6 = vweird.f32 %v858_v16 }
 0x1c1   :  { %v491_v28 = vpack.c.bf16 %v484_v5, %v483_v3  ;;  %v372_v12 = vsel %vm369_vm5, %v371_v6, %v367_v17  ;;  %v317_v21 = vmul.f32 1.442695, %v550_v37  ;;  %vm381_vm7 = vmor %vm379_vm6, %vm380_vm4  ;;  %v386_v23 = vor.u32 1.1754944e-38, %v385_v8 }
 0x1c2   :  { %623 = vrcp.f32 %v326_v29  ;;  %v481_v26 = vmul.f32 %v372_v12, %v808_v34  ;;  %v382_v27 = vsel %vm381_vm7, %v616_v18, %v378_v20  ;;  %vm384_vm8 = vcmp.eq.f32.partialorder %v383_v13, 8.507059e+37 }
 0x1c3   :  { %496 = vst [vmem:[%s945_s5 + $0x10] sm:$0xff] %v491_v28  ;;  %v420_v30 = vmul.f32 %v620_v22, %v896_v62  ;;  %v387_v31 = vsel %vm384_vm8, %v386_v23, %v382_v27  ;;  %625 = vpow2.f32 %v317_v21  ;;  %vm425_vm9 = vweird.f32 %v620_v22 }
 0x1c4   :  { %v482_v32 = vmul.f32 %v387_v31, %v811_v35  ;;  %v428_v43 = vand.u32 2147483647, %v896_v62  ;;  %v430_v19 = vand.u32 2147483648, %v896_v62  ;;  %vm424_vm10 = vweird.f32 %v896_v62 }
 0x1c5   :  { %v421_v33 = vsub.f32 1.0, %v420_v30  ;;  %vm426_vm11 = vmor %vm424_vm10, %vm425_vm9  ;;  %v445_v53 = vand.u32 2147483648, %v326_v29  ;;  %v443_v50 = vand.u32 2147483647, %v326_v29  ;;  %vm439_vm14 = vweird.f32 %v326_v29 }
 0x1c6   :  { %v622_v39 = vpop.eup %621  ;;  %v490_v40 = vpack.c.bf16 %v482_v32, %v481_v26  ;;  %vm429_vm12 = vcmp.eq.f32.partialorder %v428_v43, 8.507059e+37  ;;  %v431_v52 = vor.u32 1.1754944e-38, %v430_v19 }
 0x1c7   :  { %v422_v41 = vmul.f32 %v620_v22, %v421_v33  ;;  %v327_v16 = vadd.f32 1.0, %v622_v39  ;;  %v446_v15 = vor.u32 1.1754944e-38, %v445_v53  ;;  %vm444_vm1 = vcmp.eq.f32.partialorder %v443_v50, 8.507059e+37 }
 0x1c8   :  { %v624_v42 = vpop.eup %623  ;;  %495 = vst [vmem:[%s945_s5 + $0x8] sm:$0xff] %v490_v40 }
 0x1c9   :  { %v423_v34 = vadd.f32 %v620_v22, %v422_v41  ;;  %v435_v44 = vmul.f32 %v624_v42, %v326_v29  ;;  %627 = vrcp.f32 %v327_v16  ;;  %v626_v35 = vpop.eup %625  ;;  %vm440_vm13 = vweird.f32 %v624_v42 }
 0x1ca   :  { %v328_v51 = vadd.f32 1.0, %v626_v35  ;;  %vm441_vm15 = vmor %vm439_vm14, %vm440_vm13  ;;  %v458_v38 = vand.u32 2147483647, %v327_v16  ;;  %v460_v0 = vand.u32 2147483648, %v327_v16  ;;  %vm454_vm2 = vweird.f32 %v327_v16 }
 0x1cb   :  { %v427_v48 = vsel %vm426_vm11, %v620_v22, %v423_v34  ;;  %v436_v47 = vsub.f32 1.0, %v435_v44 }
 0x1cc   :  { %629 = vrcp.f32 %v328_v51  ;;  %v432_v55 = vsel %vm429_vm12, %v431_v52, %v427_v48  ;;  %vm459_vm4 = vcmp.eq.f32.partialorder %v458_v38, 8.507059e+37  ;;  %v475_v4 = vand.u32 2147483648, %v328_v51 }
 0x1cd   :  { %v437_v54 = vmul.f32 %v624_v42, %v436_v47  ;;  %v485_v24 = vmul.f32 %v432_v55, %v818_v49  ;;  %v461_v49 = vor.u32 1.1754944e-38, %v460_v0  ;;  %vm469_vm6 = vweird.f32 %v328_v51 }
 0x1ce   :  { %v476_v8 = vor.u32 1.1754944e-38, %v475_v4 }
 0x1cf   :  { %v628_v14 = vpop.eup %627  ;;  %v438_v56 = vadd.f32 %v624_v42, %v437_v54 }
 0x1d0   :  { %v450_v58 = vmul.f32 %v628_v14, %v327_v16  ;;  %vm455_vm0 = vweird.f32 %v628_v14 }
 0x1d1   :  { %v442_v61 = vsel %vm441_vm15, %v624_v42, %v438_v56  ;;  %vm456_vm3 = vmor %vm454_vm2, %vm455_vm0 }
 0x1d2   :  { %v447_v62 = vsel %vm444_vm1, %v446_v15, %v442_v61  ;;  %v451_v18 = vsub.f32 1.0, %v450_v58  ;;  %v630_v63 = vpop.eup %629 }
 0x1d3   :  { %v486_v25 = vmul.f32 %v447_v62, %v834_v60  ;;  %v465_v57 = vmul.f32 %v630_v63, %v328_v51  ;;  %vm470_vm5 = vweird.f32 %v630_v63  ;;  %v473_v60 = vand.u32 2147483647, %v328_v51 }
 0x1d4   :  { %v452_v1 = vmul.f32 %v628_v14, %v451_v18  ;;  %vm471_vm7 = vmor %vm469_vm6, %vm470_vm5 }
 0x1d5   :  { %v492_v2 = vpack.c.bf16 %v486_v25, %v485_v24  ;;  %v466_v59 = vsub.f32 1.0, %v465_v57  ;;  %vm474_vm8 = vcmp.eq.f32.partialorder %v473_v60, 8.507059e+37 }
 0x1d6   :  { %v453_v3 = vadd.f32 %v628_v14, %v452_v1 }
 0x1d7   :  { %497 = vst [vmem:[%s945_s5 + $0x18] sm:$0xff] %v492_v2  ;;  %v467_v6 = vmul.f32 %v630_v63, %v466_v59 }
 0x1d8   :  { %v457_v5 = vsel %vm456_vm3, %v628_v14, %v453_v3 }
 0x1d9   :  { %v462_v36 = vsel %vm459_vm4, %v461_v49, %v457_v5  ;;  %v468_v7 = vadd.f32 %v630_v63, %v467_v6 }
 0x1da   :  { %v487_v9 = vmul.f32 %v462_v36, %v880_v45 }
 0x1db   :  { %v472_v37 = vsel %vm471_vm7, %v630_v63, %v468_v7 }
 0x1dc   :  { %v477_v10 = vsel %vm474_vm8, %v476_v8, %v472_v37 }
 0x1dd   :  { %v488_v28 = vmul.f32 %v477_v10, %v883_v46 }
 0x1df   :  { %v493_v11 = vpack.c.bf16 %v488_v28, %v487_v9 }
 0x1e1   :  { %498 = vst [vmem:[%s945_s5 + $0x20] sm:$0xff] %v493_v11 }

// kernel: custom_clip_forward.31
= control target key start
LH: loop header
LB: loop body
LE: loop exit
PB: predicated region body
PF: predicated region fallthrough
CT: control target
= control target key end

     0   :  { %vm247_vm0 = vcmask 519168   ;;  %s515_s1 = inlined_call_operand.vmem [shape: bf16[256,64], index: 1, kind: input, shape index: {}]   ;;  %s516_s2 = inlined_call_operand.vmem [shape: f32[1,64], index: 2, kind: input, shape index: {}]   ;;  %s517_s0 = inlined_call_operand.vmem [shape: bf16[40,256], index: 0, kind: input, shape index: {}]   ;;  %s518_s3 = inlined_call_operand.vmem [shape: bf16[40,64], index: 3, kind: input, shape index: {}]   ;;  %s519_s4 = inlined_call_operand.vmem [shape: bf16[40,64], index: 4, kind: output, shape index: {}]  }
   0x1   :  { %v348_v0 = vld [vmem:[%s515_s1 + $0x38] sm:$0xff]  ;;  %v347_v2 = vld [vmem:[%s515_s1 + $0x30] sm:$0xff]  ;;  %v346_v4 = vld [vmem:[%s515_s1 + $0x28] sm:$0xff] }
   0x2   :  { %v356_v1 = vld [vmem:[%s515_s1 + $0x78] sm:$0xff]  ;;  %366 = vmatpush.bf16.msra.mxu2 %v348_v0  ;;  %v355_v3 = vld [vmem:[%s515_s1 + $0x70] sm:$0xff]  ;;  %181 = vmatpush.bf16.msra.mxu0 %v348_v0  ;;  %v354_v5 = vld [vmem:[%s515_s1 + $0x68] sm:$0xff] }
   0x3   :  { %374 = vmatpush.bf16.msra.mxu3 %v356_v1  ;;  %204 = vmatpush.bf16.msra.mxu1 %v356_v1  ;;  %v345_v6 = vld [vmem:[%s515_s1 + $0x20] sm:$0xff]  ;;  %v344_v8 = vld [vmem:[%s515_s1 + $0x18] sm:$0xff]  ;;  %v343_v10 = vld [vmem:[%s515_s1 + $0x10] sm:$0xff] }
   0x4   :  { %v353_v7 = vld [vmem:[%s515_s1 + $0x60] sm:$0xff]  ;;  %v352_v9 = vld [vmem:[%s515_s1 + $0x58] sm:$0xff]  ;;  %v351_v11 = vld [vmem:[%s515_s1 + $0x50] sm:$0xff] }
   0x5   :  { %v342_v12 = vld [vmem:[%s515_s1 + $0x8] sm:$0xff]  ;;  %v341_v14 = vld [vmem:[%s515_s1] sm:$0xff]  ;;  %v267_v16 = vld [vmem:[%s517_s0 + $0x10] sm:$0xf] }
   0x6   :  { %367 = vmatpush.bf16.msra.mxu2 %v347_v2  ;;  %182 = vmatpush.bf16.msra.mxu0 %v347_v2  ;;  %v350_v13 = vld [vmem:[%s515_s1 + $0x48] sm:$0xff]  ;;  %v349_v15 = vld [vmem:[%s515_s1 + $0x40] sm:$0xff]  ;;  %v340_v17 = vld [vmem:[%s517_s0 + $0x14] sm:$0xf0] }
   0x7   :  { %375 = vmatpush.bf16.msra.mxu3 %v355_v3  ;;  %205 = vmatpush.bf16.msra.mxu1 %v355_v3  ;;  %v339_v18 = vld [vmem:[%s517_s0 + $0x14] sm:$0xf]  ;;  %v269_v19 = vld [vmem:[%s517_s0 + $0x18] sm:$0xf0]  ;;  %v259_v20 = vld [vmem:[%s517_s0] sm:$0xf]  ;;  %v268_v24 = vor.u32 %v340_v17, %v267_v16 }
   0x8   :  { %v338_v21 = vld [vmem:[%s517_s0 + $0x4] sm:$0xf0]  ;;  %v337_v22 = vld [vmem:[%s517_s0 + $0x4] sm:$0xf]  ;;  %v261_v23 = vld [vmem:[%s517_s0 + $0x8] sm:$0xf0]  ;;  %v272_v25 = vor.u32 %v339_v18, %v269_v19 }
   0x9   :  { %v260_v26 = vor.u32 %v338_v21, %v259_v20  ;;  %v264_v27 = vor.u32 %v337_v22, %v261_v23  ;;  %v21_v28 = vld [vmem:[%s517_s0 + $0x20] sm:$0xff]  ;;  %v365_v39 = vld [vmem:[%s518_s3 + $0x8] sm:$0xff]   ;;  %v231_v63 = vld [vmem:[%s518_s3 + $0x10] sm:$0xf] }
   0xa   :  { %368 = vmatpush.bf16.msra.mxu2 %v346_v4  ;;  %183 = vmatpush.bf16.msra.mxu0 %v346_v4  ;;  %v71_v29 = vunpack.c.l.b16 %v21_v28  ;;  %v72_v30 = vunpack.c.h.b16 %v21_v28  ;;  %v358_v33 = vld [vmem:[%s518_s3] sm:$0xff]   ;;  %v363_v45 = vunpack.c.l.bf16 %v365_v39  ;;  %v364_v59 = vunpack.c.h.bf16 %v365_v39 }
   0xb   :  { %376 = vmatpush.bf16.msra.mxu3 %v354_v5  ;;  %206 = vmatpush.bf16.msra.mxu1 %v354_v5  ;;  %v382_v34 = vld [vmem:[%s516_s2] ss:$0 sm:$0xff]  ;;  %v359_v38 = vunpack.c.l.bf16 %v358_v33  ;;  %v360_v51 = vunpack.c.h.bf16 %v358_v33  ;;  %v236_v4 = vunpack.c.l.bf16 %v231_v63 }
   0xc   :  { %v77_v31 = vpack.c.b16 %v71_v29, %v71_v29  ;;  %v78_v32 = vpack.c.b16 %v72_v30, %v72_v30 }
   0xe   :  { %369 = vmatpush.bf16.msra.mxu2 %v345_v6  ;;  %184 = vmatpush.bf16.msra.mxu0 %v345_v6 }
   0xf   :  { %377 = vmatpush.bf16.msra.mxu3 %v353_v7  ;;  %207 = vmatpush.bf16.msra.mxu1 %v353_v7 }
  0x12   :  { %370 = vmatpush.bf16.msra.mxu2 %v344_v8  ;;  %185 = vmatpush.bf16.msra.mxu0 %v344_v8 }
  0x13   :  { %378 = vmatpush.bf16.msra.mxu3 %v352_v9  ;;  %208 = vmatpush.bf16.msra.mxu1 %v352_v9 }
  0x16   :  { %371 = vmatpush.bf16.msra.mxu2 %v343_v10  ;;  %186 = vmatpush.bf16.msra.mxu0 %v343_v10 }
  0x17   :  { %379 = vmatpush.bf16.msra.mxu3 %v351_v11  ;;  %209 = vmatpush.bf16.msra.mxu1 %v351_v11 }
  0x1a   :  { %372 = vmatpush.bf16.msra.mxu2 %v342_v12  ;;  %187 = vmatpush.bf16.msra.mxu0 %v342_v12 }
  0x1b   :  { %380 = vmatpush.bf16.msra.mxu3 %v350_v13  ;;  %210 = vmatpush.bf16.msra.mxu1 %v350_v13 }
  0x1e   :  { %373 = vmatpush.bf16.msra.mxu2 %v341_v14  ;;  %188 = vmatpush.bf16.msra.mxu0 %v341_v14 }
  0x1f   :  { %381 = vmatpush.bf16.msra.mxu3 %v349_v15  ;;  %211 = vmatpush.bf16.msra.mxu1 %v349_v15 }
  0x21   :  { %194 = vmatmul.bf16.vlgmr.msra.gmra.mxu2 %v268_v24  ;;  %189 = vmatmul.bf16.vlgmr.msra.gmra.mxu0 %v260_v26 }
  0x22   :  { %217 = vmatmul.bf16.vlgmr.msra.gmra.mxu3 %v272_v25  ;;  %212 = vmatmul.bf16.vlgmr.msra.gmra.mxu1 %v264_v27 }
  0x31   :  { %199 = vmatmul.bf16.gmra.mxu2 %v77_v31 }
  0x32   :  { %222 = vmatmul.bf16.gmra.mxu3 %v78_v32 }
  0x9e   :  { %v190_v35 = vpop.f32.mrf.mxu0 }
  0x9f   :  { %v213_v36 = vpop.f32.mrf.mxu1  ;;  %v191_v37 = vadd.f32 %v382_v34, %v190_v35 }
  0xa1   :  { %v214_v40 = vadd.f32 %v213_v36, %v191_v37 }
  0xa3   :  { %v237_v43 = vadd.f32 %v359_v38, %v214_v40 }
  0xa4   :  { %v195_v41 = vpop.f32.mrf.mxu2 }
  0xa5   :  { %v218_v42 = vpop.f32.mrf.mxu3  ;;  %v196_v44 = vadd.f32 %v382_v34, %v195_v41  ;;  %v242_v46 = vpack.c.bf16 %v237_v43, %v237_v43 }
  0xa6   :  { %v192_v48 = vpop.f32.mrf.mxu0 }
  0xa7   :  { %v219_v47 = vadd.f32 %v218_v42, %v196_v44  ;;  %v215_v49 = vpop.f32.mrf.mxu1  ;;  %248 = vst.msk [vmem:[%s519_s4] sm:$0xf] %vm247_vm0, %v242_v46  ;;  %v193_v50 = vadd.f32 %v382_v34, %v192_v48 }
  0xa9   :  { %v239_v52 = vadd.f32 %v363_v45, %v219_v47  ;;  %v216_v53 = vadd.f32 %v215_v49, %v193_v50 }
  0xab   :  { %v244_v54 = vpack.c.bf16 %v239_v52, %v239_v52  ;;  %v238_v57 = vadd.f32 %v360_v51, %v216_v53 }
  0xac   :  { %v197_v55 = vpop.f32.mrf.mxu2 }
  0xad   :  { %v220_v56 = vpop.f32.mrf.mxu3  ;;  %250 = vst.msk [vmem:[%s519_s4 + $0x8] sm:$0xf] %vm247_vm0, %v244_v54  ;;  %v198_v58 = vadd.f32 %v382_v34, %v197_v55  ;;  %v243_v60 = vpack.c.bf16 %v238_v57, %v238_v57 }
  0xaf   :  { %v221_v61 = vadd.f32 %v220_v56, %v198_v58  ;;  %249 = vst.msk [vmem:[%s519_s4 + $0x4] sm:$0xf] %vm247_vm0, %v243_v60 }
  0xb1   :  { %v240_v62 = vadd.f32 %v364_v59, %v221_v61 }
  0xb3   :  { %v245_v0 = vpack.c.bf16 %v240_v62, %v240_v62 }
  0xb4   :  { %v200_v1 = vpop.f32.mrf.mxu2 }
  0xb5   :  { %v223_v2 = vpop.f32.mrf.mxu3  ;;  %251 = vst.msk [vmem:[%s519_s4 + $0xc] sm:$0xf] %vm247_vm0, %v245_v0  ;;  %v201_v3 = vadd.f32 %v382_v34, %v200_v1 }
  0xb7   :  { %v224_v5 = vadd.f32 %v223_v2, %v201_v3 }
  0xb9   :  { %v241_v6 = vadd.f32 %v236_v4, %v224_v5 }
  0xbb   :  { %v246_v7 = vpack.c.bf16 %v241_v6, %v241_v6 }
  0xbc   :  { %v202_v8 = vpop.f32.mrf.mxu2 }
  0xbd   :  { %v225_v9 = vpop.f32.mrf.mxu3  ;;  %252 = vst.msk [vmem:[%s519_s4 + $0x10] sm:$0xf] %vm247_vm0, %v246_v7 }

// kernel: custom_clip_forward.37
= control target key start
LH: loop header
LB: loop body
LE: loop exit
PB: predicated region body
PF: predicated region fallthrough
CT: control target
= control target key end

     0   :  { %vm20_vm0 = vcmask 523264   ;;  %v144_v3 = vmov 64.0   ;;  %vm110_vm5 = vcmask 519168   ;;  %s197_s0 = inlined_call_operand.vmem [shape: bf16[8,64], index: 0, kind: input, shape index: {}]   ;;  %s198_s1 = inlined_call_operand.vmem [shape: f32[1,64], index: 1, kind: input, shape index: {}]   ;;  %s199_s2 = inlined_call_operand.vmem [shape: f32[1,64], index: 2, kind: input, shape index: {}]   ;;  %s200_s3 = inlined_call_operand.vmem [shape: bf16[64,64], index: 3, kind: input, shape index: {}]   ;;  %s201_s4 = inlined_call_operand.vmem [shape: bf16[8,64], index: 4, kind: output, shape index: {}]  }
   0x1   :  { %v18_v0 = vld [vmem:[%s197_s0] sm:$0xf]  ;;  %140 = vrcp.f32 %v144_v3  ;;  %v136_v15 = vld [vmem:[%s200_s3 + $0x18] sm:$0xff]  ;;  %v135_v16 = vld [vmem:[%s200_s3 + $0x10] sm:$0xff] }
   0x2   :  { %v19_v1 = vunpack.c.l.bf16 %v18_v0  ;;  %100 = vmatpush.bf16.msra.mxu0 %v136_v15  ;;  %v134_v17 = vld [vmem:[%s200_s3 + $0x8] sm:$0xff]  ;;  %v133_v18 = vld [vmem:[%s200_s3] sm:$0xff] }
   0x3   :  { %v138_v28 = vld [vmem:[%s198_s1] ss:$0 sm:$0xff] }
   0x4   :  { %v21_v2 = vsel %vm20_vm0, %v19_v1, 0.0  ;;  %v139_v31 = vld [vmem:[%s199_s2] ss:$0 sm:$0xff] }
   0x5   :  { %22 = vadd.xlane.f32.xlu0 %v21_v2 }
   0x6   :  { %101 = vmatpush.bf16.msra.mxu0 %v135_v16 }
   0x7   :  { %v141_v4 = vpop.eup %140 }
   0x8   :  { %v25_v5 = vmul.f32 64.0, %v141_v4  ;;  %vm29_vm1 = vweird.f32 %v141_v4 }
   0xa   :  { %v26_v6 = vsub.f32 1.0, %v25_v5  ;;  %102 = vmatpush.bf16.msra.mxu0 %v134_v17 }
   0xc   :  { %v27_v7 = vmul.f32 %v141_v4, %v26_v6 }
   0xe   :  { %v28_v8 = vadd.f32 %v141_v4, %v27_v7  ;;  %103 = vmatpush.bf16.msra.mxu0 %v133_v18 }
  0x10   :  { %v30_v9 = vsel %vm29_vm1, %v141_v4, %v28_v8 }
  0x78   :  { %v23_v10 = vpop.xlane.xlu0 %22 }
  0x79   :  { %v31_v11 = vmul.f32 %v30_v9, %v23_v10 }
  0x7b   :  { %v32_v12 = vsub.f32 %v19_v1, %v31_v11 }
  0x7d   :  { %v33_v13 = vmul.f32 %v32_v12, %v32_v12 }
  0x7f   :  { %v34_v14 = vsel %vm20_vm0, %v33_v13, 0.0 }
  0x80   :  { %35 = vadd.xlane.f32.xlu0 %v34_v14 }
  0xf3   :  { %v36_v19 = vpop.xlane.xlu0 %35 }
  0xf4   :  { %v37_v20 = vmul.f32 %v36_v19, %v30_v9 }
  0xf6   :  { %v38_v21 = vadd.f32 1e-05, %v37_v20 }
  0xf8   :  { %142 = vrsqrt.f32 %v38_v21  ;;  %vm45_vm3 = vweird.f32 %v38_v21 }
  0xfe   :  { %v143_v22 = vpop.eup %142 }
  0xff   :  { %v40_v23 = vmul.f32 %v143_v22, %v38_v21  ;;  %vm46_vm2 = vweird.f32 %v143_v22 }
 0x100   :  { %vm47_vm4 = vmor %vm45_vm3, %vm46_vm2 }
 0x101   :  { %v41_v24 = vmul.f32 %v143_v22, %v40_v23 }
 0x103   :  { %v42_v25 = vmul.f32 0.5, %v41_v24 }
 0x105   :  { %v43_v26 = vsub.f32 1.5, %v42_v25 }
 0x107   :  { %v44_v27 = vmul.f32 %v143_v22, %v43_v26 }
 0x109   :  { %v48_v29 = vsel %vm47_vm4, %v143_v22, %v44_v27 }
 0x10a   :  { %v49_v30 = vmul.f32 %v48_v29, %v32_v12 }
 0x10c   :  { %v54_v32 = vmul.f32 %v138_v28, %v49_v30 }
 0x10e   :  { %v59_v33 = vadd.f32 %v139_v31, %v54_v32 }
 0x110   :  { %v60_v34 = vpack.c.bf16 %v59_v33, %v59_v33 }
 0x112   :  { %132 = vmatmul.msk.bf16.vlgmr.msra.gmra.mxu0 %vm20_vm0, %v60_v34 }
 0x18f   :  { %v105_v35 = vpop.f32.mrf.mxu0 }
 0x190   :  { %v109_v36 = vpack.c.bf16 %v105_v35, %v105_v35 }
 0x192   :  { %111 = vst.msk [vmem:[%s201_s4] sm:$0xf] %vm110_vm5, %v109_v36 }
 0x197   :  { %v107_v37 = vpop.f32.mrf.mxu0 }

// kernel: custom_clip_forward.39
= control target key start
LH: loop header
LB: loop body
LE: loop exit
PB: predicated region body
PF: predicated region fallthrough
CT: control target
= control target key end

     0   :  { %s626_s6 = smov 0   ;;  %s724_s0 = inlined_call_operand.vmem [shape: bf16[3,16,192], index: 0, kind: input, shape index: {}]   ;;  %s725_s1 = inlined_call_operand.vmem [shape: bf16[3,16,64], index: 1, kind: output, shape index: {}]  }
   0x1 LB: > { %s521_s7 = sadd.s32 4294967295, %s606_s6   ;;  %p525_p0 = scmp.ge.s32.totalorder %s606_s6, 1  ;;  %s606_s6 = sphi %s626_s6, %s11_s6  }
   0x2   : > { %p87_p1 = scmp.lt.s32.totalorder %s606_s6, 4 }
   0x4   : > { %p88_p2 = pnand %p525_p0, %p87_p1 }
   0x5   : > { %p107_p3 = scmp.lt.s32.totalorder (!%p88_p2), %s521_s7, 2  ;;  %s608_s12 = smov (!%p88_p2), 64  }
   0x6   : > { %91 = sbr.rel (%p88_p2) target bundleno = 1224 (0x4c8), region = 24  ;;  %s609_s13 = smov (!%p88_p2), 112  }
   0x7   : > { %s610_s14 = smov (!%p88_p2), 16   ;;  %s612_s15 = smov (!%p88_p2), 48  }
   0x8   : > { %s613_s16 = smov (!%p88_p2), 32   ;;  %s614_s17 = smov (!%p88_p2), 96  }
   0x9   : > { %s615_s18 = smov (!%p88_p2), 80  }
   0xb   : > { %s727_s7 = smov (!%p107_p3, %s521_s7), 2  ;;  %vm138_vm0 = vcmask 130048   ;;  %v118_v5 = vlaneseq  ;;  %v611_v9 = vmov 0.0   ;;  %vm211_vm3 = vcmask 125952  }
   0xc   : > { %s548_s8 = sshll.u32 %s727_s7, 4  ;;  %s549_s19 = sshll.u32 %s727_s7, 3  ;;  %vm295_vm4 = vcmask 257152   ;;  %vm379_vm5 = vcmask 388352   ;;  %vm463_vm6 = vcmask 519552  }
   0xd   : > { %s640_s11 = scalar_lea.vmem %s724_s0, %s548_s8  ;;  %v119_v6 = vshrl.u32 %v118_v5, 7  ;;  %v122_v7 = vand.u32 127, %v118_v5  ;;  %s684_s22 = scalar_lea.vmem %s725_s1, %s549_s19 }
   0xe   : > { %v532_v0 = vld [vmem:[%s640_s11] sm:$0xf]  ;;  %v550_v1 = vld [vmem:[%s640_s11 + $0x4] sm:$0xf0]  ;;  %v537_v35 = vld [vmem:[%s640_s11 + $0x4] sm:$0xf] }
   0xf   : > { %v533_v2 = vor.u32 %v550_v1, %v532_v0  ;;  %vm123_vm1 = vcmp.gt.s32.totalorder %v122_v7, %v119_v6  ;;  %v120_v12 = vadd.s32 8, %v119_v6  ;;  %v551_v36 = vld [vmem:[%s640_s11 + $0x8] sm:$0xf0] }
  0x10   : > { %v648_v10 = vsel %vm123_vm1, -1e+09, %v611_v9  ;;  %v667_v37 = vor.u32 %v551_v36, %v537_v35 }
  0x11   : > { %136 = vrot.lane.b32.xlu0 %v533_v2, %s608_s12  ;;  %214 = vrot.lane.b32.xlu2 %v533_v2, %s609_s13  ;;  %vm124_vm2 = vcmp.gt.s32.totalorder %v122_v7, %v120_v12 }
  0x12   : > { %v652_v16 = vsel %vm124_vm2, -1e+09, %v611_v9  ;;  %202 = vmatpush.bf16.msra.mxu1 %v667_v37 }
  0x19   : > { %384 = vrot.lane.b32.xlu2 %v533_v2, %s610_s14 }
  0x6b   : > { %v215_v23 = vpop.permute.xlu2 %214 }
  0x73   : > { %v385_v29 = vpop.permute.xlu2 %384 }
  0x74   : > { %v390_v30 = vsel %vm138_vm0, %v385_v29, 0 }
  0x83   : > { %v137_v3 = vpop.permute.xlu0 %136 }
  0x84   : > { %v143_v4 = vsel %vm138_vm0, %v137_v3, 0 }
  0x85   : > { %152 = vmatpush.bf16.xpose.msra.mxu0 %v143_v4 }
  0x8c   : > { %534 = vmatmul.msk.bf16.vlgmr.msra.gmra.mxu0 %vm138_vm0, %v533_v2 }
  0x8d   : > { %399 = vmatpush.bf16.xpose.msrb.mxu0 %v390_v30 }
 0x109   : > { %v154_v8 = vpop.f32.mrf.mxu0 }
 0x10a   : > { %v159_v11 = vmul.f32 0.25, %v154_v8 }
 0x10c   : > { %v161_v13 = vadd.f32 %v159_v11, %v648_v10 }
 0x10e   : > { %v163_v14 = vsel %vm138_vm0, %v161_v13, -inf }
 0x10f   : > { %164 = vmax.xlane.f32.xlu0 %v163_v14 }
 0x111   : > { %v156_v15 = vpop.f32.mrf.mxu0 }
 0x112   : > { %v160_v17 = vmul.f32 0.25, %v156_v15 }
 0x114   : > { %v162_v18 = vadd.f32 %v160_v17, %v652_v16 }
 0x116   : > { %v166_v19 = vsel %vm138_vm0, %v162_v18, -inf }
 0x117   : > { %167 = vmax.xlane.f32.xlu1 %v166_v19 }
 0x130   : > { %216 = vrot.lane.b32.xlu1 %v533_v2, %s612_s15 }
 0x138   : > { %300 = vrot.lane.b32.xlu1 %v533_v2, %s613_s16 }
 0x140   : > { %298 = vrot.lane.b32.xlu1 %v533_v2, %s614_s17 }
 0x182   : > { %v165_v20 = vpop.xlane.xlu0 %164 }
 0x183   : > { %v169_v21 = vsub.f32 %v161_v13, %v165_v20 }
 0x185   : > { %v171_v22 = vmul.f32 1.442695, %v169_v21 }
 0x187   : > { %568 = vpow2.f32 %v171_v22 }
 0x18a   : > { %v168_v24 = vpop.xlane.xlu1 %167 }
 0x18b   : > { %v170_v25 = vsub.f32 %v162_v18, %v168_v24 }
 0x18d   : > { %v569_v26 = vpop.eup %568  ;;  %v173_v27 = vmul.f32 1.442695, %v170_v25 }
 0x18e   : > { %v175_v28 = vsel %vm138_vm0, %v569_v26, 0.0 }
 0x18f   : > { %570 = vpow2.f32 %v173_v27  ;;  %176 = vadd.xlane.f32.xlu2 %v175_v28 }
 0x195   : > { %v571_v31 = vpop.eup %570 }
 0x196   : > { %v178_v32 = vsel %vm138_vm0, %v571_v31, 0.0 }
 0x197   : > { %179 = vadd.xlane.f32.xlu2 %v178_v32 }
 0x1a2   : > { %v217_v33 = vpop.permute.xlu1 %216 }
 0x1a3   : > { %v222_v34 = vsel %vm138_vm0, %v217_v33, 0 }
 0x1a4   : > { %231 = vmatpush.bf16.xpose.msra.mxu2 %v222_v34 }
 0x1aa   : > { %v301_v38 = vpop.permute.xlu1 %300 }
 0x1ab   : > { %540 = vmatmul.msk.bf16.vlgmr.msra.gmra.mxu2 %vm138_vm0, %v215_v23  ;;  %v306_v39 = vsel %vm138_vm0, %v301_v38, 0 }
 0x1ac   : > { %315 = vmatpush.bf16.xpose.msrb.mxu1 %v306_v39 }
 0x1af   : > { %382 = vrot.lane.b32.xlu2 %v533_v2, %s615_s18 }
 0x1b2   : > { %v299_v48 = vpop.permute.xlu1 %298 }
 0x202   : > { %v177_v40 = vpop.xlane.xlu2 %176 }
 0x203   : > { %572 = vrcp.f32 %v177_v40 }
 0x209   : > { %v573_v42 = vpop.eup %572 }
 0x20a   : > { %v180_v41 = vpop.xlane.xlu2 %179  ;;  %v183_v45 = vmul.f32 %v573_v42, %v569_v26 }
 0x20b   : > { %574 = vrcp.f32 %v180_v41 }
 0x211   : > { %v575_v43 = vpop.eup %574 }
 0x212   : > { %v383_v44 = vpop.permute.xlu2 %382  ;;  %v184_v46 = vmul.f32 %v575_v43, %v571_v31 }
 0x213   : > { %544 = vmatmul.msk.bf16.vlgmr.msrb.gmra.mxu0 %vm138_vm0, %v383_v44 }
 0x214   : > { %v185_v47 = vpack.c.bf16 %v184_v46, %v183_v45 }
 0x216   : > { %539 = vmatmul.msk.bf16.vlgmr.msra.gmra.mxu1 %vm138_vm0, %v185_v47 }
 0x226   : > { %542 = vmatmul.msk.bf16.vlgmr.msrb.gmra.mxu1 %vm138_vm0, %v299_v48 }
 0x22e   : > { %v233_v49 = vpop.f32.mrf.mxu2 }
 0x22f   : > { %v238_v50 = vmul.f32 0.25, %v233_v49 }
 0x231   : > { %v240_v51 = vadd.f32 %v238_v50, %v648_v10 }
 0x233   : > { %v242_v52 = vsel %vm138_vm0, %v240_v51, -inf }
 0x234   : > { %243 = vmax.xlane.f32.xlu1 %v242_v52 }
 0x236   : > { %v235_v53 = vpop.f32.mrf.mxu2 }
 0x237   : > { %v239_v54 = vmul.f32 0.25, %v235_v53 }
 0x239   : > { %v241_v55 = vadd.f32 %v239_v54, %v652_v16 }
 0x23b   : > { %v245_v56 = vsel %vm138_vm0, %v241_v55, -inf }
 0x23c   : > { %246 = vmax.xlane.f32.xlu0 %v245_v56 }
 0x24d   : > { %265 = vrot.lane.b32.xlu1 %v667_v37, %s609_s13 }
 0x290   : > { %v401_v57 = vpop.f32.mrf.mxu0 }
 0x291   : > { %v406_v58 = vmul.f32 0.25, %v401_v57 }
 0x293   : > { %v204_v59 = vpop.f32.mrf.mxu1  ;;  %v408_v60 = vadd.f32 %v406_v58, %v648_v10 }
 0x294   : > { %v209_v61 = vpack.c.bf16 %v204_v59, %v204_v59 }
 0x295   : > { %v410_v62 = vsel %vm138_vm0, %v408_v60, -inf }
 0x296   : > { %212 = vst.msk [vmem:[%s684_s22] sm:$0xf] %vm211_vm3, %v209_v61  ;;  %411 = vmax.xlane.f32.xlu0 %v410_v62 }
 0x298   : > { %v403_v63 = vpop.f32.mrf.mxu0 }
 0x299   : > { %v407_v0 = vmul.f32 0.25, %v403_v63 }
 0x29b   : > { %v409_v1 = vadd.f32 %v407_v0, %v652_v16  ;;  %v206_v2 = vpop.f32.mrf.mxu1 }
 0x29c   : > { %v210_v3 = vpack.c.bf16 %v206_v2, %v206_v2 }
 0x29d   : > { %v413_v4 = vsel %vm138_vm0, %v409_v1, -inf }
 0x29e   : > { %213 = vst.msk [vmem:[%s684_s22 + $0x4] sm:$0xf] %vm211_vm3, %v210_v3  ;;  %414 = vmax.xlane.f32.xlu0 %v413_v4 }
 0x2a3   : > { %v317_v5 = vpop.f32.mrf.mxu1 }
 0x2a4   : > { %v322_v6 = vmul.f32 0.25, %v317_v5 }
 0x2a6   : > { %v324_v7 = vadd.f32 %v322_v6, %v648_v10 }
 0x2a7   : > { %v244_v8 = vpop.xlane.xlu1 %243 }
 0x2a8   : > { %v248_v9 = vsub.f32 %v240_v51, %v244_v8  ;;  %v326_v11 = vsel %vm138_vm0, %v324_v7, -inf }
 0x2a9   : > { %327 = vmax.xlane.f32.xlu2 %v326_v11 }
 0x2aa   : > { %v250_v12 = vmul.f32 1.442695, %v248_v9 }
 0x2ab   : > { %v319_v14 = vpop.f32.mrf.mxu1 }
 0x2ac   : > { %576 = vpow2.f32 %v250_v12  ;;  %v323_v18 = vmul.f32 0.25, %v319_v14 }
 0x2ae   : > { %v325_v21 = vadd.f32 %v323_v18, %v652_v16 }
 0x2af   : > { %v247_v13 = vpop.xlane.xlu0 %246 }
 0x2b0   : > { %v249_v17 = vsub.f32 %v241_v55, %v247_v13  ;;  %v329_v10 = vsel %vm138_vm0, %v325_v21, -inf }
 0x2b2   : > { %v577_v15 = vpop.eup %576  ;;  %v252_v20 = vmul.f32 1.442695, %v249_v17 }
 0x2b3   : > { %v254_v19 = vsel %vm138_vm0, %v577_v15, 0.0 }
 0x2b4   : > { %255 = vadd.xlane.f32.xlu0 %v254_v19  ;;  %578 = vpow2.f32 %v252_v20 }
 0x2ba   : > { %v579_v22 = vpop.eup %578 }
 0x2bb   : > { %v257_v23 = vsel %vm138_vm0, %v579_v22, 0.0 }
 0x2bc   : > { %330 = vmax.xlane.f32.xlu0 %v329_v10 }
 0x2bf   : > { %v266_v33 = vpop.permute.xlu1 %265 }
 0x2c0   : > { %278 = vmatpush.bf16.msra.mxu3 %v266_v33 }
 0x2c4   : > { %258 = vadd.xlane.f32.xlu0 %v257_v23 }
 0x309   : > { %v412_v24 = vpop.xlane.xlu0 %411 }
 0x30a   : > { %v416_v25 = vsub.f32 %v408_v60, %v412_v24 }
 0x30c   : > { %v418_v26 = vmul.f32 1.442695, %v416_v25 }
 0x30e   : > { %580 = vpow2.f32 %v418_v26 }
 0x311   : > { %v415_v27 = vpop.xlane.xlu0 %414 }
 0x312   : > { %v417_v28 = vsub.f32 %v409_v1, %v415_v27 }
 0x314   : > { %v581_v29 = vpop.eup %580  ;;  %v420_v30 = vmul.f32 1.442695, %v417_v28 }
 0x315   : > { %v422_v31 = vsel %vm138_vm0, %v581_v29, 0.0 }
 0x316   : > { %582 = vpow2.f32 %v420_v30  ;;  %423 = vadd.xlane.f32.xlu2 %v422_v31 }
 0x31c   : > { %v583_v16 = vpop.eup %582  ;;  %v328_v32 = vpop.xlane.xlu2 %327 }
 0x31d   : > { %v332_v34 = vsub.f32 %v324_v7, %v328_v32  ;;  %v425_v35 = vsel %vm138_vm0, %v583_v16, 0.0 }
 0x31e   : > { %426 = vadd.xlane.f32.xlu0 %v425_v35 }
 0x31f   : > { %v334_v36 = vmul.f32 1.442695, %v332_v34 }
 0x321   : > { %584 = vpow2.f32 %v334_v36 }
 0x327   : > { %v585_v38 = vpop.eup %584  ;;  %v256_v39 = vpop.xlane.xlu0 %255 }
 0x328   : > { %v338_v40 = vsel %vm138_vm0, %v585_v38, 0.0 }
 0x329   : > { %339 = vadd.xlane.f32.xlu2 %v338_v40 }
 0x32f   : > { %v331_v41 = vpop.xlane.xlu0 %330 }
 0x330   : > { %v333_v42 = vsub.f32 %v325_v21, %v331_v41 }
 0x332   : > { %v336_v43 = vmul.f32 1.442695, %v333_v42 }
 0x334   : > { %586 = vpow2.f32 %v336_v43 }
 0x335   : > { %588 = vrcp.f32 %v256_v39 }
 0x337   : > { %v259_v44 = vpop.xlane.xlu0 %258 }
 0x338   : > { %590 = vrcp.f32 %v259_v44 }
 0x33a   : > { %v587_v45 = vpop.eup %586 }
 0x33b   : > { %v341_v46 = vsel %vm138_vm0, %v587_v45, 0.0  ;;  %v589_v47 = vpop.eup %588 }
 0x33c   : > { %342 = vadd.xlane.f32.xlu0 %v341_v46  ;;  %v262_v49 = vmul.f32 %v589_v47, %v577_v15 }
 0x33e   : > { %v591_v48 = vpop.eup %590 }
 0x33f   : > { %v263_v50 = vmul.f32 %v591_v48, %v579_v22 }
 0x341   : > { %v264_v51 = vpack.c.bf16 %v263_v50, %v262_v49  ;;  %349 = vrot.lane.b32.xlu2 %v667_v37, %s614_s17 }
 0x343   : > { %541 = vmatmul.msk.bf16.vlgmr.msra.gmra.mxu3 %vm138_vm0, %v264_v51 }
 0x350   : > { %433 = vrot.lane.b32.xlu0 %v667_v37, %s615_s18 }
 0x389   : > { %v424_v52 = vpop.xlane.xlu2 %423 }
 0x391   : > { %v427_v55 = vpop.xlane.xlu0 %426 }
 0x39c   : > { %v340_v53 = vpop.xlane.xlu2 %339 }
 0x39d   : > { %592 = vrcp.f32 %v340_v53 }
 0x3a3   : > { %v593_v57 = vpop.eup %592 }
 0x3a4   : > { %v350_v54 = vpop.permute.xlu2 %349  ;;  %v346_v59 = vmul.f32 %v593_v57, %v585_v38 }
 0x3a5   : > { %362 = vmatpush.bf16.msrb.mxu3 %v350_v54 }
 0x3af   : > { %v343_v56 = vpop.xlane.xlu0 %342 }
 0x3b0   : > { %594 = vrcp.f32 %v343_v56 }
 0x3b1   : > { %596 = vrcp.f32 %v427_v55 }
 0x3b2   : > { %598 = vrcp.f32 %v424_v52 }
 0x3b6   : > { %v595_v58 = vpop.eup %594 }
 0x3b7   : > { %v347_v60 = vmul.f32 %v595_v58, %v587_v45  ;;  %v597_v62 = vpop.eup %596 }
 0x3b8   : > { %v599_v37 = vpop.eup %598  ;;  %v431_v63 = vmul.f32 %v597_v62, %v583_v16 }
 0x3b9   : > { %v348_v61 = vpack.c.bf16 %v347_v60, %v346_v59  ;;  %v430_v0 = vmul.f32 %v599_v37, %v581_v29 }
 0x3bb   : > { %543 = vmatmul.msk.bf16.vlgmr.msrb.gmra.mxu3 %vm138_vm0, %v348_v61  ;;  %v432_v2 = vpack.c.bf16 %v431_v63, %v430_v0 }
 0x3c2   : > { %v434_v1 = vpop.permute.xlu0 %433 }
 0x3c3   : > { %446 = vmatpush.bf16.msrb.mxu2 %v434_v1 }
 0x3c6   : > { %v280_v3 = vpop.f32.mrf.mxu3  ;;  %545 = vmatmul.msk.bf16.vlgmr.msrb.gmra.mxu2 %vm138_vm0, %v432_v2 }
 0x3c7   : > { %v285_v4 = vpack.c.bf16 %v280_v3, %v280_v3 }
 0x3c9   : > { %289 = vrot.lane.b32.xlu1 %v285_v4, %s610_s14 }
 0x3ce   : > { %v282_v5 = vpop.f32.mrf.mxu3 }
 0x3cf   : > { %v286_v6 = vpack.c.bf16 %v282_v5, %v282_v5 }
 0x3d1   : > { %291 = vrot.lane.b32.xlu1 %v286_v6, %s610_s14 }
 0x43b   : > { %v290_v7 = vpop.permute.xlu1 %289 }
 0x43c   : > { %296 = vst.msk [vmem:[%s684_s22] sm:$0xf] %vm295_vm4, %v290_v7 }
 0x43e   : > { %v364_v8 = vpop.f32.mrf.mxu3 }
 0x43f   : > { %v369_v9 = vpack.c.bf16 %v364_v8, %v364_v8 }
 0x441   : > { %373 = vrot.lane.b32.xlu1 %v369_v9, %s613_s16 }
 0x443   : > { %v292_v11 = vpop.permute.xlu1 %291 }
 0x444   : > { %297 = vst.msk [vmem:[%s684_s22 + $0x4] sm:$0xf] %vm295_vm4, %v292_v11 }
 0x446   : > { %v366_v12 = vpop.f32.mrf.mxu3 }
 0x447   : > { %v370_v13 = vpack.c.bf16 %v366_v12, %v366_v12 }
 0x449   : > { %v448_v14 = vpop.f32.mrf.mxu2  ;;  %375 = vrot.lane.b32.xlu0 %v370_v13, %s613_s16 }
 0x44a   : > { %v453_v15 = vpack.c.bf16 %v448_v14, %v448_v14 }
 0x44c   : > { %457 = vrot.lane.b32.xlu2 %v453_v15, %s612_s15 }
 0x451   : > { %v450_v17 = vpop.f32.mrf.mxu2 }
 0x452   : > { %v454_v18 = vpack.c.bf16 %v450_v17, %v450_v17 }
 0x454   : > { %459 = vrot.lane.b32.xlu1 %v454_v18, %s612_s15 }
 0x4a6   : > { %v458_v20 = vpop.permute.xlu2 %457 }
 0x4b3   : > { %v374_v19 = vpop.permute.xlu1 %373 }
 0x4b4   : > { %380 = vst.msk [vmem:[%s684_s22] sm:$0xf] %vm379_vm5, %v374_v19 }
 0x4b5   : > { %464 = vst.msk [vmem:[%s684_s22] sm:$0xf] %vm463_vm6, %v458_v20 }
 0x4bb   : > { %v376_v21 = vpop.permute.xlu0 %375 }
 0x4bc   : > { %381 = vst.msk [vmem:[%s684_s22 + $0x4] sm:$0xf] %vm379_vm5, %v376_v21 }
 0x4c6   : > { %v460_v10 = vpop.permute.xlu1 %459 }
 0x4c7   : > { %465 = vst.msk [vmem:[%s684_s22 + $0x4] sm:$0xf] %vm463_vm6, %v460_v10 }
 0x4c8 PF: > { %s11_s6 = sadd.s32 1, %s606_s6  }
 0x4c9   : > { %p8_p4 = scmp.ge.s32.totalorder %s11_s6, 5  }
 0x4cb   :  { %10 = sbr.rel (!%p8_p4) target bundleno = 1 (0x1), region = 54 }

// kernel: custom_clip_forward.38
= control target key start
LH: loop header
LB: loop body
LE: loop exit
PB: predicated region body
PF: predicated region fallthrough
CT: control target
= control target key end

     0   :  { %vm33_vm0 = vcmask 523264   ;;  %v411_v15 = vmov 64.0   ;;  %s640_s0 = inlined_call_operand.vmem [shape: bf16[48,64], index: 0, kind: input, shape index: {}]   ;;  %s641_s1 = inlined_call_operand.vmem [shape: f32[1,64], index: 1, kind: input, shape index: {}]   ;;  %s642_s2 = inlined_call_operand.vmem [shape: f32[1,64], index: 2, kind: input, shape index: {}]   ;;  %s643_s3 = inlined_call_operand.vmem [shape: bf16[64,192], index: 3, kind: input, shape index: {}]   ;;  %s644_s4 = inlined_call_operand.vmem [shape: f32[1,192], index: 4, kind: input, shape index: {}]   ;;  %s645_s5 = inlined_call_operand.vmem [shape: bf16[48,192], index: 5, kind: output, shape index: {}]  }
   0x1   :  { %v385_v0 = vld [vmem:[%s640_s0 + $0x10] sm:$0xff]   ;;  %v384_v1 = vld [vmem:[%s640_s0 + $0x8] sm:$0xff]   ;;  %v373_v2 = vld [vmem:[%s640_s0] sm:$0xff]   ;;  %397 = vrcp.f32 %v411_v15 }
   0x2   :  { %v382_v3 = vunpack.c.l.bf16 %v385_v0  ;;  %v378_v4 = vunpack.c.l.bf16 %v384_v1  ;;  %v374_v5 = vunpack.c.l.bf16 %v373_v2  ;;  %v383_v9 = vunpack.c.h.bf16 %v385_v0  ;;  %v352_v52 = vld [vmem:[%s643_s3 + $0x30] sm:$0xf]  ;;  %v371_v53 = vld [vmem:[%s643_s3 + $0x34] sm:$0xf0]  ;;  %v370_v54 = vld [vmem:[%s643_s3 + $0x34] sm:$0xf] }
   0x3   :  { %v379_v10 = vunpack.c.h.bf16 %v384_v1  ;;  %v375_v11 = vunpack.c.h.bf16 %v373_v2  ;;  %v353_v55 = vor.u32 %v371_v53, %v352_v52  ;;  %v354_v56 = vld [vmem:[%s643_s3 + $0x38] sm:$0xf0]  ;;  %v344_v58 = vld [vmem:[%s643_s3 + $0x20] sm:$0xf]  ;;  %v369_v59 = vld [vmem:[%s643_s3 + $0x24] sm:$0xf0] }
   0x4   :  { %v46_v6 = vsel %vm33_vm0, %v382_v3, 0.0  ;;  %v40_v7 = vsel %vm33_vm0, %v378_v4, 0.0  ;;  %v34_v8 = vsel %vm33_vm0, %v374_v5, 0.0  ;;  %v49_v12 = vsel %vm33_vm0, %v383_v9, 0.0  ;;  %v368_v60 = vld [vmem:[%s643_s3 + $0x24] sm:$0xf] }
   0x5   :  { %47 = vadd.xlane.f32.xlu1 %v46_v6  ;;  %41 = vadd.xlane.f32.xlu0 %v40_v7  ;;  %v43_v13 = vsel %vm33_vm0, %v379_v10, 0.0  ;;  %v37_v14 = vsel %vm33_vm0, %v375_v11, 0.0  ;;  %v357_v57 = vor.u32 %v370_v54, %v354_v56  ;;  %v345_v61 = vor.u32 %v369_v59, %v344_v58  ;;  %v346_v62 = vld [vmem:[%s643_s3 + $0x28] sm:$0xf0]  ;;  %v336_v0 = vld [vmem:[%s643_s3 + $0x10] sm:$0xf] }
   0x6   :  { %35 = vadd.xlane.f32.xlu2 %v34_v8  ;;  %386 = vmatpush.bf16.msra.mxu2 %v353_v55  ;;  %v349_v63 = vor.u32 %v368_v60, %v346_v62  ;;  %v367_v1 = vld [vmem:[%s643_s3 + $0x14] sm:$0xf0]  ;;  %v366_v2 = vld [vmem:[%s643_s3 + $0x14] sm:$0xf]  ;;  %v338_v6 = vld [vmem:[%s643_s3 + $0x18] sm:$0xf0] }
   0x7   :  { %v398_v16 = vpop.eup %397  ;;  %263 = vmatpush.bf16.msra.mxu0 %v353_v55  ;;  %390 = vmatpush.bf16.msra.mxu3 %v357_v57  ;;  %v341_v8 = vor.u32 %v366_v2, %v338_v6 }
   0x8   :  { %v53_v17 = vmul.f32 64.0, %v398_v16  ;;  %vm57_vm1 = vweird.f32 %v398_v16  ;;  %287 = vmatpush.bf16.msra.mxu1 %v357_v57 }
   0xa   :  { %v54_v18 = vsub.f32 1.0, %v53_v17  ;;  %387 = vmatpush.bf16.msra.mxu2 %v345_v61 }
   0xb   :  { %264 = vmatpush.bf16.msra.mxu0 %v345_v61  ;;  %391 = vmatpush.bf16.msra.mxu3 %v349_v63  ;;  %v395_v61 = vld [vmem:[%s641_s1] ss:$0 sm:$0xff] }
   0xc   :  { %v55_v19 = vmul.f32 %v398_v16, %v54_v18  ;;  %288 = vmatpush.bf16.msra.mxu1 %v349_v63 }
   0xd   :  { %50 = vadd.xlane.f32.xlu1 %v49_v12  ;;  %44 = vadd.xlane.f32.xlu0 %v43_v13  ;;  %v365_v12 = vld [vmem:[%s643_s3 + $0x4] sm:$0xf0]  ;;  %v364_v13 = vld [vmem:[%s643_s3 + $0x4] sm:$0xf] }
   0xe   :  { %38 = vadd.xlane.f32.xlu2 %v37_v14  ;;  %v56_v20 = vadd.f32 %v398_v16, %v55_v19  ;;  %v330_v14 = vld [vmem:[%s643_s3 + $0x8] sm:$0xf0] }
   0xf   :  { %392 = vmatpush.bf16.msra.mxu3 %v341_v8 }
  0x10   :  { %v457_v21 = vsel %vm57_vm1, %v398_v16, %v56_v20  ;;  %289 = vmatpush.bf16.msra.mxu1 %v341_v8  ;;  %v333_v16 = vor.u32 %v364_v13, %v330_v14  ;;  %v396_v8 = vld [vmem:[%s642_s2] ss:$0 sm:$0xff] }
  0x13   :  { %393 = vmatpush.bf16.msra.mxu3 %v333_v16 }
  0x14   :  { %290 = vmatpush.bf16.msra.mxu1 %v333_v16 }
  0x78   :  { %v48_v22 = vpop.xlane.xlu1 %47  ;;  %v42_v23 = vpop.xlane.xlu0 %41 }
  0x79   :  { %v63_v24 = vmul.f32 %v457_v21, %v48_v22  ;;  %v61_v25 = vmul.f32 %v457_v21, %v42_v23  ;;  %v36_v26 = vpop.xlane.xlu2 %35 }
  0x7a   :  { %v59_v35 = vmul.f32 %v457_v21, %v36_v26 }
  0x7b   :  { %v461_v27 = vsub.f32 %v382_v3, %v63_v24  ;;  %v463_v28 = vsub.f32 %v378_v4, %v61_v25 }
  0x7c   :  { %v481_v43 = vsub.f32 %v374_v5, %v59_v35  ;;  %v337_v5 = vor.u32 %v367_v1, %v336_v0 }
  0x7d   :  { %v73_v29 = vmul.f32 %v463_v28, %v463_v28  ;;  %v75_v30 = vmul.f32 %v461_v27, %v461_v27 }
  0x7e   :  { %v71_v50 = vmul.f32 %v481_v43, %v481_v43  ;;  %388 = vmatpush.bf16.msra.mxu2 %v337_v5  ;;  %265 = vmatpush.bf16.msra.mxu0 %v337_v5 }
  0x7f   :  { %v83_v31 = vsel %vm33_vm0, %v73_v29, 0.0  ;;  %v89_v32 = vsel %vm33_vm0, %v75_v30, 0.0 }
  0x80   :  { %v51_v33 = vpop.xlane.xlu1 %50  ;;  %84 = vadd.xlane.f32.xlu0 %v83_v31  ;;  %v45_v34 = vpop.xlane.xlu0 %44  ;;  %90 = vadd.xlane.f32.xlu2 %v89_v32  ;;  %v77_v51 = vsel %vm33_vm0, %v71_v50, 0.0 }
  0x81   :  { %v64_v36 = vmul.f32 %v457_v21, %v51_v33  ;;  %v62_v37 = vmul.f32 %v457_v21, %v45_v34  ;;  %v39_v38 = vpop.xlane.xlu2 %38 }
  0x82   :  { %v60_v39 = vmul.f32 %v457_v21, %v39_v38 }
  0x83   :  { %v475_v40 = vsub.f32 %v383_v9, %v64_v36  ;;  %v477_v41 = vsub.f32 %v379_v10, %v62_v37 }
  0x84   :  { %v479_v42 = vsub.f32 %v375_v11, %v60_v39  ;;  %v328_v11 = vld [vmem:[%s643_s3] sm:$0xf] }
  0x85   :  { %v76_v44 = vmul.f32 %v475_v40, %v475_v40  ;;  %v74_v45 = vmul.f32 %v477_v41, %v477_v41  ;;  %v329_v15 = vor.u32 %v365_v12, %v328_v11 }
  0x86   :  { %v72_v46 = vmul.f32 %v479_v42, %v479_v42 }
  0x87   :  { %v92_v47 = vsel %vm33_vm0, %v76_v44, 0.0  ;;  %v86_v48 = vsel %vm33_vm0, %v74_v45, 0.0  ;;  %389 = vmatpush.bf16.msra.mxu2 %v329_v15  ;;  %266 = vmatpush.bf16.msra.mxu0 %v329_v15 }
  0x88   :  { %93 = vadd.xlane.f32.xlu0 %v92_v47  ;;  %87 = vadd.xlane.f32.xlu1 %v86_v48  ;;  %v80_v49 = vsel %vm33_vm0, %v72_v46, 0.0 }
  0x89   :  { %81 = vadd.xlane.f32.xlu2 %v80_v49 }
  0x90   :  { %78 = vadd.xlane.f32.xlu1 %v77_v51 }
  0xf3   :  { %v85_v3 = vpop.xlane.xlu0 %84  ;;  %v91_v4 = vpop.xlane.xlu2 %90 }
  0xf4   :  { %v97_v7 = vmul.f32 %v85_v3, %v457_v21  ;;  %v99_v10 = vmul.f32 %v91_v4, %v457_v21 }
  0xf6   :  { %v103_v9 = vadd.f32 1e-05, %v97_v7  ;;  %v545_v17 = vadd.f32 1e-05, %v99_v10 }
  0xf8   :  { %399 = vrsqrt.f32 %v103_v9  ;;  %vm133_vm3 = vweird.f32 %v103_v9  ;;  %vm153_vm13 = vweird.f32 %v545_v17 }
  0xf9   :  { %401 = vrsqrt.f32 %v545_v17 }
  0xfb   :  { %v88_v18 = vpop.xlane.xlu1 %87  ;;  %v94_v19 = vpop.xlane.xlu0 %93 }
  0xfc   :  { %v98_v20 = vmul.f32 %v88_v18, %v457_v21  ;;  %v100_v22 = vmul.f32 %v94_v19, %v457_v21  ;;  %v82_v23 = vpop.xlane.xlu2 %81 }
  0xfd   :  { %v96_v24 = vmul.f32 %v82_v23, %v457_v21 }
  0xfe   :  { %v400_v25 = vpop.eup %399  ;;  %v104_v26 = vadd.f32 1e-05, %v98_v20  ;;  %v551_v29 = vadd.f32 1e-05, %v100_v22 }
  0xff   :  { %v128_v30 = vmul.f32 %v400_v25, %v103_v9  ;;  %v102_v31 = vadd.f32 1e-05, %v96_v24  ;;  %v554_v35 = vpop.eup %401  ;;  %vm134_vm2 = vweird.f32 %v400_v25 }
 0x100   :  { %403 = vrsqrt.f32 %v104_v26  ;;  %v148_v46 = vmul.f32 %v554_v35, %v545_v17  ;;  %vm135_vm4 = vmor %vm133_vm3, %vm134_vm2  ;;  %vm143_vm8 = vweird.f32 %v104_v26  ;;  %vm163_vm11 = vweird.f32 %v551_v29 }
 0x101   :  { %v129_v32 = vmul.f32 %v400_v25, %v128_v30  ;;  %405 = vrsqrt.f32 %v551_v29  ;;  %vm123_vm6 = vweird.f32 %v102_v31  ;;  %vm154_vm14 = vweird.f32 %v554_v35 }
 0x102   :  { %407 = vrsqrt.f32 %v102_v31  ;;  %v149_v53 = vmul.f32 %v554_v35, %v148_v46  ;;  %vm155_vm3 = vmor %vm153_vm13, %vm154_vm14 }
 0x103   :  { %v130_v33 = vmul.f32 0.5, %v129_v32  ;;  %v79_v34 = vpop.xlane.xlu1 %78 }
 0x104   :  { %v95_v36 = vmul.f32 %v79_v34, %v457_v21  ;;  %v150_v62 = vmul.f32 0.5, %v149_v53 }
 0x105   :  { %v131_v37 = vsub.f32 1.5, %v130_v33 }
 0x106   :  { %v404_v38 = vpop.eup %403  ;;  %v101_v39 = vadd.f32 1e-05, %v95_v36  ;;  %v151_v9 = vsub.f32 1.5, %v150_v62 }
 0x107   :  { %v557_v44 = vpop.eup %405  ;;  %v132_v45 = vmul.f32 %v400_v25, %v131_v37  ;;  %v138_v47 = vmul.f32 %v404_v38, %v104_v26  ;;  %vm144_vm5 = vweird.f32 %v404_v38 }
 0x108   :  { %v408_v48 = vpop.eup %407  ;;  %v158_v49 = vmul.f32 %v557_v44, %v551_v29  ;;  %409 = vrsqrt.f32 %v101_v39  ;;  %vm145_vm9 = vmor %vm143_vm8, %vm144_vm5  ;;  %vm164_vm12 = vweird.f32 %v557_v44  ;;  %vm113_vm15 = vweird.f32 %v101_v39 }
 0x109   :  { %v139_v50 = vmul.f32 %v404_v38, %v138_v47  ;;  %v118_v51 = vmul.f32 %v408_v48, %v102_v31  ;;  %v136_v52 = vsel %vm135_vm4, %v400_v25, %v132_v45  ;;  %vm124_vm7 = vweird.f32 %v408_v48  ;;  %vm584_vm2 = vmor %vm163_vm11, %vm164_vm12 }
 0x10a   :  { %v159_v21 = vmul.f32 %v557_v44, %v158_v49  ;;  %v169_v60 = vmul.f32 %v136_v52, %v463_v28  ;;  %vm569_vm10 = vmor %vm123_vm6, %vm124_vm7  ;;  %v152_v19 = vmul.f32 %v554_v35, %v151_v9  ;;  %vm313_vm5 = vcmask 1043456  }
 0x10b   :  { %v140_v54 = vmul.f32 0.5, %v139_v50  ;;  %v119_v55 = vmul.f32 %v408_v48, %v118_v51  ;;  %vm314_vm6 = vcmask 523268  }
 0x10c   :  { %v160_v57 = vmul.f32 0.5, %v159_v21  ;;  %v179_v7 = vmul.f32 %v395_v61, %v169_v60  ;;  %v156_v25 = vsel %vm155_vm3, %v554_v35, %v152_v19  ;;  %vm606_vm7 = vmor %vm314_vm6, %vm313_vm5 }
 0x10d   :  { %v141_v56 = vsub.f32 1.5, %v140_v54  ;;  %v120_v58 = vmul.f32 0.5, %v119_v55  ;;  %v171_v30 = vmul.f32 %v156_v25, %v461_v27  ;;  %v204_v27 = vld [vmem:[%s644_s4] sm:$0x3] }
 0x10e   :  { %v410_v59 = vpop.eup %409  ;;  %v161_v4 = vsub.f32 1.5, %v160_v57  ;;  %v189_v16 = vadd.f32 %v396_v8, %v179_v7  ;;  %v207_v35 = vperm.slane %v204_v27, 1 }
 0x10f   :  { %v142_v63 = vmul.f32 %v404_v38, %v141_v56  ;;  %v121_v0 = vsub.f32 1.5, %v120_v58  ;;  %v108_v1 = vmul.f32 %v410_v59, %v101_v39  ;;  %vm114_vm1 = vweird.f32 %v410_v59 }
 0x110   :  { %vm115_vm4 = vmor %vm113_vm15, %vm114_vm1 }
 0x111   :  { %v146_v3 = vsel %vm145_vm9, %v404_v38, %v142_v63  ;;  %v122_v5 = vmul.f32 %v408_v48, %v121_v0  ;;  %v109_v6 = vmul.f32 %v410_v59, %v108_v1 }
 0x112   :  { %v170_v28 = vmul.f32 %v146_v3, %v477_v41  ;;  %v162_v41 = vmul.f32 %v557_v44, %v161_v4 }
 0x113   :  { %v126_v10 = vsel %vm569_vm10, %v408_v48, %v122_v5  ;;  %v110_v11 = vmul.f32 0.5, %v109_v6 }
 0x114   :  { %v180_v12 = vmul.f32 %v395_v61, %v170_v28  ;;  %v168_v15 = vmul.f32 %v126_v10, %v479_v42  ;;  %v166_v22 = vsel %vm584_vm2, %v557_v44, %v162_v41 }
 0x115   :  { %v111_v13 = vsub.f32 1.5, %v110_v11  ;;  %v172_v26 = vmul.f32 %v166_v22, %v475_v40  ;;  %v206_v40 = vperm.slane %v204_v27, 0 }
 0x116   :  { %v190_v18 = vadd.f32 %v396_v8, %v180_v12  ;;  %v178_v42 = vmul.f32 %v395_v61, %v168_v15 }
 0x117   :  { %v112_v17 = vmul.f32 %v410_v59, %v111_v13  ;;  %v182_v34 = vmul.f32 %v395_v61, %v172_v26 }
 0x118   :  { %v194_v20 = vpack.c.bf16 %v190_v18, %v189_v16  ;;  %v188_v32 = vadd.f32 %v396_v8, %v178_v42 }
 0x119   :  { %v116_v23 = vsel %vm115_vm4, %v410_v59, %v112_v17  ;;  %v192_v36 = vadd.f32 %v396_v8, %v182_v34 }
 0x11a   :  { %v167_v24 = vmul.f32 %v116_v23, %v481_v43  ;;  %359 = vmatmul.msk.bf16.vlgmr.msra.gmra.mxu2 %vm33_vm0, %v194_v20  ;;  %362 = vmatmul.msk.bf16.vlgmr.msra.gmra.mxu3 %vm33_vm0, %v194_v20  ;;  %v181_v43 = vmul.f32 %v395_v61, %v171_v30 }
 0x11c   :  { %v177_v29 = vmul.f32 %v395_v61, %v167_v24  ;;  %v191_v37 = vadd.f32 %v396_v8, %v181_v43 }
 0x11e   :  { %v187_v31 = vadd.f32 %v396_v8, %v177_v29  ;;  %v195_v38 = vpack.c.bf16 %v192_v36, %v191_v37 }
 0x120   :  { %v193_v33 = vpack.c.bf16 %v188_v32, %v187_v31 }
 0x122   :  { %358 = vmatmul.msk.bf16.vlgmr.msra.gmra.mxu0 %vm33_vm0, %v193_v33  ;;  %361 = vmatmul.msk.bf16.vlgmr.msra.gmra.mxu1 %vm33_vm0, %v193_v33 }
 0x12a   :  { %360 = vmatmul.msk.bf16.gmra.mxu2 %vm33_vm0, %v195_v38  ;;  %363 = vmatmul.msk.bf16.gmra.mxu3 %vm33_vm0, %v195_v38 }
 0x19d   :  { %v273_v39 = vpop.f32.mrf.mxu2  ;;  %v297_v44 = vpop.f32.mrf.mxu3 }
 0x19e   :  { %v274_v45 = vadd.f32 %v273_v39, %v206_v40  ;;  %v298_v46 = vadd.f32 %v297_v44, %v207_v35 }
 0x19f   :  { %v268_v48 = vpop.f32.mrf.mxu0  ;;  %v292_v49 = vpop.f32.mrf.mxu1 }
 0x1a0   :  { %v309_v50 = vpack.c.bf16 %v298_v46, %v274_v45  ;;  %v269_v51 = vadd.f32 %v268_v48, %v206_v40  ;;  %v293_v21 = vadd.f32 %v292_v49, %v207_v35 }
 0x1a2   :  { %318 = vst.msk [vmem:[%s645_s5 + $0x10] sm:$0xff] %vm606_vm7, %v309_v50  ;;  %v307_v52 = vpack.c.bf16 %v293_v21, %v269_v51 }
 0x1a4   :  { %316 = vst.msk [vmem:[%s645_s5] sm:$0xff] %vm606_vm7, %v307_v52 }
 0x1a5   :  { %v275_v53 = vpop.f32.mrf.mxu2  ;;  %v299_v54 = vpop.f32.mrf.mxu3 }
 0x1a6   :  { %v276_v55 = vadd.f32 %v275_v53, %v206_v40  ;;  %v300_v56 = vadd.f32 %v299_v54, %v207_v35 }
 0x1a7   :  { %v270_v57 = vpop.f32.mrf.mxu0  ;;  %v294_v58 = vpop.f32.mrf.mxu1 }
 0x1a8   :  { %v310_v59 = vpack.c.bf16 %v300_v56, %v276_v55  ;;  %v271_v60 = vadd.f32 %v270_v57, %v206_v40  ;;  %v295_v61 = vadd.f32 %v294_v58, %v207_v35 }
 0x1aa   :  { %319 = vst.msk [vmem:[%s645_s5 + $0x18] sm:$0xff] %vm606_vm7, %v310_v59  ;;  %v308_v62 = vpack.c.bf16 %v295_v61, %v271_v60 }
 0x1ac   :  { %317 = vst.msk [vmem:[%s645_s5 + $0x8] sm:$0xff] %vm606_vm7, %v308_v62 }
 0x1ad   :  { %v278_v63 = vpop.f32.mrf.mxu2  ;;  %v302_v0 = vpop.f32.mrf.mxu3 }
 0x1ae   :  { %v279_v1 = vadd.f32 %v278_v63, %v206_v40  ;;  %v303_v2 = vadd.f32 %v302_v0, %v207_v35 }
 0x1b0   :  { %v311_v3 = vpack.c.bf16 %v303_v2, %v279_v1 }
 0x1b2   :  { %320 = vst.msk [vmem:[%s645_s5 + $0x20] sm:$0xff] %vm606_vm7, %v311_v3 }
 0x1b5   :  { %v280_v4 = vpop.f32.mrf.mxu2  ;;  %v304_v5 = vpop.f32.mrf.mxu3 }
 0x1b6   :  { %v281_v6 = vadd.f32 %v280_v4, %v206_v40  ;;  %v305_v28 = vadd.f32 %v304_v5, %v207_v35 }
 0x1b8   :  { %v312_v7 = vpack.c.bf16 %v305_v28, %v281_v6 }
 0x1ba   :  { %321 = vst.msk [vmem:[%s645_s5 + $0x28] sm:$0xff] %vm606_vm7, %v312_v7 }

// kernel: custom_clip_forward.40
= control target key start
LH: loop header
LB: loop body
LE: loop exit
PB: predicated region body
PF: predicated region fallthrough
CT: control target
= control target key end

     0   :  { %vm75_vm0 = vcmask 523264   ;;  %vm133_vm1 = vcmask 519168   ;;  %s287_s1 = inlined_call_operand.vmem [shape: bf16[64,64], index: 1, kind: input, shape index: {}]   ;;  %s288_s2 = inlined_call_operand.vmem [shape: f32[1,64], index: 2, kind: input, shape index: {}]   ;;  %s289_s0 = inlined_call_operand.vmem [shape: bf16[48,64], index: 0, kind: input, shape index: {}]   ;;  %s290_s3 = inlined_call_operand.vmem [shape: bf16[48,64], index: 3, kind: input, shape index: {}]   ;;  %s291_s4 = inlined_call_operand.vmem [shape: bf16[48,64], index: 4, kind: output, shape index: {}]  }
   0x1   :  { %v181_v0 = vld [vmem:[%s287_s1 + $0x18] sm:$0xff]  ;;  %v180_v1 = vld [vmem:[%s287_s1 + $0x10] sm:$0xff]  ;;  %v179_v2 = vld [vmem:[%s287_s1 + $0x8] sm:$0xff] }
   0x2   :  { %89 = vmatpush.bf16.msra.mxu0 %v181_v0  ;;  %196 = vmatpush.bf16.msra.mxu1 %v181_v0  ;;  %v178_v3 = vld [vmem:[%s287_s1] sm:$0xff]  ;;  %v176_v5 = vld [vmem:[%s289_s0 + $0x8] sm:$0xff]  ;;  %v177_v6 = vld [vmem:[%s289_s0 + $0x10] sm:$0xff] }
   0x3   :  { %197 = vmatpush.bf16.msra.mxu2 %v181_v0  ;;  %v175_v4 = vld [vmem:[%s289_s0] sm:$0xff]  ;;  %v194_v8 = vld [vmem:[%s290_s3 + $0x8] sm:$0xff]   ;;  %v195_v18 = vld [vmem:[%s290_s3 + $0x10] sm:$0xff]  }
   0x4   :  { %v183_v7 = vld [vmem:[%s290_s3] sm:$0xff]   ;;  %v188_v11 = vunpack.c.l.bf16 %v194_v8  ;;  %v192_v21 = vunpack.c.l.bf16 %v195_v18  ;;  %v189_v24 = vunpack.c.h.bf16 %v194_v8  ;;  %v193_v36 = vunpack.c.h.bf16 %v195_v18 }
   0x5   :  { %v204_v9 = vld [vmem:[%s288_s2] ss:$0 sm:$0xff]  ;;  %v184_v10 = vunpack.c.l.bf16 %v183_v7  ;;  %v185_v23 = vunpack.c.h.bf16 %v183_v7 }
   0x6   :  { %90 = vmatpush.bf16.msra.mxu0 %v180_v1  ;;  %198 = vmatpush.bf16.msra.mxu1 %v180_v1 }
   0x7   :  { %199 = vmatpush.bf16.msra.mxu2 %v180_v1 }
   0xa   :  { %91 = vmatpush.bf16.msra.mxu0 %v179_v2  ;;  %200 = vmatpush.bf16.msra.mxu1 %v179_v2 }
   0xb   :  { %201 = vmatpush.bf16.msra.mxu2 %v179_v2 }
   0xe   :  { %92 = vmatpush.bf16.msra.mxu0 %v178_v3  ;;  %202 = vmatpush.bf16.msra.mxu1 %v178_v3 }
   0xf   :  { %203 = vmatpush.bf16.msra.mxu2 %v178_v3 }
  0x11   :  { %172 = vmatmul.msk.bf16.vlgmr.msra.gmra.mxu0 %vm75_vm0, %v175_v4  ;;  %173 = vmatmul.msk.bf16.vlgmr.msra.gmra.mxu1 %vm75_vm0, %v176_v5 }
  0x12   :  { %174 = vmatmul.msk.bf16.vlgmr.msra.gmra.mxu2 %vm75_vm0, %v177_v6 }
  0x8e   :  { %v94_v12 = vpop.f32.mrf.mxu0  ;;  %v99_v13 = vpop.f32.mrf.mxu1 }
  0x8f   :  { %v95_v14 = vadd.f32 %v204_v9, %v94_v12  ;;  %v100_v15 = vadd.f32 %v204_v9, %v99_v13 }
  0x91   :  { %v121_v16 = vadd.f32 %v184_v10, %v95_v14  ;;  %v123_v17 = vadd.f32 %v188_v11, %v100_v15 }
  0x93   :  { %v127_v19 = vpack.c.bf16 %v121_v16, %v121_v16  ;;  %v129_v20 = vpack.c.bf16 %v123_v17, %v123_v17 }
  0x95   :  { %134 = vst.msk [vmem:[%s291_s4] sm:$0xf] %vm133_vm1, %v127_v19  ;;  %v104_v22 = vpop.f32.mrf.mxu2 }
  0x96   :  { %136 = vst.msk [vmem:[%s291_s4 + $0x8] sm:$0xf] %vm133_vm1, %v129_v20  ;;  %v105_v25 = vadd.f32 %v204_v9, %v104_v22  ;;  %v96_v26 = vpop.f32.mrf.mxu0  ;;  %v101_v27 = vpop.f32.mrf.mxu1 }
  0x97   :  { %v97_v28 = vadd.f32 %v204_v9, %v96_v26  ;;  %v102_v29 = vadd.f32 %v204_v9, %v101_v27 }
  0x98   :  { %v125_v30 = vadd.f32 %v192_v21, %v105_v25 }
  0x99   :  { %v122_v31 = vadd.f32 %v185_v23, %v97_v28  ;;  %v124_v32 = vadd.f32 %v189_v24, %v102_v29 }
  0x9a   :  { %v131_v33 = vpack.c.bf16 %v125_v30, %v125_v30 }
  0x9b   :  { %v128_v34 = vpack.c.bf16 %v122_v31, %v122_v31  ;;  %v130_v35 = vpack.c.bf16 %v124_v32, %v124_v32 }
  0x9c   :  { %138 = vst.msk [vmem:[%s291_s4 + $0x10] sm:$0xf] %vm133_vm1, %v131_v33 }
  0x9d   :  { %135 = vst.msk [vmem:[%s291_s4 + $0x4] sm:$0xf] %vm133_vm1, %v128_v34  ;;  %v106_v37 = vpop.f32.mrf.mxu2 }
  0x9e   :  { %137 = vst.msk [vmem:[%s291_s4 + $0xc] sm:$0xf] %vm133_vm1, %v130_v35  ;;  %v107_v38 = vadd.f32 %v204_v9, %v106_v37 }
  0xa0   :  { %v126_v39 = vadd.f32 %v193_v36, %v107_v38 }
  0xa2   :  { %v132_v40 = vpack.c.bf16 %v126_v39, %v126_v39 }
  0xa4   :  { %139 = vst.msk [vmem:[%s291_s4 + $0x14] sm:$0xf] %vm133_vm1, %v132_v40 }

// kernel: custom_clip_forward.41
= control target key start
LH: loop header
LB: loop body
LE: loop exit
PB: predicated region body
PF: predicated region fallthrough
CT: control target
= control target key end

     0   :  { %vm33_vm0 = vcmask 523264   ;;  %v720_v15 = vmov 64.0   ;;  %s1103_s0 = inlined_call_operand.vmem [shape: bf16[48,64], index: 0, kind: input, shape index: {}]   ;;  %s1104_s1 = inlined_call_operand.vmem [shape: f32[1,64], index: 1, kind: input, shape index: {}]   ;;  %s1105_s2 = inlined_call_operand.vmem [shape: f32[1,64], index: 2, kind: input, shape index: {}]   ;;  %s1106_s3 = inlined_call_operand.vmem [shape: bf16[64,256], index: 3, kind: input, shape index: {}]   ;;  %s1107_s4 = inlined_call_operand.vmem [shape: f32[1,256], index: 4, kind: input, shape index: {}]   ;;  %s1108_s5 = inlined_call_operand.vmem [shape: bf16[48,256], index: 5, kind: output, shape index: {}]  }
   0x1   :  { %v646_v0 = vld [vmem:[%s1103_s0 + $0x10] sm:$0xff]   ;;  %v645_v1 = vld [vmem:[%s1103_s0 + $0x8] sm:$0xff]   ;;  %v634_v2 = vld [vmem:[%s1103_s0] sm:$0xff]   ;;  %658 = vrcp.f32 %v720_v15 }
   0x2   :  { %v643_v3 = vunpack.c.l.bf16 %v646_v0  ;;  %v639_v4 = vunpack.c.l.bf16 %v645_v1  ;;  %v635_v5 = vunpack.c.l.bf16 %v634_v2  ;;  %v644_v9 = vunpack.c.h.bf16 %v646_v0  ;;  %v601_v52 = vld [vmem:[%s1106_s3 + $0x30] sm:$0xf]  ;;  %v632_v53 = vld [vmem:[%s1106_s3 + $0x34] sm:$0xf0]  ;;  %v631_v54 = vld [vmem:[%s1106_s3 + $0x34] sm:$0xf] }
   0x3   :  { %v640_v10 = vunpack.c.h.bf16 %v645_v1  ;;  %v636_v11 = vunpack.c.h.bf16 %v634_v2  ;;  %v602_v55 = vor.u32 %v632_v53, %v601_v52  ;;  %v603_v56 = vld [vmem:[%s1106_s3 + $0x38] sm:$0xf0]  ;;  %v593_v58 = vld [vmem:[%s1106_s3 + $0x20] sm:$0xf]  ;;  %v630_v59 = vld [vmem:[%s1106_s3 + $0x24] sm:$0xf0] }
   0x4   :  { %v46_v6 = vsel %vm33_vm0, %v643_v3, 0.0  ;;  %v40_v7 = vsel %vm33_vm0, %v639_v4, 0.0  ;;  %v34_v8 = vsel %vm33_vm0, %v635_v5, 0.0  ;;  %v49_v12 = vsel %vm33_vm0, %v644_v9, 0.0  ;;  %v629_v60 = vld [vmem:[%s1106_s3 + $0x24] sm:$0xf] }
   0x5   :  { %47 = vadd.xlane.f32.xlu1 %v46_v6  ;;  %41 = vadd.xlane.f32.xlu0 %v40_v7  ;;  %v43_v13 = vsel %vm33_vm0, %v640_v10, 0.0  ;;  %v37_v14 = vsel %vm33_vm0, %v636_v11, 0.0  ;;  %v606_v57 = vor.u32 %v631_v54, %v603_v56  ;;  %v594_v61 = vor.u32 %v630_v59, %v593_v58  ;;  %v595_v62 = vld [vmem:[%s1106_s3 + $0x28] sm:$0xf0]  ;;  %v585_v0 = vld [vmem:[%s1106_s3 + $0x10] sm:$0xf] }
   0x6   :  { %35 = vadd.xlane.f32.xlu2 %v34_v8  ;;  %647 = vmatpush.bf16.msra.mxu2 %v602_v55  ;;  %v598_v63 = vor.u32 %v629_v60, %v595_v62  ;;  %v628_v1 = vld [vmem:[%s1106_s3 + $0x14] sm:$0xf0]  ;;  %v627_v2 = vld [vmem:[%s1106_s3 + $0x14] sm:$0xf]  ;;  %v587_v6 = vld [vmem:[%s1106_s3 + $0x18] sm:$0xf0] }
   0x7   :  { %v659_v16 = vpop.eup %658  ;;  %263 = vmatpush.bf16.msra.mxu0 %v602_v55  ;;  %651 = vmatpush.bf16.msra.mxu3 %v606_v57  ;;  %v590_v8 = vor.u32 %v627_v2, %v587_v6 }
   0x8   :  { %v53_v17 = vmul.f32 64.0, %v659_v16  ;;  %vm57_vm1 = vweird.f32 %v659_v16  ;;  %287 = vmatpush.bf16.msra.mxu1 %v606_v57 }
   0xa   :  { %v54_v18 = vsub.f32 1.0, %v53_v17  ;;  %648 = vmatpush.bf16.msra.mxu2 %v594_v61 }
   0xb   :  { %264 = vmatpush.bf16.msra.mxu0 %v594_v61  ;;  %652 = vmatpush.bf16.msra.mxu3 %v598_v63  ;;  %v656_v61 = vld [vmem:[%s1104_s1] ss:$0 sm:$0xff] }
   0xc   :  { %v55_v19 = vmul.f32 %v659_v16, %v54_v18  ;;  %288 = vmatpush.bf16.msra.mxu1 %v598_v63 }
   0xd   :  { %50 = vadd.xlane.f32.xlu1 %v49_v12  ;;  %44 = vadd.xlane.f32.xlu0 %v43_v13  ;;  %v626_v12 = vld [vmem:[%s1106_s3 + $0x4] sm:$0xf0]  ;;  %v625_v13 = vld [vmem:[%s1106_s3 + $0x4] sm:$0xf] }
   0xe   :  { %38 = vadd.xlane.f32.xlu2 %v37_v14  ;;  %v56_v20 = vadd.f32 %v659_v16, %v55_v19  ;;  %v579_v14 = vld [vmem:[%s1106_s3 + $0x8] sm:$0xf0] }
   0xf   :  { %653 = vmatpush.bf16.msra.mxu3 %v590_v8 }
  0x10   :  { %v766_v21 = vsel %vm57_vm1, %v659_v16, %v56_v20  ;;  %289 = vmatpush.bf16.msra.mxu1 %v590_v8  ;;  %v582_v16 = vor.u32 %v625_v13, %v579_v14  ;;  %v657_v8 = vld [vmem:[%s1105_s2] ss:$0 sm:$0xff] }
  0x13   :  { %654 = vmatpush.bf16.msra.mxu3 %v582_v16 }
  0x14   :  { %290 = vmatpush.bf16.msra.mxu1 %v582_v16 }
  0x78   :  { %v48_v22 = vpop.xlane.xlu1 %47  ;;  %v42_v23 = vpop.xlane.xlu0 %41 }
  0x79   :  { %v63_v24 = vmul.f32 %v766_v21, %v48_v22  ;;  %v61_v25 = vmul.f32 %v766_v21, %v42_v23  ;;  %v36_v26 = vpop.xlane.xlu2 %35 }
  0x7a   :  { %v59_v35 = vmul.f32 %v766_v21, %v36_v26 }
  0x7b   :  { %v770_v27 = vsub.f32 %v643_v3, %v63_v24  ;;  %v772_v28 = vsub.f32 %v639_v4, %v61_v25 }
  0x7c   :  { %v790_v43 = vsub.f32 %v635_v5, %v59_v35  ;;  %v586_v5 = vor.u32 %v628_v1, %v585_v0 }
  0x7d   :  { %v73_v29 = vmul.f32 %v772_v28, %v772_v28  ;;  %v75_v30 = vmul.f32 %v770_v27, %v770_v27 }
  0x7e   :  { %v71_v50 = vmul.f32 %v790_v43, %v790_v43  ;;  %649 = vmatpush.bf16.msra.mxu2 %v586_v5  ;;  %265 = vmatpush.bf16.msra.mxu0 %v586_v5 }
  0x7f   :  { %v83_v31 = vsel %vm33_vm0, %v73_v29, 0.0  ;;  %v89_v32 = vsel %vm33_vm0, %v75_v30, 0.0 }
  0x80   :  { %v51_v33 = vpop.xlane.xlu1 %50  ;;  %84 = vadd.xlane.f32.xlu0 %v83_v31  ;;  %v45_v34 = vpop.xlane.xlu0 %44  ;;  %90 = vadd.xlane.f32.xlu2 %v89_v32  ;;  %v77_v51 = vsel %vm33_vm0, %v71_v50, 0.0 }
  0x81   :  { %v64_v36 = vmul.f32 %v766_v21, %v51_v33  ;;  %v62_v37 = vmul.f32 %v766_v21, %v45_v34  ;;  %v39_v38 = vpop.xlane.xlu2 %38 }
  0x82   :  { %v60_v39 = vmul.f32 %v766_v21, %v39_v38 }
  0x83   :  { %v784_v40 = vsub.f32 %v644_v9, %v64_v36  ;;  %v786_v41 = vsub.f32 %v640_v10, %v62_v37 }
  0x84   :  { %v788_v42 = vsub.f32 %v636_v11, %v60_v39  ;;  %v577_v11 = vld [vmem:[%s1106_s3] sm:$0xf] }
  0x85   :  { %v76_v44 = vmul.f32 %v784_v40, %v784_v40  ;;  %v74_v45 = vmul.f32 %v786_v41, %v786_v41  ;;  %v578_v15 = vor.u32 %v626_v12, %v577_v11 }
  0x86   :  { %v72_v46 = vmul.f32 %v788_v42, %v788_v42 }
  0x87   :  { %v92_v47 = vsel %vm33_vm0, %v76_v44, 0.0  ;;  %v86_v48 = vsel %vm33_vm0, %v74_v45, 0.0  ;;  %650 = vmatpush.bf16.msra.mxu2 %v578_v15  ;;  %266 = vmatpush.bf16.msra.mxu0 %v578_v15 }
  0x88   :  { %93 = vadd.xlane.f32.xlu0 %v92_v47  ;;  %87 = vadd.xlane.f32.xlu1 %v86_v48  ;;  %v80_v49 = vsel %vm33_vm0, %v72_v46, 0.0 }
  0x89   :  { %81 = vadd.xlane.f32.xlu2 %v80_v49 }
  0x90   :  { %78 = vadd.xlane.f32.xlu1 %v77_v51 }
  0xf3   :  { %v85_v3 = vpop.xlane.xlu0 %84  ;;  %v91_v4 = vpop.xlane.xlu2 %90 }
  0xf4   :  { %v97_v7 = vmul.f32 %v85_v3, %v766_v21  ;;  %v99_v10 = vmul.f32 %v91_v4, %v766_v21 }
  0xf6   :  { %v103_v9 = vadd.f32 1e-05, %v97_v7  ;;  %v854_v17 = vadd.f32 1e-05, %v99_v10 }
  0xf8   :  { %660 = vrsqrt.f32 %v103_v9  ;;  %vm133_vm3 = vweird.f32 %v103_v9  ;;  %vm153_vm13 = vweird.f32 %v854_v17 }
  0xf9   :  { %662 = vrsqrt.f32 %v854_v17 }
  0xfb   :  { %v88_v18 = vpop.xlane.xlu1 %87  ;;  %v94_v19 = vpop.xlane.xlu0 %93 }
  0xfc   :  { %v98_v20 = vmul.f32 %v88_v18, %v766_v21  ;;  %v100_v22 = vmul.f32 %v94_v19, %v766_v21  ;;  %v82_v23 = vpop.xlane.xlu2 %81 }
  0xfd   :  { %v96_v24 = vmul.f32 %v82_v23, %v766_v21 }
  0xfe   :  { %v661_v25 = vpop.eup %660  ;;  %v104_v26 = vadd.f32 1e-05, %v98_v20  ;;  %v860_v29 = vadd.f32 1e-05, %v100_v22 }
  0xff   :  { %v128_v30 = vmul.f32 %v661_v25, %v103_v9  ;;  %v102_v31 = vadd.f32 1e-05, %v96_v24  ;;  %v863_v35 = vpop.eup %662  ;;  %vm134_vm2 = vweird.f32 %v661_v25 }
 0x100   :  { %664 = vrsqrt.f32 %v104_v26  ;;  %v148_v46 = vmul.f32 %v863_v35, %v854_v17  ;;  %vm135_vm4 = vmor %vm133_vm3, %vm134_vm2  ;;  %vm143_vm8 = vweird.f32 %v104_v26  ;;  %vm163_vm11 = vweird.f32 %v860_v29 }
 0x101   :  { %v129_v32 = vmul.f32 %v661_v25, %v128_v30  ;;  %666 = vrsqrt.f32 %v860_v29  ;;  %vm123_vm6 = vweird.f32 %v102_v31  ;;  %vm154_vm14 = vweird.f32 %v863_v35 }
 0x102   :  { %668 = vrsqrt.f32 %v102_v31  ;;  %v149_v53 = vmul.f32 %v863_v35, %v148_v46  ;;  %vm155_vm3 = vmor %vm153_vm13, %vm154_vm14 }
 0x103   :  { %v130_v33 = vmul.f32 0.5, %v129_v32  ;;  %v79_v34 = vpop.xlane.xlu1 %78 }
 0x104   :  { %v95_v36 = vmul.f32 %v79_v34, %v766_v21  ;;  %v150_v62 = vmul.f32 0.5, %v149_v53 }
 0x105   :  { %v131_v37 = vsub.f32 1.5, %v130_v33 }
 0x106   :  { %v665_v38 = vpop.eup %664  ;;  %v101_v39 = vadd.f32 1e-05, %v95_v36  ;;  %v151_v9 = vsub.f32 1.5, %v150_v62 }
 0x107   :  { %v866_v44 = vpop.eup %666  ;;  %v132_v45 = vmul.f32 %v661_v25, %v131_v37  ;;  %v138_v47 = vmul.f32 %v665_v38, %v104_v26  ;;  %vm144_vm5 = vweird.f32 %v665_v38 }
 0x108   :  { %v669_v48 = vpop.eup %668  ;;  %v158_v49 = vmul.f32 %v866_v44, %v860_v29  ;;  %670 = vrsqrt.f32 %v101_v39  ;;  %vm145_vm9 = vmor %vm143_vm8, %vm144_vm5  ;;  %vm164_vm12 = vweird.f32 %v866_v44  ;;  %vm113_vm15 = vweird.f32 %v101_v39 }
 0x109   :  { %v139_v50 = vmul.f32 %v665_v38, %v138_v47  ;;  %v118_v51 = vmul.f32 %v669_v48, %v102_v31  ;;  %v136_v52 = vsel %vm135_vm4, %v661_v25, %v132_v45  ;;  %vm124_vm7 = vweird.f32 %v669_v48  ;;  %vm893_vm2 = vmor %vm163_vm11, %vm164_vm12 }
 0x10a   :  { %v159_v21 = vmul.f32 %v866_v44, %v158_v49  ;;  %v169_v60 = vmul.f32 %v136_v52, %v772_v28  ;;  %vm878_vm10 = vmor %vm123_vm6, %vm124_vm7  ;;  %v152_v19 = vmul.f32 %v863_v35, %v151_v9 }
 0x10b   :  { %v140_v54 = vmul.f32 0.5, %v139_v50  ;;  %v119_v55 = vmul.f32 %v669_v48, %v118_v51 }
 0x10c   :  { %v160_v57 = vmul.f32 0.5, %v159_v21  ;;  %v179_v7 = vmul.f32 %v656_v61, %v169_v60  ;;  %v156_v25 = vsel %vm155_vm3, %v863_v35, %v152_v19 }
 0x10d   :  { %v141_v56 = vsub.f32 1.5, %v140_v54  ;;  %v120_v58 = vmul.f32 0.5, %v119_v55  ;;  %v171_v30 = vmul.f32 %v156_v25, %v770_v27  ;;  %v204_v27 = vld [vmem:[%s1107_s4] sm:$0x3] }
 0x10e   :  { %v671_v59 = vpop.eup %670  ;;  %v161_v4 = vsub.f32 1.5, %v160_v57  ;;  %v189_v16 = vadd.f32 %v657_v8, %v179_v7  ;;  %v917_v35 = vperm.slane %v204_v27, 1 }
 0x10f   :  { %v142_v63 = vmul.f32 %v665_v38, %v141_v56  ;;  %v121_v0 = vsub.f32 1.5, %v120_v58  ;;  %v108_v1 = vmul.f32 %v671_v59, %v101_v39  ;;  %vm114_vm1 = vweird.f32 %v671_v59 }
 0x110   :  { %vm115_vm4 = vmor %vm113_vm15, %vm114_vm1 }
 0x111   :  { %v146_v3 = vsel %vm145_vm9, %v665_v38, %v142_v63  ;;  %v122_v5 = vmul.f32 %v669_v48, %v121_v0  ;;  %v109_v6 = vmul.f32 %v671_v59, %v108_v1 }
 0x112   :  { %v170_v28 = vmul.f32 %v146_v3, %v786_v41  ;;  %v162_v41 = vmul.f32 %v866_v44, %v161_v4 }
 0x113   :  { %v126_v10 = vsel %vm878_vm10, %v669_v48, %v122_v5  ;;  %v110_v11 = vmul.f32 0.5, %v109_v6 }
 0x114   :  { %v180_v12 = vmul.f32 %v656_v61, %v170_v28  ;;  %v168_v15 = vmul.f32 %v126_v10, %v788_v42  ;;  %v166_v22 = vsel %vm893_vm2, %v866_v44, %v162_v41 }
 0x115   :  { %v111_v13 = vsub.f32 1.5, %v110_v11  ;;  %v172_v26 = vmul.f32 %v166_v22, %v784_v40  ;;  %v915_v40 = vperm.slane %v204_v27, 0 }
 0x116   :  { %v190_v18 = vadd.f32 %v657_v8, %v180_v12  ;;  %v178_v42 = vmul.f32 %v656_v61, %v168_v15 }
 0x117   :  { %v112_v17 = vmul.f32 %v671_v59, %v111_v13  ;;  %v182_v34 = vmul.f32 %v656_v61, %v172_v26 }
 0x118   :  { %v194_v20 = vpack.c.bf16 %v190_v18, %v189_v16  ;;  %v188_v32 = vadd.f32 %v657_v8, %v178_v42 }
 0x119   :  { %v116_v23 = vsel %vm115_vm4, %v671_v59, %v112_v17  ;;  %v192_v36 = vadd.f32 %v657_v8, %v182_v34 }
 0x11a   :  { %v167_v24 = vmul.f32 %v116_v23, %v790_v43  ;;  %608 = vmatmul.msk.bf16.vlgmr.msra.gmra.mxu2 %vm33_vm0, %v194_v20  ;;  %611 = vmatmul.msk.bf16.vlgmr.msra.gmra.mxu3 %vm33_vm0, %v194_v20  ;;  %v181_v43 = vmul.f32 %v656_v61, %v171_v30 }
 0x11c   :  { %v177_v29 = vmul.f32 %v656_v61, %v167_v24  ;;  %v191_v37 = vadd.f32 %v657_v8, %v181_v43 }
 0x11e   :  { %v187_v31 = vadd.f32 %v657_v8, %v177_v29  ;;  %v195_v38 = vpack.c.bf16 %v192_v36, %v191_v37 }
 0x120   :  { %v193_v33 = vpack.c.bf16 %v188_v32, %v187_v31 }
 0x122   :  { %607 = vmatmul.msk.bf16.vlgmr.msra.gmra.mxu0 %vm33_vm0, %v193_v33  ;;  %610 = vmatmul.msk.bf16.vlgmr.msra.gmra.mxu1 %vm33_vm0, %v193_v33 }
 0x12a   :  { %609 = vmatmul.msk.bf16.gmra.mxu2 %vm33_vm0, %v195_v38  ;;  %612 = vmatmul.msk.bf16.gmra.mxu3 %vm33_vm0, %v195_v38 }
 0x19d   :  { %v273_v39 = vpop.f32.mrf.mxu2  ;;  %v297_v44 = vpop.f32.mrf.mxu3 }
 0x19e   :  { %v920_v45 = vadd.f32 %v273_v39, %v915_v40  ;;  %v923_v46 = vadd.f32 %v297_v44, %v917_v35 }
 0x19f   :  { %v268_v47 = vpop.f32.mrf.mxu0  ;;  %v292_v48 = vpop.f32.mrf.mxu1 }
 0x1a0   :  { %v617_v49 = vmul.f32 -1.702, %v920_v45  ;;  %v618_v50 = vmul.f32 -1.702, %v923_v46  ;;  %v928_v51 = vadd.f32 %v268_v47, %v915_v40  ;;  %v931_v21 = vadd.f32 %v292_v48, %v917_v35 }
 0x1a2   :  { %v339_v52 = vmul.f32 1.442695, %v617_v49  ;;  %v341_v53 = vmul.f32 1.442695, %v618_v50  ;;  %v613_v54 = vmul.f32 -1.702, %v928_v51 }
 0x1a3   :  { %v614_v55 = vmul.f32 -1.702, %v931_v21 }
 0x1a4   :  { %672 = vpow2.f32 %v339_v52  ;;  %v331_v56 = vmul.f32 1.442695, %v613_v54 }
 0x1a5   :  { %674 = vpow2.f32 %v341_v53  ;;  %v333_v57 = vmul.f32 1.442695, %v614_v55  ;;  %v275_v58 = vpop.f32.mrf.mxu2  ;;  %v299_v59 = vpop.f32.mrf.mxu3 }
 0x1a6   :  { %676 = vpow2.f32 %v331_v56  ;;  %v936_v60 = vadd.f32 %v275_v58, %v915_v40  ;;  %v939_v61 = vadd.f32 %v299_v59, %v917_v35 }
 0x1a7   :  { %678 = vpow2.f32 %v333_v57  ;;  %v270_v62 = vpop.f32.mrf.mxu0  ;;  %v294_v1 = vpop.f32.mrf.mxu1 }
 0x1a8   :  { %v619_v63 = vmul.f32 -1.702, %v936_v60  ;;  %v620_v0 = vmul.f32 -1.702, %v939_v61  ;;  %v944_v4 = vadd.f32 %v270_v62, %v915_v40  ;;  %v949_v28 = vadd.f32 %v294_v1, %v917_v35 }
 0x1aa   :  { %v673_v2 = vpop.eup %672  ;;  %v343_v3 = vmul.f32 1.442695, %v619_v63  ;;  %v345_v9 = vmul.f32 1.442695, %v620_v0  ;;  %v615_v11 = vmul.f32 -1.702, %v944_v4 }
 0x1ab   :  { %v675_v5 = vpop.eup %674  ;;  %v946_v6 = vadd.f32 1.0, %v673_v2  ;;  %v616_v13 = vmul.f32 -1.702, %v949_v28 }
 0x1ac   :  { %v677_v7 = vpop.eup %676  ;;  %v951_v8 = vadd.f32 1.0, %v675_v5  ;;  %680 = vpow2.f32 %v343_v3  ;;  %v335_v17 = vmul.f32 1.442695, %v615_v11 }
 0x1ad   :  { %v679_v10 = vpop.eup %678  ;;  %682 = vrcp.f32 %v946_v6  ;;  %v956_v12 = vadd.f32 1.0, %v677_v7  ;;  %v436_v14 = vand.u32 2147483647, %v946_v6  ;;  %v438_v15 = vand.u32 2147483648, %v946_v6  ;;  %v278_v52 = vpop.f32.mrf.mxu2 }
 0x1ae   :  { %684 = vrcp.f32 %v951_v8  ;;  %v958_v41 = vadd.f32 1.0, %v679_v10  ;;  %v451_v16 = vand.u32 2147483647, %v951_v8  ;;  %v453_v19 = vand.u32 2147483648, %v951_v8  ;;  %v302_v3 = vpop.f32.mrf.mxu3 }
 0x1af   :  { %686 = vpow2.f32 %v345_v9  ;;  %vm432_vm0 = vweird.f32 %v946_v6  ;;  %vm447_vm5 = vweird.f32 %v951_v8  ;;  %v337_v23 = vmul.f32 1.442695, %v616_v13 }
 0x1b0   :  { %688 = vrcp.f32 %v956_v12  ;;  %vm972_vm6 = vcmp.eq.f32.partialorder %v436_v14, 8.507059e+37  ;;  %v439_v26 = vor.u32 1.1754944e-38, %v438_v15  ;;  %v376_v29 = vand.u32 2147483647, %v956_v12 }
 0x1b1   :  { %690 = vrcp.f32 %v958_v41  ;;  %v378_v30 = vand.u32 2147483648, %v956_v12  ;;  %vm979_vm7 = vcmp.eq.f32.partialorder %v451_v16, 8.507059e+37  ;;  %v391_v33 = vand.u32 2147483647, %v958_v41 }
 0x1b2   :  { %v681_v18 = vpop.eup %680  ;;  %v393_v34 = vand.u32 2147483648, %v958_v41  ;;  %v454_v37 = vor.u32 1.1754944e-38, %v453_v19  ;;  %vm372_vm8 = vweird.f32 %v956_v12  ;;  %vm387_vm9 = vweird.f32 %v958_v41 }
 0x1b3   :  { %v683_v20 = vpop.eup %682  ;;  %v969_v22 = vadd.f32 1.0, %v681_v18  ;;  %vm991_vm11 = vcmp.eq.f32.partialorder %v376_v29, 8.507059e+37  ;;  %v379_v50 = vor.u32 1.1754944e-38, %v378_v30  ;;  %vm996_vm13 = vcmp.eq.f32.partialorder %v391_v33, 8.507059e+37 }
 0x1b4   :  { %v685_v24 = vpop.eup %684  ;;  %v428_v42 = vmul.f32 %v683_v20, %v946_v6  ;;  %vm433_vm10 = vweird.f32 %v683_v20  ;;  %v394_v56 = vor.u32 1.1754944e-38, %v393_v34  ;;  %v1008_v2 = vadd.f32 %v278_v52, %v915_v40 }
 0x1b5   :  { %v443_v31 = vmul.f32 %v685_v24, %v951_v8  ;;  %692 = vrcp.f32 %v969_v22  ;;  %v687_v43 = vpop.eup %686  ;;  %vm448_vm12 = vweird.f32 %v685_v24  ;;  %vm462_vm14 = vweird.f32 %v969_v22  ;;  %vm434_vm15 = vmor %vm432_vm0, %vm433_vm10 }
 0x1b6   :  { %v429_v36 = vsub.f32 1.0, %v428_v42  ;;  %694 = vpow2.f32 %v335_v17  ;;  %v689_v38 = vpop.eup %688  ;;  %v988_v39 = vadd.f32 1.0, %v687_v43  ;;  %v466_v59 = vand.u32 2147483647, %v969_v22  ;;  %vm449_vm1 = vmor %vm447_vm5, %vm448_vm12 }
 0x1b7   :  { %v444_v27 = vsub.f32 1.0, %v443_v31  ;;  %696 = vpow2.f32 %v337_v23  ;;  %v691_v44 = vpop.eup %690  ;;  %v368_v48 = vmul.f32 %v689_v38, %v956_v12  ;;  %v468_v1 = vand.u32 2147483648, %v969_v22 }
 0x1b8   :  { %v430_v47 = vmul.f32 %v683_v20, %v429_v36  ;;  %v383_v54 = vmul.f32 %v691_v44, %v958_v41  ;;  %698 = vrcp.f32 %v988_v39  ;;  %vm373_vm2 = vweird.f32 %v689_v38 }
 0x1b9   :  { %v445_v53 = vmul.f32 %v685_v24, %v444_v27  ;;  %v369_v58 = vsub.f32 1.0, %v368_v48  ;;  %vm388_vm3 = vweird.f32 %v691_v44  ;;  %vm374_vm4 = vmor %vm372_vm8, %vm373_vm2  ;;  %v1025_v23 = vadd.f32 %v302_v3, %v917_v35 }
 0x1ba   :  { %v431_v57 = vadd.f32 %v683_v20, %v430_v47  ;;  %v384_v0 = vsub.f32 1.0, %v383_v54  ;;  %vm389_vm0 = vmor %vm387_vm9, %vm388_vm3  ;;  %v469_v33 = vor.u32 1.1754944e-38, %v468_v1  ;;  %v621_v43 = vmul.f32 -1.702, %v1008_v2 }
 0x1bb   :  { %v693_v62 = vpop.eup %692  ;;  %v446_v63 = vadd.f32 %v685_v24, %v445_v53  ;;  %v370_v9 = vmul.f32 %v689_v38, %v369_v58  ;;  %v481_v36 = vand.u32 2147483647, %v988_v39  ;;  %vm477_vm9 = vweird.f32 %v988_v39 }
 0x1bc   :  { %v695_v5 = vpop.eup %694  ;;  %v435_v7 = vsel %vm434_vm15, %v683_v20, %v431_v57  ;;  %v458_v10 = vmul.f32 %v693_v62, %v969_v22  ;;  %v385_v14 = vmul.f32 %v691_v44, %v384_v0  ;;  %vm463_vm5 = vweird.f32 %v693_v62 }
 0x1bd   :  { %v697_v6 = vpop.eup %696  ;;  %v440_v11 = vsel %vm972_vm6, %v439_v26, %v435_v7  ;;  %v450_v13 = vsel %vm449_vm1, %v685_v24, %v446_v63  ;;  %v371_v18 = vadd.f32 %v689_v38, %v370_v9  ;;  %v1022_v20 = vadd.f32 1.0, %v695_v5  ;;  %vm464_vm6 = vmor %vm462_vm14, %vm463_vm5 }
 0x1be   :  { %v551_v15 = vmul.f32 %v440_v11, %v920_v45  ;;  %v455_v16 = vsel %vm979_vm7, %v454_v37, %v450_v13  ;;  %v459_v19 = vsub.f32 1.0, %v458_v10  ;;  %v386_v17 = vadd.f32 %v691_v44, %v385_v14  ;;  %v699_v24 = vpop.eup %698 }
 0x1bf   :  { %v552_v8 = vmul.f32 %v455_v16, %v923_v46  ;;  %v375_v42 = vsel %vm374_vm4, %v689_v38, %v371_v18  ;;  %v1029_v25 = vadd.f32 1.0, %v697_v6  ;;  %v473_v29 = vmul.f32 %v699_v24, %v988_v39 }
 0x1c0   :  { %v460_v45 = vmul.f32 %v693_v62, %v459_v19  ;;  %v380_v46 = vsel %vm991_vm11, %v379_v50, %v375_v42  ;;  %v390_v12 = vsel %vm389_vm0, %v691_v44, %v386_v17  ;;  %700 = vrcp.f32 %v1022_v20  ;;  %v304_v44 = vpop.f32.mrf.mxu3 }
 0x1c1   :  { %v561_v26 = vpack.c.bf16 %v552_v8, %v551_v15  ;;  %v547_v30 = vmul.f32 %v380_v46, %v928_v51  ;;  %v395_v31 = vsel %vm996_vm13, %v394_v56, %v390_v12  ;;  %v474_v34 = vsub.f32 1.0, %v473_v29 }
 0x1c2   :  { %v461_v32 = vadd.f32 %v693_v62, %v460_v45  ;;  %v548_v41 = vmul.f32 %v395_v31, %v931_v21  ;;  %v483_v37 = vand.u32 2147483648, %v988_v39  ;;  %702 = vrcp.f32 %v1029_v25  ;;  %v280_v21 = vpop.f32.mrf.mxu2 }
 0x1c3   :  { %567 = vst [vmem:[%s1108_s5 + $0x10] sm:$0xff] %v561_v26  ;;  %vm467_vm7 = vcmp.eq.f32.partialorder %v466_v59, 8.507059e+37  ;;  %v475_v27 = vmul.f32 %v699_v24, %v474_v34  ;;  %vm478_vm8 = vweird.f32 %v699_v24  ;;  %v347_v48 = vmul.f32 1.442695, %v621_v43 }
 0x1c4   :  { %v465_v51 = vsel %vm464_vm6, %v693_v62, %v461_v32  ;;  %v559_v38 = vpack.c.bf16 %v548_v41, %v547_v30  ;;  %v622_v49 = vmul.f32 -1.702, %v1025_v23  ;;  %vm479_vm10 = vmor %vm477_vm9, %vm478_vm8  ;;  %vm482_vm11 = vcmp.eq.f32.partialorder %v481_v36, 8.507059e+37 }
 0x1c5   :  { %v470_v22 = vsel %vm467_vm7, %v469_v33, %v465_v51  ;;  %v476_v47 = vadd.f32 %v699_v24, %v475_v27  ;;  %v484_v50 = vor.u32 1.1754944e-38, %v483_v37  ;;  %v1054_v52 = vadd.f32 %v280_v21, %v915_v40 }
 0x1c6   :  { %565 = vst [vmem:[%s1108_s5] sm:$0xff] %v559_v38  ;;  %v1057_v53 = vadd.f32 %v304_v44, %v917_v35  ;;  %v701_v54 = vpop.eup %700  ;;  %v553_v55 = vmul.f32 %v470_v22, %v936_v60  ;;  %704 = vpow2.f32 %v347_v48  ;;  %v349_v57 = vmul.f32 1.442695, %v622_v49 }
 0x1c7   :  { %v480_v56 = vsel %vm479_vm10, %v699_v24, %v476_v47  ;;  %v398_v59 = vmul.f32 %v701_v54, %v1022_v20  ;;  %v623_v62 = vmul.f32 -1.702, %v1054_v52  ;;  %v406_v40 = vand.u32 2147483647, %v1022_v20 }
 0x1c8   :  { %v703_v58 = vpop.eup %702  ;;  %v485_v39 = vsel %vm482_vm11, %v484_v50, %v480_v56  ;;  %706 = vpow2.f32 %v349_v57  ;;  %v624_v60 = vmul.f32 -1.702, %v1057_v53  ;;  %v408_v5 = vand.u32 2147483648, %v1022_v20 }
 0x1c9   :  { %v554_v63 = vmul.f32 %v485_v39, %v939_v61  ;;  %v413_v0 = vmul.f32 %v703_v58, %v1029_v25  ;;  %v399_v35 = vsub.f32 1.0, %v398_v59  ;;  %v351_v1 = vmul.f32 1.442695, %v623_v62 }
 0x1ca   :  { %v423_v9 = vand.u32 2147483648, %v1029_v25  ;;  %vm403_vm12 = vweird.f32 %v701_v54  ;;  %v353_v6 = vmul.f32 1.442695, %v624_v60  ;;  %vm418_vm13 = vweird.f32 %v703_v58 }
 0x1cb   :  { %v562_v3 = vpack.c.bf16 %v554_v63, %v553_v55  ;;  %v414_v7 = vsub.f32 1.0, %v413_v0  ;;  %v400_v10 = vmul.f32 %v701_v54, %v399_v35  ;;  %708 = vpow2.f32 %v351_v1 }
 0x1cc   :  { %v705_v61 = vpop.eup %704  ;;  %v421_v13 = vand.u32 2147483647, %v1029_v25  ;;  %vm402_vm14 = vweird.f32 %v1022_v20  ;;  %710 = vpow2.f32 %v353_v6  ;;  %v409_v18 = vor.u32 1.1754944e-38, %v408_v5 }
 0x1cd   :  { %568 = vst [vmem:[%s1108_s5 + $0x18] sm:$0xff] %v562_v3  ;;  %v415_v11 = vmul.f32 %v703_v58, %v414_v7  ;;  %v401_v14 = vadd.f32 %v701_v54, %v400_v10  ;;  %v363_v15 = vadd.f32 1.0, %v705_v61  ;;  %vm404_vm15 = vmor %vm402_vm14, %vm403_vm12  ;;  %vm417_vm1 = vweird.f32 %v1029_v25 }
 0x1ce   :  { %v707_v16 = vpop.eup %706  ;;  %vm407_vm2 = vcmp.eq.f32.partialorder %v406_v40, 8.507059e+37  ;;  %vm419_vm3 = vmor %vm417_vm1, %vm418_vm13  ;;  %v424_v17 = vor.u32 1.1754944e-38, %v423_v9  ;;  %vm422_vm4 = vcmp.eq.f32.partialorder %v421_v13, 8.507059e+37 }
 0x1cf   :  { %v416_v19 = vadd.f32 %v703_v58, %v415_v11  ;;  %v405_v8 = vsel %vm404_vm15, %v701_v54, %v401_v14  ;;  %712 = vrcp.f32 %v363_v15  ;;  %v364_v45 = vadd.f32 1.0, %v707_v16 }
 0x1d0   :  { %v410_v24 = vsel %vm407_vm2, %v409_v18, %v405_v8  ;;  %v496_v34 = vand.u32 2147483647, %v363_v15  ;;  %v498_v43 = vand.u32 2147483648, %v363_v15  ;;  %vm492_vm5 = vweird.f32 %v363_v15 }
 0x1d1   :  { %v420_v42 = vsel %vm419_vm3, %v703_v58, %v416_v19  ;;  %v709_v26 = vpop.eup %708  ;;  %v549_v20 = vmul.f32 %v410_v24, %v944_v4  ;;  %714 = vrcp.f32 %v364_v45  ;;  %v511_v51 = vand.u32 2147483647, %v364_v45 }
 0x1d2   :  { %v425_v46 = vsel %vm422_vm4, %v424_v17, %v420_v42  ;;  %v711_v29 = vpop.eup %710  ;;  %v365_v30 = vadd.f32 1.0, %v709_v26  ;;  %v513_v37 = vand.u32 2147483648, %v364_v45  ;;  %vm497_vm6 = vcmp.eq.f32.partialorder %v496_v34, 8.507059e+37 }
 0x1d3   :  { %v550_v12 = vmul.f32 %v425_v46, %v949_v28  ;;  %v1076_v25 = vadd.f32 1.0, %v711_v29  ;;  %v499_v44 = vor.u32 1.1754944e-38, %v498_v43  ;;  %vm507_vm8 = vweird.f32 %v364_v45 }
 0x1d4   :  { %716 = vrcp.f32 %v365_v30  ;;  %vm1082_vm10 = vcmp.eq.f32.partialorder %v511_v51, 8.507059e+37  ;;  %v514_v54 = vor.u32 1.1754944e-38, %v513_v37  ;;  %vm522_vm11 = vweird.f32 %v365_v30 }
 0x1d5   :  { %v560_v31 = vpack.c.bf16 %v550_v12, %v549_v20  ;;  %v713_v32 = vpop.eup %712  ;;  %718 = vrcp.f32 %v1076_v25  ;;  %v528_v39 = vand.u32 2147483648, %v365_v30  ;;  %v526_v62 = vand.u32 2147483647, %v365_v30 }
 0x1d6   :  { %v488_v33 = vmul.f32 %v713_v32, %v363_v15  ;;  %vm493_vm0 = vweird.f32 %v713_v32  ;;  %v541_v35 = vand.u32 2147483647, %v1076_v25  ;;  %v543_v1 = vand.u32 2147483648, %v1076_v25 }
 0x1d7   :  { %566 = vst [vmem:[%s1108_s5 + $0x8] sm:$0xff] %v560_v31  ;;  %v715_v41 = vpop.eup %714  ;;  %vm494_vm7 = vmor %vm492_vm5, %vm493_vm0  ;;  %v529_v9 = vor.u32 1.1754944e-38, %v528_v39  ;;  %vm527_vm1 = vcmp.eq.f32.partialorder %v526_v62, 8.507059e+37  ;;  %vm537_vm2 = vweird.f32 %v1076_v25 }
 0x1d8   :  { %v489_v4 = vsub.f32 1.0, %v488_v33  ;;  %v503_v28 = vmul.f32 %v715_v41, %v364_v45  ;;  %vm508_vm9 = vweird.f32 %v715_v41  ;;  %v544_v11 = vor.u32 1.1754944e-38, %v543_v1 }
 0x1d9   :  { %vm509_vm12 = vmor %vm507_vm8, %vm508_vm9  ;;  %vm542_vm4 = vcmp.eq.f32.partialorder %v541_v35, 8.507059e+37 }
 0x1da   :  { %v490_v36 = vmul.f32 %v713_v32, %v489_v4  ;;  %v717_v38 = vpop.eup %716  ;;  %v504_v27 = vsub.f32 1.0, %v503_v28 }
 0x1db   :  { %v518_v22 = vmul.f32 %v717_v38, %v365_v30  ;;  %v719_v47 = vpop.eup %718  ;;  %vm523_vm13 = vweird.f32 %v717_v38 }
 0x1dc   :  { %v491_v21 = vadd.f32 %v713_v32, %v490_v36  ;;  %v505_v48 = vmul.f32 %v715_v41, %v504_v27  ;;  %v533_v56 = vmul.f32 %v719_v47, %v1076_v25  ;;  %vm538_vm14 = vweird.f32 %v719_v47  ;;  %vm524_vm15 = vmor %vm522_vm11, %vm523_vm13 }
 0x1dd   :  { %v519_v55 = vsub.f32 1.0, %v518_v22  ;;  %vm539_vm3 = vmor %vm537_vm2, %vm538_vm14 }
 0x1de   :  { %v495_v50 = vsel %vm494_vm7, %v713_v32, %v491_v21  ;;  %v506_v58 = vadd.f32 %v715_v41, %v505_v48  ;;  %v534_v63 = vsub.f32 1.0, %v533_v56 }
 0x1df   :  { %v500_v57 = vsel %vm497_vm6, %v499_v44, %v495_v50  ;;  %v520_v59 = vmul.f32 %v717_v38, %v519_v55 }
 0x1e0   :  { %v555_v40 = vmul.f32 %v500_v57, %v1008_v2  ;;  %v510_v0 = vsel %vm509_vm12, %v715_v41, %v506_v58  ;;  %v535_v5 = vmul.f32 %v719_v47, %v534_v63 }
 0x1e1   :  { %v515_v60 = vsel %vm1082_vm10, %v514_v54, %v510_v0  ;;  %v521_v3 = vadd.f32 %v717_v38, %v520_v59 }
 0x1e2   :  { %v556_v7 = vmul.f32 %v515_v60, %v1025_v23  ;;  %v536_v6 = vadd.f32 %v719_v47, %v535_v5 }
 0x1e3   :  { %v525_v10 = vsel %vm524_vm15, %v717_v38, %v521_v3 }
 0x1e4   :  { %v563_v2 = vpack.c.bf16 %v556_v7, %v555_v40  ;;  %v530_v61 = vsel %vm527_vm1, %v529_v9, %v525_v10  ;;  %v540_v14 = vsel %vm539_vm3, %v719_v47, %v536_v6 }
 0x1e5   :  { %v557_v13 = vmul.f32 %v530_v61, %v1054_v52  ;;  %v545_v23 = vsel %vm542_vm4, %v544_v11, %v540_v14 }
 0x1e6   :  { %569 = vst [vmem:[%s1108_s5 + $0x20] sm:$0xff] %v563_v2  ;;  %v558_v15 = vmul.f32 %v545_v23, %v1057_v53 }
 0x1e8   :  { %v564_v16 = vpack.c.bf16 %v558_v15, %v557_v13 }
 0x1ea   :  { %570 = vst [vmem:[%s1108_s5 + $0x28] sm:$0xff] %v564_v16 }

// kernel: custom_clip_forward.42
= control target key start
LH: loop header
LB: loop body
LE: loop exit
PB: predicated region body
PF: predicated region fallthrough
CT: control target
= control target key end

     0   :  { %vm257_vm0 = vcmask 519168   ;;  %s554_s1 = inlined_call_operand.vmem [shape: bf16[256,64], index: 1, kind: input, shape index: {}]   ;;  %s555_s2 = inlined_call_operand.vmem [shape: f32[1,64], index: 2, kind: input, shape index: {}]   ;;  %s556_s0 = inlined_call_operand.vmem [shape: bf16[48,256], index: 0, kind: input, shape index: {}]   ;;  %s557_s3 = inlined_call_operand.vmem [shape: bf16[48,64], index: 3, kind: input, shape index: {}]   ;;  %s558_s4 = inlined_call_operand.vmem [shape: bf16[48,64], index: 4, kind: output, shape index: {}]  }
   0x1   :  { %v369_v0 = vld [vmem:[%s554_s1 + $0x38] sm:$0xff]  ;;  %v368_v2 = vld [vmem:[%s554_s1 + $0x30] sm:$0xff]  ;;  %v367_v4 = vld [vmem:[%s554_s1 + $0x28] sm:$0xff] }
   0x2   :  { %v377_v1 = vld [vmem:[%s554_s1 + $0x78] sm:$0xff]  ;;  %392 = vmatpush.bf16.msra.mxu2 %v369_v0  ;;  %v376_v3 = vld [vmem:[%s554_s1 + $0x70] sm:$0xff]  ;;  %185 = vmatpush.bf16.msra.mxu0 %v369_v0  ;;  %v375_v5 = vld [vmem:[%s554_s1 + $0x68] sm:$0xff] }
   0x3   :  { %400 = vmatpush.bf16.msra.mxu3 %v377_v1  ;;  %209 = vmatpush.bf16.msra.mxu1 %v377_v1  ;;  %v366_v6 = vld [vmem:[%s554_s1 + $0x20] sm:$0xff]  ;;  %v365_v8 = vld [vmem:[%s554_s1 + $0x18] sm:$0xff]  ;;  %v364_v10 = vld [vmem:[%s554_s1 + $0x10] sm:$0xff] }
   0x4   :  { %v374_v7 = vld [vmem:[%s554_s1 + $0x60] sm:$0xff]  ;;  %v373_v9 = vld [vmem:[%s554_s1 + $0x58] sm:$0xff]  ;;  %v372_v11 = vld [vmem:[%s554_s1 + $0x50] sm:$0xff] }
   0x5   :  { %v363_v12 = vld [vmem:[%s554_s1 + $0x8] sm:$0xff]  ;;  %v362_v14 = vld [vmem:[%s554_s1] sm:$0xff]  ;;  %v278_v16 = vld [vmem:[%s556_s0 + $0x10] sm:$0xf] }
   0x6   :  { %393 = vmatpush.bf16.msra.mxu2 %v368_v2  ;;  %186 = vmatpush.bf16.msra.mxu0 %v368_v2  ;;  %v371_v13 = vld [vmem:[%s554_s1 + $0x48] sm:$0xff]  ;;  %v370_v15 = vld [vmem:[%s554_s1 + $0x40] sm:$0xff]  ;;  %v359_v17 = vld [vmem:[%s556_s0 + $0x14] sm:$0xf0] }
   0x7   :  { %401 = vmatpush.bf16.msra.mxu3 %v376_v3  ;;  %210 = vmatpush.bf16.msra.mxu1 %v376_v3  ;;  %v358_v18 = vld [vmem:[%s556_s0 + $0x14] sm:$0xf]  ;;  %v280_v19 = vld [vmem:[%s556_s0 + $0x18] sm:$0xf0]  ;;  %v270_v20 = vld [vmem:[%s556_s0] sm:$0xf]  ;;  %v279_v24 = vor.u32 %v359_v17, %v278_v16 }
   0x8   :  { %v357_v21 = vld [vmem:[%s556_s0 + $0x4] sm:$0xf0]  ;;  %v356_v22 = vld [vmem:[%s556_s0 + $0x4] sm:$0xf]  ;;  %v272_v23 = vld [vmem:[%s556_s0 + $0x8] sm:$0xf0]  ;;  %v283_v25 = vor.u32 %v358_v18, %v280_v19 }
   0x9   :  { %v271_v26 = vor.u32 %v357_v21, %v270_v20  ;;  %v275_v27 = vor.u32 %v356_v22, %v272_v23  ;;  %v286_v28 = vld [vmem:[%s556_s0 + $0x20] sm:$0xf]  ;;  %v361_v29 = vld [vmem:[%s556_s0 + $0x24] sm:$0xf0]  ;;  %v360_v30 = vld [vmem:[%s556_s0 + $0x24] sm:$0xf] }
   0xa   :  { %394 = vmatpush.bf16.msra.mxu2 %v367_v4  ;;  %187 = vmatpush.bf16.msra.mxu0 %v367_v4  ;;  %v288_v31 = vld [vmem:[%s556_s0 + $0x28] sm:$0xf0]  ;;  %v287_v32 = vor.u32 %v361_v29, %v286_v28  ;;  %v379_v34 = vld [vmem:[%s557_s3] sm:$0xff]   ;;  %v391_v0 = vld [vmem:[%s557_s3 + $0x10] sm:$0xff]  }
   0xb   :  { %402 = vmatpush.bf16.msra.mxu3 %v375_v5  ;;  %211 = vmatpush.bf16.msra.mxu1 %v375_v5  ;;  %v291_v33 = vor.u32 %v360_v30, %v288_v31  ;;  %v408_v35 = vld [vmem:[%s555_s2] ss:$0 sm:$0xff]  ;;  %v380_v39 = vunpack.c.l.bf16 %v379_v34  ;;  %v390_v40 = vld [vmem:[%s557_s3 + $0x8] sm:$0xff]   ;;  %v381_v52 = vunpack.c.h.bf16 %v379_v34  ;;  %v388_v5 = vunpack.c.l.bf16 %v391_v0 }
   0xc   :  { %v384_v46 = vunpack.c.l.bf16 %v390_v40  ;;  %v385_v60 = vunpack.c.h.bf16 %v390_v40 }
   0xe   :  { %395 = vmatpush.bf16.msra.mxu2 %v366_v6  ;;  %188 = vmatpush.bf16.msra.mxu0 %v366_v6 }
   0xf   :  { %403 = vmatpush.bf16.msra.mxu3 %v374_v7  ;;  %212 = vmatpush.bf16.msra.mxu1 %v374_v7 }
  0x12   :  { %396 = vmatpush.bf16.msra.mxu2 %v365_v8  ;;  %189 = vmatpush.bf16.msra.mxu0 %v365_v8 }
  0x13   :  { %404 = vmatpush.bf16.msra.mxu3 %v373_v9  ;;  %213 = vmatpush.bf16.msra.mxu1 %v373_v9 }
  0x16   :  { %397 = vmatpush.bf16.msra.mxu2 %v364_v10  ;;  %190 = vmatpush.bf16.msra.mxu0 %v364_v10 }
  0x17   :  { %405 = vmatpush.bf16.msra.mxu3 %v372_v11  ;;  %214 = vmatpush.bf16.msra.mxu1 %v372_v11  ;;  %v389_v11 = vunpack.c.h.bf16 %v391_v0 }
  0x1a   :  { %398 = vmatpush.bf16.msra.mxu2 %v363_v12  ;;  %191 = vmatpush.bf16.msra.mxu0 %v363_v12 }
  0x1b   :  { %406 = vmatpush.bf16.msra.mxu3 %v371_v13  ;;  %215 = vmatpush.bf16.msra.mxu1 %v371_v13 }
  0x1e   :  { %399 = vmatpush.bf16.msra.mxu2 %v362_v14  ;;  %192 = vmatpush.bf16.msra.mxu0 %v362_v14 }
  0x1f   :  { %407 = vmatpush.bf16.msra.mxu3 %v370_v15  ;;  %216 = vmatpush.bf16.msra.mxu1 %v370_v15 }
  0x21   :  { %198 = vmatmul.bf16.vlgmr.msra.gmra.mxu2 %v279_v24  ;;  %193 = vmatmul.bf16.vlgmr.msra.gmra.mxu0 %v271_v26 }
  0x22   :  { %222 = vmatmul.bf16.vlgmr.msra.gmra.mxu3 %v283_v25  ;;  %217 = vmatmul.bf16.vlgmr.msra.gmra.mxu1 %v275_v27 }
  0x31   :  { %203 = vmatmul.bf16.gmra.mxu2 %v287_v32 }
  0x32   :  { %227 = vmatmul.bf16.gmra.mxu3 %v291_v33 }
  0x9e   :  { %v194_v36 = vpop.f32.mrf.mxu0 }
  0x9f   :  { %v218_v37 = vpop.f32.mrf.mxu1  ;;  %v195_v38 = vadd.f32 %v408_v35, %v194_v36 }
  0xa1   :  { %v219_v41 = vadd.f32 %v218_v37, %v195_v38 }
  0xa3   :  { %v245_v44 = vadd.f32 %v380_v39, %v219_v41 }
  0xa4   :  { %v199_v42 = vpop.f32.mrf.mxu2 }
  0xa5   :  { %v223_v43 = vpop.f32.mrf.mxu3  ;;  %v200_v45 = vadd.f32 %v408_v35, %v199_v42  ;;  %v251_v47 = vpack.c.bf16 %v245_v44, %v245_v44 }
  0xa6   :  { %v196_v49 = vpop.f32.mrf.mxu0 }
  0xa7   :  { %v224_v48 = vadd.f32 %v223_v43, %v200_v45  ;;  %v220_v50 = vpop.f32.mrf.mxu1  ;;  %258 = vst.msk [vmem:[%s558_s4] sm:$0xf] %vm257_vm0, %v251_v47  ;;  %v197_v51 = vadd.f32 %v408_v35, %v196_v49 }
  0xa9   :  { %v247_v53 = vadd.f32 %v384_v46, %v224_v48  ;;  %v221_v54 = vadd.f32 %v220_v50, %v197_v51 }
  0xab   :  { %v253_v55 = vpack.c.bf16 %v247_v53, %v247_v53  ;;  %v246_v58 = vadd.f32 %v381_v52, %v221_v54 }
  0xac   :  { %v201_v56 = vpop.f32.mrf.mxu2 }
  0xad   :  { %v225_v57 = vpop.f32.mrf.mxu3  ;;  %260 = vst.msk [vmem:[%s558_s4 + $0x8] sm:$0xf] %vm257_vm0, %v253_v55  ;;  %v202_v59 = vadd.f32 %v408_v35, %v201_v56  ;;  %v252_v61 = vpack.c.bf16 %v246_v58, %v246_v58 }
  0xaf   :  { %v226_v62 = vadd.f32 %v225_v57, %v202_v59  ;;  %259 = vst.msk [vmem:[%s558_s4 + $0x4] sm:$0xf] %vm257_vm0, %v252_v61 }
  0xb1   :  { %v248_v63 = vadd.f32 %v385_v60, %v226_v62 }
  0xb3   :  { %v254_v1 = vpack.c.bf16 %v248_v63, %v248_v63 }
  0xb4   :  { %v204_v2 = vpop.f32.mrf.mxu2 }
  0xb5   :  { %v228_v3 = vpop.f32.mrf.mxu3  ;;  %261 = vst.msk [vmem:[%s558_s4 + $0xc] sm:$0xf] %vm257_vm0, %v254_v1  ;;  %v205_v4 = vadd.f32 %v408_v35, %v204_v2 }
  0xb7   :  { %v229_v6 = vadd.f32 %v228_v3, %v205_v4 }
  0xb9   :  { %v249_v7 = vadd.f32 %v388_v5, %v229_v6 }
  0xbb   :  { %v255_v8 = vpack.c.bf16 %v249_v7, %v249_v7 }
  0xbc   :  { %v206_v9 = vpop.f32.mrf.mxu2 }
  0xbd   :  { %262 = vst.msk [vmem:[%s558_s4 + $0x10] sm:$0xf] %vm257_vm0, %v255_v8  ;;  %v207_v10 = vadd.f32 %v408_v35, %v206_v9  ;;  %v230_v12 = vpop.f32.mrf.mxu3 }
  0xbf   :  { %v231_v13 = vadd.f32 %v230_v12, %v207_v10 }
  0xc1   :  { %v250_v14 = vadd.f32 %v389_v11, %v231_v13 }
  0xc3   :  { %v256_v15 = vpack.c.bf16 %v250_v14, %v250_v14 }
  0xc5   :  { %263 = vst.msk [vmem:[%s558_s4 + $0x14] sm:$0xf] %vm257_vm0, %v256_v15 }

// kernel: custom_clip_forward.49
= control target key start
LH: loop header
LB: loop body
LE: loop exit
PB: predicated region body
PF: predicated region fallthrough
CT: control target
= control target key end

     0   :  { %s166_s0 = inlined_call_operand.vmem [shape: bf16[2,64], index: 0, kind: input, shape index: {}]   ;;  %s167_s1 = inlined_call_operand.vmem [shape: bf16[3,64], index: 1, kind: input, shape index: {}]   ;;  %s168_s2 = inlined_call_operand.<no memory space> [shape: f32[1], index: 2, kind: input, shape index: {}]   ;;  %s169_s3 = inlined_call_operand.hbm [shape: f32[2,3], index: 3, kind: output, shape index: {}]  }
   0x1   :  { %v18_v0 = vld [vmem:[%s167_s1] sm:$0x3] }
   0x2   :  { %v16_v1 = vld [vmem:[%s166_s0] sm:$0x1]  ;;  %v19_v2 = vunpack.c.l.bf16 %v18_v0 }
   0x3   :  { %9 = vsyncpa [#allocation4], 0  ;;  %vm37_vm0 = vcmask 518144   ;;  %v17_v4 = vunpack.c.l.bf16 %v16_v1  ;;  %vm21_vm1 = vcmask 517120   ;;  %vm52_vm5 = vcmask 523264   ;;  %s133_s16 = smov [#allocation3]  }
   0x4   :  { %v36_v3 = vmul.f32 %v19_v2, %v19_v2  ;;  %v80_v26 = vstv %s168_s2  ;;  %s89_s17 = sshll.u32 %s133_s16, 4  ;;  %s91_s20 = sshll.u32 %s169_s3, 4  ;;  %vm82_vm9 = vcmask 17408   ;;  %s90_s17 = int_to_ptr.vmem [resolvable:$true] %s89_s17  ;;  %s92_s20 = int_to_ptr.hbm [resolvable:$true] %s91_s20 }
   0x5   :  { %v20_v6 = vmul.f32 %v17_v4, %v17_v4 }
   0x6   :  { %v38_v5 = vsel %vm37_vm0, %v36_v3, 0.0 }
   0x7   :  { %39 = vadd.xlane.f32.xlu0 %v38_v5  ;;  %v22_v7 = vsel %vm21_vm1, %v20_v6, 0.0 }
   0xf   :  { %23 = vadd.xlane.f32.xlu0 %v22_v7 }
  0x7a   :  { %v40_v8 = vpop.xlane.xlu0 %39 }
  0x7b   :  { %103 = vrsqrt.f32 %v40_v8  ;;  %vm47_vm3 = vweird.f32 %v40_v8 }
  0x81   :  { %v104_v9 = vpop.eup %103 }
  0x82   :  { %v42_v10 = vmul.f32 %v104_v9, %v40_v8  ;;  %v24_v11 = vpop.xlane.xlu0 %23  ;;  %vm48_vm2 = vweird.f32 %v104_v9 }
  0x83   :  { %105 = vrsqrt.f32 %v24_v11  ;;  %vm49_vm4 = vmor %vm47_vm3, %vm48_vm2  ;;  %vm31_vm7 = vweird.f32 %v24_v11 }
  0x84   :  { %v43_v12 = vmul.f32 %v104_v9, %v42_v10 }
  0x86   :  { %v44_v13 = vmul.f32 0.5, %v43_v12 }
  0x88   :  { %v45_v14 = vsub.f32 1.5, %v44_v13 }
  0x89   :  { %v106_v15 = vpop.eup %105 }
  0x8a   :  { %v26_v16 = vmul.f32 %v106_v15, %v24_v11  ;;  %v46_v17 = vmul.f32 %v104_v9, %v45_v14  ;;  %vm32_vm6 = vweird.f32 %v106_v15 }
  0x8b   :  { %vm33_vm8 = vmor %vm31_vm7, %vm32_vm6 }
  0x8c   :  { %v27_v18 = vmul.f32 %v106_v15, %v26_v16  ;;  %v50_v19 = vsel %vm49_vm4, %v104_v9, %v46_v17 }
  0x8d   :  { %v51_v20 = vmul.f32 %v50_v19, %v19_v2 }
  0x8e   :  { %v28_v21 = vmul.f32 0.5, %v27_v18 }
  0x8f   :  { %100 = vmatpush.xpose.msk.msra.mxu0 %vm52_vm5, %v51_v20 }
  0x90   :  { %v29_v22 = vsub.f32 1.5, %v28_v21 }
  0x92   :  { %v30_v23 = vmul.f32 %v106_v15, %v29_v22 }
  0x94   :  { %v34_v24 = vsel %vm33_vm8, %v106_v15, %v30_v23 }
  0x95   :  { %v35_v25 = vmul.f32 %v34_v24, %v17_v4 }
  0x97   :  { %101 = vmatmul.msk.f32.vlgmr.msra.gmra.mxu0 %vm52_vm5, %v35_v25 }
 0x114   :  { %v76_v27 = vpop.f32.mrf.mxu0 }
 0x115   :  { %v81_v28 = vmul.f32 %v80_v26, %v76_v27 }
 0x117   :  { %83 = vst.msk [vmem:[#allocation3] sm:$0x3] %vm82_vm9, %v81_v28 }
 0x118   :  { %94 = dma.vmem_to_hbm [thread:$0]  %s90_s17, 32, %s92_s20, [#allocation4]  }
 0x119   :  { %131 = dma.done.wait [#allocation4], 32  }
 0x11a   :  { %132 = vsyncadd [#allocation4], 4294967264 }
 0x11b   :  { %99 = vsyncpa [#allocation4], 1 }

</bundles_post_ra>
